<compile_context>
chip_gen: v6e
topology: v6e:2x2x1
jax: 0.10.0
libtpu: 0.0.40
codegen_flags: <defaults>
</compile_context>

<pallas_src>
import jax
import jax.numpy as jnp
from jax.experimental import pallas as pl
from jax.experimental.pallas import tpu as pltpu

LANE = 128
BN_EPS = 1e-5
# <= v7x's 64 MiB physical VMEM, above the 16/32 MiB default scoped limits on
# v5e/v6e so the larger row tiles those chips can afford are not rejected.
VMEM_LIMIT = 48 * 1024 * 1024


def _round_up(c, m=LANE):
    return ((c + m - 1) // m) * m


def _largest_divisor_leq(n, cap):
    # NOTE: degenerates to 1 for prime n (correct but slow) — pass th explicitly
    # for odd image sizes.
    d = max(1, min(cap, n))
    while n % d:
        d -= 1
    return d


# -----------------------------------------------------------------------------
# K1: ConvTranspose2d(k=2, s=2) — one fused (Ci, 4*Co) matmul per row tile.
# Output layout (N, H, 2, W, 2*Co) bf16; a free row-major reshape in the
# wrapper turns it into the upsampled NHWC tensor (N, 2H, 2W, Co).
# -----------------------------------------------------------------------------
def _tconv_stage(x, wt4, bt4, th_in, Co):
    N, H, W, Ci = x.shape
    T = H // th_in

    def kernel(x_ref, wt_ref, bt_ref, up_ref):
        xm = x_ref[...].reshape(th_in * W, Ci).astype(jnp.bfloat16)
        y = jnp.dot(xm, wt_ref[...], preferred_element_type=jnp.float32)
        y = (y + bt_ref[...]).astype(jnp.bfloat16)            # (th_in*W, 4*Co)
        for di in range(2):                                   # output rows 2h+di
            up_ref[:, di, :, :] = (
                y[:, di * 2 * Co:(di + 1) * 2 * Co].reshape(th_in, W, 2 * Co))

    return pl.pallas_call(
        kernel,
        grid=(N, T),
        in_specs=[
            pl.BlockSpec((None, th_in, W, Ci), lambda n, t: (n, t, 0, 0)),
            pl.BlockSpec((Ci, 4 * Co), lambda n, t: (0, 0)),
            pl.BlockSpec((1, 4 * Co), lambda n, t: (0, 0)),
        ],
        out_specs=pl.BlockSpec((None, th_in, 2, W, 2 * Co),
                               lambda n, t: (n, t, 0, 0, 0)),
        out_shape=jax.ShapeDtypeStruct((N, H, 2, W, 2 * Co), jnp.bfloat16),
        compiler_params=pltpu.CompilerParams(
            dimension_semantics=("parallel", "parallel"),
            vmem_limit_bytes=VMEM_LIMIT),
    )(x, wt4, bt4)


# -----------------------------------------------------------------------------
# Shared 3x3-conv tap loop over a border-zeroed VMEM window scratch.
# -----------------------------------------------------------------------------
def _conv3x3_from_window(win_ref, w_ref, th, W2, Cin, Cout):
    """win_ref: (th+2, W2, Cin) bf16 scratch (image-border rows already zero).
    w_ref: (9, Cin, Cout) bf16.  Returns f32 (th*W2, Cout)."""
    zc = jnp.zeros((th, 1, Cin), jnp.bfloat16)
    acc = None
    for ki in range(3):
        rows = win_ref[pl.ds(ki, th), :, :]                   # (th, W2, Cin)
        shifted = (
            jnp.concatenate([zc, rows[:, :W2 - 1, :]], axis=1),   # in[.., w-1]
            rows,                                                 # in[.., w  ]
            jnp.concatenate([rows[:, 1:, :], zc], axis=1),        # in[.., w+1]
        )
        for kj in range(3):
            lhs = shifted[kj].reshape(th * W2, Cin)
            d = jnp.dot(lhs, w_ref[ki * 3 + kj],
                        preferred_element_type=jnp.float32)
            acc = d if acc is None else acc + d               # init from 1st dot
    return acc


# -----------------------------------------------------------------------------
# K2: conv1(3x3, no bias) over cat([skip, up], channel) + BN1 global sum/sumsq.
# skip / up stay separate in HBM; the channel concat only happens while filling
# the VMEM window scratch (lane-aligned sub-stores) -> K = 2*Co matmuls.
# -----------------------------------------------------------------------------
def _conv1_stage(skip, up, w1, th, Co):
    N, H2, W2, _ = skip.shape
    T = H2 // th
    Cin = 2 * Co

    def kernel(s_top, s_mid, s_bot, u_top, u_mid, u_bot, w_ref,
               y_ref, sum_ref, sq_ref, win_ref):
        t = pl.program_id(1)
        last = pl.num_programs(1) - 1
        zrow = jnp.zeros((1, W2, Co), jnp.bfloat16)

        # skip channels -> lanes [0, Co); upsampled channels -> lanes [Co, 2Co)
        win_ref[pl.ds(0, 1), :, 0:Co] = jnp.where(t > 0, s_top[...], zrow)
        win_ref[pl.ds(1, th), :, 0:Co] = s_mid[...]
        win_ref[pl.ds(th + 1, 1), :, 0:Co] = jnp.where(t < last, s_bot[...], zrow)
        win_ref[pl.ds(0, 1), :, Co:Cin] = jnp.where(t > 0, u_top[...], zrow)
        win_ref[pl.ds(1, th), :, Co:Cin] = u_mid[...]
        win_ref[pl.ds(th + 1, 1), :, Co:Cin] = jnp.where(t < last, u_bot[...], zrow)

        acc = _conv3x3_from_window(win_ref, w_ref, th, W2, Cin, Co)

        # global BN statistics accumulated across the 'arbitrary' row-tile axis
        @pl.when(t == 0)
        def _init():
            sum_ref[...] = jnp.zeros_like(sum_ref)
            sq_ref[...] = jnp.zeros_like(sq_ref)
        sum_ref[...] += jnp.sum(acc, axis=0, keepdims=True)
        sq_ref[...] += jnp.sum(acc * acc, axis=0, keepdims=True)

        y_ref[...] = acc.reshape(th, W2, Co).astype(jnp.bfloat16)

    mid_map = lambda n, t: (n, t, 0, 0)
    top_map = lambda n, t: (n, jnp.maximum(t * th - 1, 0), 0, 0)
    bot_map = lambda n, t: (n, jnp.minimum(t * th + th, H2 - 1), 0, 0)
    halo_specs = [pl.BlockSpec((None, 1, W2, Co), top_map),
                  pl.BlockSpec((None, th, W2, Co), mid_map),
                  pl.BlockSpec((None, 1, W2, Co), bot_map)]

    return pl.pallas_call(
        kernel,
        grid=(N, T),
        in_specs=halo_specs + halo_specs
        + [pl.BlockSpec((9, Cin, Co), lambda n, t: (0, 0, 0))],
        out_specs=(
            pl.BlockSpec((None, th, W2, Co), mid_map),
            pl.BlockSpec((None, 1, Co), lambda n, t: (n, 0, 0)),
            pl.BlockSpec((None, 1, Co), lambda n, t: (n, 0, 0)),
        ),
        out_shape=(
            jax.ShapeDtypeStruct((N, H2, W2, Co), jnp.bfloat16),
            jax.ShapeDtypeStruct((N, 1, Co), jnp.float32),
            jax.ShapeDtypeStruct((N, 1, Co), jnp.float32),
        ),
        scratch_shapes=[pltpu.VMEM((th + 2, W2, Cin), jnp.bfloat16)],
        compiler_params=pltpu.CompilerParams(
            dimension_semantics=("parallel", "arbitrary"),
            vmem_limit_bytes=VMEM_LIMIT),
    )(skip, skip, skip, up, up, up, w1)


# -----------------------------------------------------------------------------
# K3: BN1-apply + ReLU fused into conv2 (z1 never hits HBM) + BN2 sum/sumsq.
# -----------------------------------------------------------------------------
def _conv2_stage(y1, w2, scale, shift, th, Co):
    N, H2, W2, _ = y1.shape
    T = H2 // th

    def kernel(top_ref, mid_ref, bot_ref, sc_ref, sh_ref, w_ref,
               y_ref, sum_ref, sq_ref, win_ref):
        t = pl.program_id(1)
        last = pl.num_programs(1) - 1
        sc = sc_ref[...].reshape(1, 1, Co)
        sh = sh_ref[...].reshape(1, 1, Co)

        def pre(v):                       # BN1 + ReLU in f32, bf16 for the MXU
            return jnp.maximum(v.astype(jnp.float32) * sc + sh,
                               0.0).astype(jnp.bfloat16)

        zrow = jnp.zeros((1, W2, Co), jnp.bfloat16)
        win_ref[pl.ds(0, 1), :, :] = jnp.where(t > 0, pre(top_ref[...]), zrow)
        win_ref[pl.ds(1, th), :, :] = pre(mid_ref[...])
        win_ref[pl.ds(th + 1, 1), :, :] = jnp.where(t < last, pre(bot_ref[...]),
                                                    zrow)

        acc = _conv3x3_from_window(win_ref, w_ref, th, W2, Co, Co)

        @pl.when(t == 0)
        def _init():
            sum_ref[...] = jnp.zeros_like(sum_ref)
            sq_ref[...] = jnp.zeros_like(sq_ref)
        sum_ref[...] += jnp.sum(acc, axis=0, keepdims=True)
        sq_ref[...] += jnp.sum(acc * acc, axis=0, keepdims=True)

        y_ref[...] = acc.reshape(th, W2, Co).astype(jnp.bfloat16)

    mid_map = lambda n, t: (n, t, 0, 0)
    top_map = lambda n, t: (n, jnp.maximum(t * th - 1, 0), 0, 0)
    bot_map = lambda n, t: (n, jnp.minimum(t * th + th, H2 - 1), 0, 0)

    return pl.pallas_call(
        kernel,
        grid=(N, T),
        in_specs=[pl.BlockSpec((None, 1, W2, Co), top_map),
                  pl.BlockSpec((None, th, W2, Co), mid_map),
                  pl.BlockSpec((None, 1, W2, Co), bot_map),
                  pl.BlockSpec((1, Co), lambda n, t: (0, 0)),
                  pl.BlockSpec((1, Co), lambda n, t: (0, 0)),
                  pl.BlockSpec((9, Co, Co), lambda n, t: (0, 0, 0))],
        out_specs=(
            pl.BlockSpec((None, th, W2, Co), mid_map),
            pl.BlockSpec((None, 1, Co), lambda n, t: (n, 0, 0)),
            pl.BlockSpec((None, 1, Co), lambda n, t: (n, 0, 0)),
        ),
        out_shape=(
            jax.ShapeDtypeStruct((N, H2, W2, Co), jnp.bfloat16),
            jax.ShapeDtypeStruct((N, 1, Co), jnp.float32),
            jax.ShapeDtypeStruct((N, 1, Co), jnp.float32),
        ),
        scratch_shapes=[pltpu.VMEM((th + 2, W2, Co), jnp.bfloat16)],
        compiler_params=pltpu.CompilerParams(
            dimension_semantics=("parallel", "arbitrary"),
            vmem_limit_bytes=VMEM_LIMIT),
    )(y1, y1, y1, scale, shift, w2)


# -----------------------------------------------------------------------------
# K4: final BN2-apply + ReLU (bf16 in, f32 out).
# -----------------------------------------------------------------------------
def _bn_relu_stage(y, scale, shift, th):
    N, H2, W2, C = y.shape
    T = H2 // th

    def kernel(y_ref, sc_ref, sh_ref, o_ref):
        sc = sc_ref[...].reshape(1, 1, C)
        sh = sh_ref[...].reshape(1, 1, C)
        o_ref[...] = jnp.maximum(y_ref[...].astype(jnp.float32) * sc + sh, 0.0)

    return pl.pallas_call(
        kernel,
        grid=(N, T),
        in_specs=[pl.BlockSpec((None, th, W2, C), lambda n, t: (n, t, 0, 0)),
                  pl.BlockSpec((1, C), lambda n, t: (0, 0)),
                  pl.BlockSpec((1, C), lambda n, t: (0, 0))],
        out_specs=pl.BlockSpec((None, th, W2, C), lambda n, t: (n, t, 0, 0)),
        out_shape=jax.ShapeDtypeStruct((N, H2, W2, C), jnp.float32),
        compiler_params=pltpu.CompilerParams(
            dimension_semantics=("parallel", "parallel"),
            vmem_limit_bytes=VMEM_LIMIT),
    )(y, scale, shift)


# -----------------------------------------------------------------------------
# JAX glue
# -----------------------------------------------------------------------------
def _bn_scale_shift(s, q, count, gamma, beta, eps=BN_EPS):
    mean = jnp.sum(s, axis=0) / count                                   # (1, C)
    var = jnp.maximum(jnp.sum(q, axis=0) / count - mean * mean, 0.0)    # biased
    scale = gamma.reshape(1, -1) * jax.lax.rsqrt(var + eps)
    shift = beta.reshape(1, -1) - mean * scale
    return scale, shift


def prepare_params(raw, in_ch, out_ch):
    """One-time weight re-layout + channel zero-padding (hoisted out of fwd)."""
    assert in_ch == 2 * out_ch, "UNet UpsampleBlock convention"
    Ci, Co = _round_up(in_ch), _round_up(out_ch)

    # ConvTranspose2d weight (in_ch, out_ch, 2, 2): fuse the 4 (di, dj) taps
    # along the matmul N dim -> (Ci, 4*Co), column block index = di*2 + dj.
    wt = jnp.transpose(raw["wt"], (0, 2, 3, 1))                 # (in, 2, 2, out)
    wt4 = jnp.zeros((Ci, 2, 2, Co), jnp.float32).at[:in_ch, :, :, :out_ch].set(wt)
    wt4 = wt4.reshape(Ci, 4 * Co)
    bt = jnp.zeros((Co,), jnp.float32).at[:out_ch].set(raw["bt"])
    bt4 = jnp.tile(bt.reshape(1, Co), (1, 4))                   # (1, 4*Co)

    # conv1 weight (out_ch, 2*out_ch, 3, 3) -> (9, 2*Co, Co); first Co input
    # lanes = skip half, next Co lanes = upsampled half (torch.cat order).
    w1t = jnp.transpose(raw["w1"], (2, 3, 1, 0)).reshape(9, in_ch, out_ch)
    w1 = jnp.zeros((9, 2 * Co, Co), jnp.float32)
    w1 = w1.at[:, :out_ch, :out_ch].set(w1t[:, :out_ch, :])           # skip half
    w1 = w1.at[:, Co:Co + out_ch, :out_ch].set(w1t[:, out_ch:, :])    # up half

    # conv2 weight (out_ch, out_ch, 3, 3) -> (9, Co, Co)
    w2t = jnp.transpose(raw["w2"], (2, 3, 1, 0)).reshape(9, out_ch, out_ch)
    w2 = jnp.zeros((9, Co, Co), jnp.float32).at[:, :out_ch, :out_ch].set(w2t)

    def padc(v):   # zero-padded gamma/beta keep padded BN lanes exactly 0
        return jnp.zeros((Co,), jnp.float32).at[:out_ch].set(v)

    return dict(
        in_ch=in_ch, out_ch=out_ch, Ci=Ci, Co=Co,
        wt4=wt4.astype(jnp.bfloat16), bt4=bt4,
        w1=w1.astype(jnp.bfloat16), g1=padc(raw["g1"]), b1=padc(raw["b1"]),
        w2=w2.astype(jnp.bfloat16), g2=padc(raw["g2"]), b2=padc(raw["b2"]),
    )


def upsample_block_forward(x_nchw, skip_nchw, prep, *, th_in=None, th=None):
    N, in_ch, H, W = x_nchw.shape
    Ns, skip_ch, H2, W2 = skip_nchw.shape
    Ci, Co, out_ch = prep["Ci"], prep["Co"], prep["out_ch"]
    assert Ns == N and skip_ch == out_ch and in_ch == prep["in_ch"]
    # TODO(synk): torchvision bilinear `resize` branch for a spatial mismatch
    # between skip and the upsampled x is not implemented.
    assert (H2, W2) == (2 * H, 2 * W), "spatial mismatch needs resize"
    assert W2 % 8 == 0, "lane/sublane-clean layout assumes W2 % 8 == 0"

    if th_in is None:
        th_in = _largest_divisor_leq(H, 8)
    if th is None:
        # cap at 16 rows so the conv stages stay well inside v7x's 64 MiB VMEM
        # at realistic UNet sizes; v6e/v5e users may pass a larger th (<=64).
        th = _largest_divisor_leq(H2, 16)
    assert H % th_in == 0 and H2 % th == 0

    # NCHW -> NHWC with channels zero-padded to a lane-dense multiple of 128.
    x = jnp.zeros((N, H, W, Ci), jnp.float32).at[..., :in_ch].set(
        jnp.transpose(x_nchw, (0, 2, 3, 1)))
    skip = jnp.zeros((N, H2, W2, Co), jnp.bfloat16).at[..., :out_ch].set(
        jnp.transpose(skip_nchw, (0, 2, 3, 1)).astype(jnp.bfloat16))

    # K1: transposed conv; the row-major reshape below is free (adjacent merges)
    up = _tconv_stage(x, prep["wt4"], prep["bt4"], th_in, Co)
    up = up.reshape(N, H2, W2, Co)

    count = N * H2 * W2
    # K2: conv1 over cat([skip, up]) (concat only in VMEM) + BN1 global stats
    y1, s1, q1 = _conv1_stage(skip, up, prep["w1"], th, Co)
    sc1, sh1 = _bn_scale_shift(s1, q1, count, prep["g1"], prep["b1"])
    # K3: BN1-apply + ReLU fused with conv2 + BN2 stats (z1 stays in VMEM)
    y2, s2, q2 = _conv2_stage(y1, prep["w2"], sc1, sh1, th, Co)
    sc2, sh2 = _bn_scale_shift(s2, q2, count, prep["g2"], prep["b2"])
    # K4: BN2-apply + ReLU
    z2 = _bn_relu_stage(y2, sc2, sh2, th)

    # drop channel padding, back to NCHW
    return jnp.transpose(z2[..., :out_ch], (0, 3, 1, 2))


# -----------------------------------------------------------------------------
# Pure-JAX f32 reference (for a loose sanity check; kernels use bf16 storage).
# -----------------------------------------------------------------------------
def _reference_forward(x_nchw, skip_nchw, raw):
    N, _, H, W = x_nchw.shape
    out_ch = raw["bt"].shape[0]
    up = jnp.einsum("nchw,coij->nhiwjo", x_nchw, raw["wt"])
    up = up.reshape(N, 2 * H, 2 * W, out_ch) + raw["bt"]
    skip = jnp.transpose(skip_nchw, (0, 2, 3, 1))
    cat = jnp.concatenate([skip, up], axis=-1)

    def conv3(v, w_oihw):
        w_hwio = jnp.transpose(w_oihw, (2, 3, 1, 0))
        return jax.lax.conv_general_dilated(
            v, w_hwio, (1, 1), "SAME",
            dimension_numbers=("NHWC", "HWIO", "NHWC"))

    def bn_relu(v, g, b):
        m = jnp.mean(v, axis=(0, 1, 2))
        var = jnp.var(v, axis=(0, 1, 2))
        return jnp.maximum((v - m) * jax.lax.rsqrt(var + BN_EPS) * g + b, 0.0)

    z1 = bn_relu(conv3(cat, raw["w1"]), raw["g1"], raw["b1"])
    z2 = bn_relu(conv3(z1, raw["w2"]), raw["g2"], raw["b2"])
    return jnp.transpose(z2, (0, 3, 1, 2))


# -----------------------------------------------------------------------------
if __name__ == "__main__":
    in_ch, out_ch = 8, 4          # UNet convention: in_channels = 2*out_channels
    N, H, W = 2, 8, 8             # x spatial; skip is the 2x resolution

    key = jax.random.PRNGKey(0)
    ks = jax.random.split(key, 10)
    raw = dict(
        wt=0.1 * jax.random.normal(ks[0], (in_ch, out_ch, 2, 2), jnp.float32),
        bt=0.1 * jax.random.normal(ks[1], (out_ch,), jnp.float32),
        w1=0.1 * jax.random.normal(ks[2], (out_ch, in_ch, 3, 3), jnp.float32),
        g1=1.0 + 0.1 * jax.random.normal(ks[3], (out_ch,), jnp.float32),
        b1=0.1 * jax.random.normal(ks[4], (out_ch,), jnp.float32),
        w2=0.1 * jax.random.normal(ks[5], (out_ch, out_ch, 3, 3), jnp.float32),
        g2=1.0 + 0.1 * jax.random.normal(ks[6], (out_ch,), jnp.float32),
        b2=0.1 * jax.random.normal(ks[7], (out_ch,), jnp.float32),
    )
    prep = prepare_params(raw, in_ch, out_ch)   # hoisted, one-time

    x = jax.random.normal(ks[8], (N, in_ch, H, W), jnp.float32)            # NCHW
    skip = jax.random.normal(ks[9], (N, out_ch, 2 * H, 2 * W), jnp.float32)

    # small row tiles so the toy shapes still exercise multi-step grids,
    # halo handling and the cross-tile global BN-stat accumulation
    fwd = jax.jit(lambda a, b: upsample_block_forward(a, b, prep, th_in=4, th=8))
    out = fwd(x, skip)
    jax.block_until_ready(out)
    assert out.shape == (N, out_ch, 2 * H, 2 * W)

    # loose sanity check vs an f32 XLA reference (kernel stores bf16 activations)
    ref = _reference_forward(x, skip, raw)
    err = float(jnp.max(jnp.abs(out - ref)))
    assert err < 1e-1, f"max abs error vs reference too large: {err}"
    print("KERNEL_OK")
</pallas_src>

<mosaic_0001>
module attributes {stable_mosaic.version = 11 : i64} {
  func.func @kernel(%arg0: i32, %arg1: i32, %arg2: memref<1x4x8x128xf32, #tpu.memory_space<vmem>>, %arg3: memref<128x512xbf16, #tpu.memory_space<vmem>>, %arg4: memref<1x512xf32, #tpu.memory_space<vmem>>, %arg5: memref<1x4x2x8x256xbf16, #tpu.memory_space<vmem>>) attributes {dimension_semantics = [#tpu.dimension_semantics<parallel>, #tpu.dimension_semantics<parallel>], iteration_bounds = array<i64: 2, 2>, scalar_prefetch = 0 : i64, scratch_operands = 0 : i64, tpu.core_type = #tpu.core_type<tc>, window_params = [{transform_indices = @transform_0, window_bounds = array<i64: 1, 4, 8, 128>}, {pipeline_mode = #tpu.pipeline_mode<synchronous>, transform_indices = @transform_1, window_bounds = array<i64: 128, 512>}, {pipeline_mode = #tpu.pipeline_mode<synchronous>, transform_indices = @transform_2, window_bounds = array<i64: 1, 512>}, {transform_indices = @transform_3, window_bounds = array<i64: 1, 4, 2, 8, 256>}]} {
    %c0 = arith.constant 0 : index
    %c0_0 = arith.constant 0 : index
    %c0_1 = arith.constant 0 : index
    %c0_2 = arith.constant 0 : index
    %0 = vector.load %arg2[%c0, %c0_0, %c0_1, %c0_2] : memref<1x4x8x128xf32, #tpu.memory_space<vmem>>, vector<1x4x8x128xf32>
    %1 = vector.shape_cast %0 : vector<1x4x8x128xf32> to vector<4x8x128xf32>
    %2 = vector.shape_cast %1 : vector<4x8x128xf32> to vector<32x128xf32>
    %3 = arith.truncf %2 : vector<32x128xf32> to vector<32x128xbf16>
    %c0_3 = arith.constant 0 : index
    %c0_4 = arith.constant 0 : index
    %4 = vector.load %arg3[%c0_3, %c0_4] : memref<128x512xbf16, #tpu.memory_space<vmem>>, vector<128x512xbf16>
    %cst = arith.constant dense<0.000000e+00> : vector<32x512xf32>
    %5 = tpu.matmul %3, %4, %cst {dimension_numbers = #tpu.dot_dimension_numbers<[1], [0], [0], [1], [0, 0, 1, 1], [], []>} : vector<32x128xbf16>, vector<128x512xbf16>, vector<32x512xf32> -> vector<32x512xf32>
    %c0_5 = arith.constant 0 : index
    %c0_6 = arith.constant 0 : index
    %6 = vector.load %arg4[%c0_5, %c0_6] : memref<1x512xf32, #tpu.memory_space<vmem>>, vector<1x512xf32>
    %7 = vector.broadcast %6 : vector<1x512xf32> to vector<32x512xf32>
    %8 = arith.addf %5, %7 : vector<32x512xf32>
    %9 = arith.truncf %8 : vector<32x512xf32> to vector<32x512xbf16>
    %10 = vector.extract_strided_slice %9 {offsets = [0, 0], sizes = [32, 256], strides = [1, 1]} : vector<32x512xbf16> to vector<32x256xbf16>
    %11 = vector.shape_cast %10 : vector<32x256xbf16> to vector<4x8x256xbf16>
    %c0_7 = arith.constant 0 : index
    %c0_8 = arith.constant 0 : index
    %c0_9 = arith.constant 0 : index
    %c0_10 = arith.constant 0 : index
    %c0_11 = arith.constant 0 : index
    %12 = vector.load %arg5[%c0_7, %c0_8, %c0_9, %c0_10, %c0_11] : memref<1x4x2x8x256xbf16, #tpu.memory_space<vmem>>, vector<1x4x1x8x256xbf16>
    %13 = vector.shape_cast %12 : vector<1x4x1x8x256xbf16> to vector<4x8x256xbf16>
    %14 = vector.shape_cast %11 : vector<4x8x256xbf16> to vector<1x4x1x8x256xbf16>
    tpu.vector_store %arg5[%c0_7, %c0_8, %c0_9, %c0_10, %c0_11], %14 {strides = array<i32>} : memref<1x4x2x8x256xbf16, #tpu.memory_space<vmem>>, vector<1x4x1x8x256xbf16>,
    %15 = vector.extract_strided_slice %9 {offsets = [0, 256], sizes = [32, 256], strides = [1, 1]} : vector<32x512xbf16> to vector<32x256xbf16>
    %16 = vector.shape_cast %15 : vector<32x256xbf16> to vector<4x8x256xbf16>
    %c0_12 = arith.constant 0 : index
    %c0_13 = arith.constant 0 : index
    %c1 = arith.constant 1 : index
    %c0_14 = arith.constant 0 : index
    %c0_15 = arith.constant 0 : index
    %17 = vector.load %arg5[%c0_12, %c0_13, %c1, %c0_14, %c0_15] : memref<1x4x2x8x256xbf16, #tpu.memory_space<vmem>>, vector<1x4x1x8x256xbf16>
    %18 = vector.shape_cast %17 : vector<1x4x1x8x256xbf16> to vector<4x8x256xbf16>
    %19 = vector.shape_cast %16 : vector<4x8x256xbf16> to vector<1x4x1x8x256xbf16>
    tpu.vector_store %arg5[%c0_12, %c0_13, %c1, %c0_14, %c0_15], %19 {strides = array<i32>} : memref<1x4x2x8x256xbf16, #tpu.memory_space<vmem>>, vector<1x4x1x8x256xbf16>,
    return
  }
  func.func @transform_0(%arg0: i32, %arg1: i32) -> (i32, i32, i32, i32) {
    %c0_i32 = arith.constant 0 : i32
    %c0_i32_0 = arith.constant 0 : i32
    %c0_i32_1 = arith.constant 0 : i32
    return %arg0, %arg1, %c0_i32, %c0_i32_0 : i32, i32, i32, i32
  }
  func.func @transform_1(%arg0: i32, %arg1: i32) -> (i32, i32) {
    %c0_i32 = arith.constant 0 : i32
    %c0_i32_0 = arith.constant 0 : i32
    %c0_i32_1 = arith.constant 0 : i32
    return %c0_i32, %c0_i32_0 : i32, i32
  }
  func.func @transform_2(%arg0: i32, %arg1: i32) -> (i32, i32) {
    %c0_i32 = arith.constant 0 : i32
    %c0_i32_0 = arith.constant 0 : i32
    %c0_i32_1 = arith.constant 0 : i32
    return %c0_i32, %c0_i32_0 : i32, i32
  }
  func.func @transform_3(%arg0: i32, %arg1: i32) -> (i32, i32, i32, i32, i32) {
    %c0_i32 = arith.constant 0 : i32
    %c0_i32_0 = arith.constant 0 : i32
    %c0_i32_1 = arith.constant 0 : i32
    %c0_i32_2 = arith.constant 0 : i32
    return %arg0, %arg1, %c0_i32, %c0_i32_0, %c0_i32_1 : i32, i32, i32, i32, i32
  }
}

module attributes {stable_mosaic.version = 11 : i64} {
  func.func @kernel(%arg0: i32, %arg1: i32, %arg2: memref<1x1x16x128xbf16, #tpu.memory_space<vmem>>, %arg3: memref<1x8x16x128xbf16, #tpu.memory_space<vmem>>, %arg4: memref<1x1x16x128xbf16, #tpu.memory_space<vmem>>, %arg5: memref<1x1x16x128xbf16, #tpu.memory_space<vmem>>, %arg6: memref<1x8x16x128xbf16, #tpu.memory_space<vmem>>, %arg7: memref<1x1x16x128xbf16, #tpu.memory_space<vmem>>, %arg8: memref<9x256x128xbf16, #tpu.memory_space<vmem>>, %arg9: memref<1x8x16x128xbf16, #tpu.memory_space<vmem>>, %arg10: memref<1x1x128xf32, #tpu.memory_space<vmem>>, %arg11: memref<1x1x128xf32, #tpu.memory_space<vmem>>, %arg12: memref<10x16x256xbf16, #tpu.memory_space<vmem>>) attributes {dimension_semantics = [#tpu.dimension_semantics<parallel>, #tpu.dimension_semantics<arbitrary>], iteration_bounds = array<i64: 2, 2>, scalar_prefetch = 0 : i64, scratch_operands = 1 : i64, tpu.core_type = #tpu.core_type<tc>, window_params = [{transform_indices = @transform_0, window_bounds = array<i64: 1, 1, 16, 128>}, {transform_indices = @transform_1, window_bounds = array<i64: 1, 8, 16, 128>}, {transform_indices = @transform_2, window_bounds = array<i64: 1, 1, 16, 128>}, {transform_indices = @transform_3, window_bounds = array<i64: 1, 1, 16, 128>}, {transform_indices = @transform_4, window_bounds = array<i64: 1, 8, 16, 128>}, {transform_indices = @transform_5, window_bounds = array<i64: 1, 1, 16, 128>}, {pipeline_mode = #tpu.pipeline_mode<synchronous>, transform_indices = @transform_6, window_bounds = array<i64: 9, 256, 128>}, {transform_indices = @transform_7, window_bounds = array<i64: 1, 8, 16, 128>}, {transform_indices = @transform_8, window_bounds = array<i64: 1, 1, 128>}, {transform_indices = @transform_9, window_bounds = array<i64: 1, 1, 128>}]} {
    %cst = arith.constant 0.000000e+00 : bf16
    %0 = vector.broadcast %cst : bf16 to vector<1x16x128xbf16>
    %c0_i32 = arith.constant 0 : i32
    %1 = arith.cmpi sgt, %arg1, %c0_i32 : i32
    %c0 = arith.constant 0 : index
    %c0_0 = arith.constant 0 : index
    %c0_1 = arith.constant 0 : index
    %c0_2 = arith.constant 0 : index
    %2 = vector.load %arg2[%c0, %c0_0, %c0_1, %c0_2] : memref<1x1x16x128xbf16, #tpu.memory_space<vmem>>, vector<1x1x16x128xbf16>
    %3 = vector.shape_cast %2 : vector<1x1x16x128xbf16> to vector<1x16x128xbf16>
    %4 = arith.select %1, %3, %0 : vector<1x16x128xbf16>
    %c0_3 = arith.constant 0 : index
    %c0_4 = arith.constant 0 : index
    %c0_5 = arith.constant 0 : index
    %5 = vector.load %arg12[%c0_3, %c0_4, %c0_5] : memref<10x16x256xbf16, #tpu.memory_space<vmem>>, vector<1x16x128xbf16>
    tpu.vector_store %arg12[%c0_3, %c0_4, %c0_5], %4 {strides = array<i32>} : memref<10x16x256xbf16, #tpu.memory_space<vmem>>, vector<1x16x128xbf16>,
    %c0_6 = arith.constant 0 : index
    %c0_7 = arith.constant 0 : index
    %c0_8 = arith.constant 0 : index
    %c0_9 = arith.constant 0 : index
    %6 = vector.load %arg3[%c0_6, %c0_7, %c0_8, %c0_9] : memref<1x8x16x128xbf16, #tpu.memory_space<vmem>>, vector<1x8x16x128xbf16>
    %7 = vector.shape_cast %6 : vector<1x8x16x128xbf16> to vector<8x16x128xbf16>
    %c1 = arith.constant 1 : index
    %c0_10 = arith.constant 0 : index
    %c0_11 = arith.constant 0 : index
    %8 = vector.load %arg12[%c1, %c0_10, %c0_11] : memref<10x16x256xbf16, #tpu.memory_space<vmem>>, vector<8x16x128xbf16>
    tpu.vector_store %arg12[%c1, %c0_10, %c0_11], %7 {strides = array<i32>} : memref<10x16x256xbf16, #tpu.memory_space<vmem>>, vector<8x16x128xbf16>,
    %c1_i32 = arith.constant 1 : i32
    %9 = arith.cmpi slt, %arg1, %c1_i32 : i32
    %c0_12 = arith.constant 0 : index
    %c0_13 = arith.constant 0 : index
    %c0_14 = arith.constant 0 : index
    %c0_15 = arith.constant 0 : index
    %10 = vector.load %arg4[%c0_12, %c0_13, %c0_14, %c0_15] : memref<1x1x16x128xbf16, #tpu.memory_space<vmem>>, vector<1x1x16x128xbf16>
    %11 = vector.shape_cast %10 : vector<1x1x16x128xbf16> to vector<1x16x128xbf16>
    %12 = arith.select %9, %11, %0 : vector<1x16x128xbf16>
    %c9 = arith.constant 9 : index
    %c0_16 = arith.constant 0 : index
    %c0_17 = arith.constant 0 : index
    %13 = vector.load %arg12[%c9, %c0_16, %c0_17] : memref<10x16x256xbf16, #tpu.memory_space<vmem>>, vector<1x16x128xbf16>
    tpu.vector_store %arg12[%c9, %c0_16, %c0_17], %12 {strides = array<i32>} : memref<10x16x256xbf16, #tpu.memory_space<vmem>>, vector<1x16x128xbf16>,
    %c0_i32_18 = arith.constant 0 : i32
    %14 = arith.cmpi sgt, %arg1, %c0_i32_18 : i32
    %c0_19 = arith.constant 0 : index
    %c0_20 = arith.constant 0 : index
    %c0_21 = arith.constant 0 : index
    %c0_22 = arith.constant 0 : index
    %15 = vector.load %arg5[%c0_19, %c0_20, %c0_21, %c0_22] : memref<1x1x16x128xbf16, #tpu.memory_space<vmem>>, vector<1x1x16x128xbf16>
    %16 = vector.shape_cast %15 : vector<1x1x16x128xbf16> to vector<1x16x128xbf16>
    %17 = arith.select %14, %16, %0 : vector<1x16x128xbf16>
    %c0_23 = arith.constant 0 : index
    %c0_24 = arith.constant 0 : index
    %c128 = arith.constant 128 : index
    %18 = vector.load %arg12[%c0_23, %c0_24, %c128] : memref<10x16x256xbf16, #tpu.memory_space<vmem>>, vector<1x16x128xbf16>
    tpu.vector_store %arg12[%c0_23, %c0_24, %c128], %17 {strides = array<i32>} : memref<10x16x256xbf16, #tpu.memory_space<vmem>>, vector<1x16x128xbf16>,
    %c0_25 = arith.constant 0 : index
    %c0_26 = arith.constant 0 : index
    %c0_27 = arith.constant 0 : index
    %c0_28 = arith.constant 0 : index
    %19 = vector.load %arg6[%c0_25, %c0_26, %c0_27, %c0_28] : memref<1x8x16x128xbf16, #tpu.memory_space<vmem>>, vector<1x8x16x128xbf16>
    %20 = vector.shape_cast %19 : vector<1x8x16x128xbf16> to vector<8x16x128xbf16>
    %c1_29 = arith.constant 1 : index
    %c0_30 = arith.constant 0 : index
    %c128_31 = arith.constant 128 : index
    %21 = vector.load %arg12[%c1_29, %c0_30, %c128_31] : memref<10x16x256xbf16, #tpu.memory_space<vmem>>, vector<8x16x128xbf16>
    tpu.vector_store %arg12[%c1_29, %c0_30, %c128_31], %20 {strides = array<i32>} : memref<10x16x256xbf16, #tpu.memory_space<vmem>>, vector<8x16x128xbf16>,
    %c1_i32_32 = arith.constant 1 : i32
    %22 = arith.cmpi slt, %arg1, %c1_i32_32 : i32
    %c0_33 = arith.constant 0 : index
    %c0_34 = arith.constant 0 : index
    %c0_35 = arith.constant 0 : index
    %c0_36 = arith.constant 0 : index
    %23 = vector.load %arg7[%c0_33, %c0_34, %c0_35, %c0_36] : memref<1x1x16x128xbf16, #tpu.memory_space<vmem>>, vector<1x1x16x128xbf16>
    %24 = vector.shape_cast %23 : vector<1x1x16x128xbf16> to vector<1x16x128xbf16>
    %25 = arith.select %22, %24, %0 : vector<1x16x128xbf16>
    %c9_37 = arith.constant 9 : index
    %c0_38 = arith.constant 0 : index
    %c128_39 = arith.constant 128 : index
    %26 = vector.load %arg12[%c9_37, %c0_38, %c128_39] : memref<10x16x256xbf16, #tpu.memory_space<vmem>>, vector<1x16x128xbf16>
    tpu.vector_store %arg12[%c9_37, %c0_38, %c128_39], %25 {strides = array<i32>} : memref<10x16x256xbf16, #tpu.memory_space<vmem>>, vector<1x16x128xbf16>,
    %cst_40 = arith.constant 0.000000e+00 : bf16
    %27 = vector.broadcast %cst_40 : bf16 to vector<8x1x256xbf16>
    %c0_41 = arith.constant 0 : index
    %c0_42 = arith.constant 0 : index
    %c0_43 = arith.constant 0 : index
    %28 = vector.load %arg12[%c0_41, %c0_42, %c0_43] : memref<10x16x256xbf16, #tpu.memory_space<vmem>>, vector<8x16x256xbf16>
    %29 = vector.extract_strided_slice %28 {offsets = [0, 0, 0], sizes = [8, 15, 256], strides = [1, 1, 1]} : vector<8x16x256xbf16> to vector<8x15x256xbf16>
    %30 = tpu.concatenate %27, %29 in 1 : vector<8x1x256xbf16>, vector<8x15x256xbf16> -> vector<8x16x256xbf16>
    %31 = vector.extract_strided_slice %28 {offsets = [0, 1, 0], sizes = [8, 15, 256], strides = [1, 1, 1]} : vector<8x16x256xbf16> to vector<8x15x256xbf16>
    %32 = tpu.concatenate %31, %27 in 1 : vector<8x15x256xbf16>, vector<8x1x256xbf16> -> vector<8x16x256xbf16>
    %33 = vector.shape_cast %30 : vector<8x16x256xbf16> to vector<128x256xbf16>
    %c0_44 = arith.constant 0 : index
    %c0_45 = arith.constant 0 : index
    %c0_46 = arith.constant 0 : index
    %34 = vector.load %arg8[%c0_44, %c0_45, %c0_46] : memref<9x256x128xbf16, #tpu.memory_space<vmem>>, vector<1x256x128xbf16>
    %35 = vector.shape_cast %34 : vector<1x256x128xbf16> to vector<256x128xbf16>
    %cst_47 = arith.constant dense<0.000000e+00> : vector<128x128xf32>
    %36 = tpu.matmul %33, %35, %cst_47 {dimension_numbers = #tpu.dot_dimension_numbers<[1], [0], [0], [1], [0, 0, 1, 1], [], []>} : vector<128x256xbf16>, vector<256x128xbf16>, vector<128x128xf32> -> vector<128x128xf32>
    %37 = vector.shape_cast %28 : vector<8x16x256xbf16> to vector<128x256xbf16>
    %c1_48 = arith.constant 1 : index
    %c0_49 = arith.constant 0 : index
    %c0_50 = arith.constant 0 : index
    %38 = vector.load %arg8[%c1_48, %c0_49, %c0_50] : memref<9x256x128xbf16, #tpu.memory_space<vmem>>, vector<1x256x128xbf16>
    %39 = vector.shape_cast %38 : vector<1x256x128xbf16> to vector<256x128xbf16>
    %cst_51 = arith.constant dense<0.000000e+00> : vector<128x128xf32>
    %40 = tpu.matmul %37, %39, %cst_51 {dimension_numbers = #tpu.dot_dimension_numbers<[1], [0], [0], [1], [0, 0, 1, 1], [], []>} : vector<128x256xbf16>, vector<256x128xbf16>, vector<128x128xf32> -> vector<128x128xf32>
    %41 = arith.addf %36, %40 : vector<128x128xf32>
    %42 = vector.shape_cast %32 : vector<8x16x256xbf16> to vector<128x256xbf16>
    %c2 = arith.constant 2 : index
    %c0_52 = arith.constant 0 : index
    %c0_53 = arith.constant 0 : index
    %43 = vector.load %arg8[%c2, %c0_52, %c0_53] : memref<9x256x128xbf16, #tpu.memory_space<vmem>>, vector<1x256x128xbf16>
    %44 = vector.shape_cast %43 : vector<1x256x128xbf16> to vector<256x128xbf16>
    %cst_54 = arith.constant dense<0.000000e+00> : vector<128x128xf32>
    %45 = tpu.matmul %42, %44, %cst_54 {dimension_numbers = #tpu.dot_dimension_numbers<[1], [0], [0], [1], [0, 0, 1, 1], [], []>} : vector<128x256xbf16>, vector<256x128xbf16>, vector<128x128xf32> -> vector<128x128xf32>
    %46 = arith.addf %41, %45 : vector<128x128xf32>
    %c1_55 = arith.constant 1 : index
    %c0_56 = arith.constant 0 : index
    %c0_57 = arith.constant 0 : index
    %47 = vector.load %arg12[%c1_55, %c0_56, %c0_57] : memref<10x16x256xbf16, #tpu.memory_space<vmem>>, vector<8x16x256xbf16>
    %48 = vector.extract_strided_slice %47 {offsets = [0, 0, 0], sizes = [8, 15, 256], strides = [1, 1, 1]} : vector<8x16x256xbf16> to vector<8x15x256xbf16>
    %49 = tpu.concatenate %27, %48 in 1 : vector<8x1x256xbf16>, vector<8x15x256xbf16> -> vector<8x16x256xbf16>
    %50 = vector.extract_strided_slice %47 {offsets = [0, 1, 0], sizes = [8, 15, 256], strides = [1, 1, 1]} : vector<8x16x256xbf16> to vector<8x15x256xbf16>
    %51 = tpu.concatenate %50, %27 in 1 : vector<8x15x256xbf16>, vector<8x1x256xbf16> -> vector<8x16x256xbf16>
    %52 = vector.shape_cast %49 : vector<8x16x256xbf16> to vector<128x256xbf16>
    %c3 = arith.constant 3 : index
    %c0_58 = arith.constant 0 : index
    %c0_59 = arith.constant 0 : index
    %53 = vector.load %arg8[%c3, %c0_58, %c0_59] : memref<9x256x128xbf16, #tpu.memory_space<vmem>>, vector<1x256x128xbf16>
    %54 = vector.shape_cast %53 : vector<1x256x128xbf16> to vector<256x128xbf16>
    %cst_60 = arith.constant dense<0.000000e+00> : vector<128x128xf32>
    %55 = tpu.matmul %52, %54, %cst_60 {dimension_numbers = #tpu.dot_dimension_numbers<[1], [0], [0], [1], [0, 0, 1, 1], [], []>} : vector<128x256xbf16>, vector<256x128xbf16>, vector<128x128xf32> -> vector<128x128xf32>
    %56 = arith.addf %46, %55 : vector<128x128xf32>
    %57 = vector.shape_cast %47 : vector<8x16x256xbf16> to vector<128x256xbf16>
    %c4 = arith.constant 4 : index
    %c0_61 = arith.constant 0 : index
    %c0_62 = arith.constant 0 : index
    %58 = vector.load %arg8[%c4, %c0_61, %c0_62] : memref<9x256x128xbf16, #tpu.memory_space<vmem>>, vector<1x256x128xbf16>
    %59 = vector.shape_cast %58 : vector<1x256x128xbf16> to vector<256x128xbf16>
    %cst_63 = arith.constant dense<0.000000e+00> : vector<128x128xf32>
    %60 = tpu.matmul %57, %59, %cst_63 {dimension_numbers = #tpu.dot_dimension_numbers<[1], [0], [0], [1], [0, 0, 1, 1], [], []>} : vector<128x256xbf16>, vector<256x128xbf16>, vector<128x128xf32> -> vector<128x128xf32>
    %61 = arith.addf %56, %60 : vector<128x128xf32>
    %62 = vector.shape_cast %51 : vector<8x16x256xbf16> to vector<128x256xbf16>
    %c5 = arith.constant 5 : index
    %c0_64 = arith.constant 0 : index
    %c0_65 = arith.constant 0 : index
    %63 = vector.load %arg8[%c5, %c0_64, %c0_65] : memref<9x256x128xbf16, #tpu.memory_space<vmem>>, vector<1x256x128xbf16>
    %64 = vector.shape_cast %63 : vector<1x256x128xbf16> to vector<256x128xbf16>
    %cst_66 = arith.constant dense<0.000000e+00> : vector<128x128xf32>
    %65 = tpu.matmul %62, %64, %cst_66 {dimension_numbers = #tpu.dot_dimension_numbers<[1], [0], [0], [1], [0, 0, 1, 1], [], []>} : vector<128x256xbf16>, vector<256x128xbf16>, vector<128x128xf32> -> vector<128x128xf32>
    %66 = arith.addf %61, %65 : vector<128x128xf32>
    %c2_67 = arith.constant 2 : index
    %c0_68 = arith.constant 0 : index
    %c0_69 = arith.constant 0 : index
    %67 = vector.load %arg12[%c2_67, %c0_68, %c0_69] : memref<10x16x256xbf16, #tpu.memory_space<vmem>>, vector<8x16x256xbf16>
    %68 = vector.extract_strided_slice %67 {offsets = [0, 0, 0], sizes = [8, 15, 256], strides = [1, 1, 1]} : vector<8x16x256xbf16> to vector<8x15x256xbf16>
    %69 = tpu.concatenate %27, %68 in 1 : vector<8x1x256xbf16>, vector<8x15x256xbf16> -> vector<8x16x256xbf16>
    %70 = vector.extract_strided_slice %67 {offsets = [0, 1, 0], sizes = [8, 15, 256], strides = [1, 1, 1]} : vector<8x16x256xbf16> to vector<8x15x256xbf16>
    %71 = tpu.concatenate %70, %27 in 1 : vector<8x15x256xbf16>, vector<8x1x256xbf16> -> vector<8x16x256xbf16>
    %72 = vector.shape_cast %69 : vector<8x16x256xbf16> to vector<128x256xbf16>
    %c6 = arith.constant 6 : index
    %c0_70 = arith.constant 0 : index
    %c0_71 = arith.constant 0 : index
    %73 = vector.load %arg8[%c6, %c0_70, %c0_71] : memref<9x256x128xbf16, #tpu.memory_space<vmem>>, vector<1x256x128xbf16>
    %74 = vector.shape_cast %73 : vector<1x256x128xbf16> to vector<256x128xbf16>
    %cst_72 = arith.constant dense<0.000000e+00> : vector<128x128xf32>
    %75 = tpu.matmul %72, %74, %cst_72 {dimension_numbers = #tpu.dot_dimension_numbers<[1], [0], [0], [1], [0, 0, 1, 1], [], []>} : vector<128x256xbf16>, vector<256x128xbf16>, vector<128x128xf32> -> vector<128x128xf32>
    %76 = arith.addf %66, %75 : vector<128x128xf32>
    %77 = vector.shape_cast %67 : vector<8x16x256xbf16> to vector<128x256xbf16>
    %c7 = arith.constant 7 : index
    %c0_73 = arith.constant 0 : index
    %c0_74 = arith.constant 0 : index
    %78 = vector.load %arg8[%c7, %c0_73, %c0_74] : memref<9x256x128xbf16, #tpu.memory_space<vmem>>, vector<1x256x128xbf16>
    %79 = vector.shape_cast %78 : vector<1x256x128xbf16> to vector<256x128xbf16>
    %cst_75 = arith.constant dense<0.000000e+00> : vector<128x128xf32>
    %80 = tpu.matmul %77, %79, %cst_75 {dimension_numbers = #tpu.dot_dimension_numbers<[1], [0], [0], [1], [0, 0, 1, 1], [], []>} : vector<128x256xbf16>, vector<256x128xbf16>, vector<128x128xf32> -> vector<128x128xf32>
    %81 = arith.addf %76, %80 : vector<128x128xf32>
    %82 = vector.shape_cast %71 : vector<8x16x256xbf16> to vector<128x256xbf16>
    %c8 = arith.constant 8 : index
    %c0_76 = arith.constant 0 : index
    %c0_77 = arith.constant 0 : index
    %83 = vector.load %arg8[%c8, %c0_76, %c0_77] : memref<9x256x128xbf16, #tpu.memory_space<vmem>>, vector<1x256x128xbf16>
    %84 = vector.shape_cast %83 : vector<1x256x128xbf16> to vector<256x128xbf16>
    %cst_78 = arith.constant dense<0.000000e+00> : vector<128x128xf32>
    %85 = tpu.matmul %82, %84, %cst_78 {dimension_numbers = #tpu.dot_dimension_numbers<[1], [0], [0], [1], [0, 0, 1, 1], [], []>} : vector<128x256xbf16>, vector<256x128xbf16>, vector<128x128xf32> -> vector<128x128xf32>
    %86 = arith.addf %81, %85 : vector<128x128xf32>
    %c0_i32_79 = arith.constant 0 : i32
    %87 = arith.cmpi eq, %arg1, %c0_i32_79 : i32
    %88 = arith.extui %87 : i1 to i32
    %c0_i32_80 = arith.constant 0 : i32
    %89 = arith.cmpi ne, %88, %c0_i32_80 : i32
    scf.if %89 {
      %cst_99 = arith.constant 0.000000e+00 : f32
      %112 = vector.broadcast %cst_99 : f32 to vector<1x128xf32>
      %c0_100 = arith.constant 0 : index
      %c0_101 = arith.constant 0 : index
      %c0_102 = arith.constant 0 : index
      %113 = vector.load %arg10[%c0_100, %c0_101, %c0_102] : memref<1x1x128xf32, #tpu.memory_space<vmem>>, vector<1x1x128xf32>
      %114 = vector.shape_cast %113 : vector<1x1x128xf32> to vector<1x128xf32>
      %115 = vector.shape_cast %112 : vector<1x128xf32> to vector<1x1x128xf32>
      tpu.vector_store %arg10[%c0_100, %c0_101, %c0_102], %115 {strides = array<i32>} : memref<1x1x128xf32, #tpu.memory_space<vmem>>, vector<1x1x128xf32>,
      %cst_103 = arith.constant 0.000000e+00 : f32
      %116 = vector.broadcast %cst_103 : f32 to vector<1x128xf32>
      %c0_104 = arith.constant 0 : index
      %c0_105 = arith.constant 0 : index
      %c0_106 = arith.constant 0 : index
      %117 = vector.load %arg11[%c0_104, %c0_105, %c0_106] : memref<1x1x128xf32, #tpu.memory_space<vmem>>, vector<1x1x128xf32>
      %118 = vector.shape_cast %117 : vector<1x1x128xf32> to vector<1x128xf32>
      %119 = vector.shape_cast %116 : vector<1x128xf32> to vector<1x1x128xf32>
      tpu.vector_store %arg11[%c0_104, %c0_105, %c0_106], %119 {strides = array<i32>} : memref<1x1x128xf32, #tpu.memory_space<vmem>>, vector<1x1x128xf32>,
    } else {
    }
    %c0_81 = arith.constant 0 : index
    %c0_82 = arith.constant 0 : index
    %c0_83 = arith.constant 0 : index
    %90 = vector.load %arg10[%c0_81, %c0_82, %c0_83] : memref<1x1x128xf32, #tpu.memory_space<vmem>>, vector<1x1x128xf32>
    %91 = vector.shape_cast %90 : vector<1x1x128xf32> to vector<1x128xf32>
    %cst_84 = arith.constant dense<0.000000e+00> : vector<128xf32>
    %92 = vector.multi_reduction <add>, %86, %cst_84 [0] : vector<128x128xf32> to vector<128xf32>
    %93 = vector.shape_cast %92 : vector<128xf32> to vector<1x128xf32>
    %94 = arith.addf %91, %93 : vector<1x128xf32>
    %c0_85 = arith.constant 0 : index
    %c0_86 = arith.constant 0 : index
    %c0_87 = arith.constant 0 : index
    %95 = vector.load %arg10[%c0_85, %c0_86, %c0_87] : memref<1x1x128xf32, #tpu.memory_space<vmem>>, vector<1x1x128xf32>
    %96 = vector.shape_cast %95 : vector<1x1x128xf32> to vector<1x128xf32>
    %97 = vector.shape_cast %94 : vector<1x128xf32> to vector<1x1x128xf32>
    tpu.vector_store %arg10[%c0_85, %c0_86, %c0_87], %97 {strides = array<i32>} : memref<1x1x128xf32, #tpu.memory_space<vmem>>, vector<1x1x128xf32>,
    %c0_88 = arith.constant 0 : index
    %c0_89 = arith.constant 0 : index
    %c0_90 = arith.constant 0 : index
    %98 = vector.load %arg11[%c0_88, %c0_89, %c0_90] : memref<1x1x128xf32, #tpu.memory_space<vmem>>, vector<1x1x128xf32>
    %99 = vector.shape_cast %98 : vector<1x1x128xf32> to vector<1x128xf32>
    %100 = arith.mulf %86, %86 : vector<128x128xf32>
    %cst_91 = arith.constant dense<0.000000e+00> : vector<128xf32>
    %101 = vector.multi_reduction <add>, %100, %cst_91 [0] : vector<128x128xf32> to vector<128xf32>
    %102 = vector.shape_cast %101 : vector<128xf32> to vector<1x128xf32>
    %103 = arith.addf %99, %102 : vector<1x128xf32>
    %c0_92 = arith.constant 0 : index
    %c0_93 = arith.constant 0 : index
    %c0_94 = arith.constant 0 : index
    %104 = vector.load %arg11[%c0_92, %c0_93, %c0_94] : memref<1x1x128xf32, #tpu.memory_space<vmem>>, vector<1x1x128xf32>
    %105 = vector.shape_cast %104 : vector<1x1x128xf32> to vector<1x128xf32>
    %106 = vector.shape_cast %103 : vector<1x128xf32> to vector<1x1x128xf32>
    tpu.vector_store %arg11[%c0_92, %c0_93, %c0_94], %106 {strides = array<i32>} : memref<1x1x128xf32, #tpu.memory_space<vmem>>, vector<1x1x128xf32>,
    %107 = vector.shape_cast %86 : vector<128x128xf32> to vector<8x16x128xf32>
    %108 = arith.truncf %107 : vector<8x16x128xf32> to vector<8x16x128xbf16>
    %c0_95 = arith.constant 0 : index
    %c0_96 = arith.constant 0 : index
    %c0_97 = arith.constant 0 : index
    %c0_98 = arith.constant 0 : index
    %109 = vector.load %arg9[%c0_95, %c0_96, %c0_97, %c0_98] : memref<1x8x16x128xbf16, #tpu.memory_space<vmem>>, vector<1x8x16x128xbf16>
    %110 = vector.shape_cast %109 : vector<1x8x16x128xbf16> to vector<8x16x128xbf16>
    %111 = vector.shape_cast %108 : vector<8x16x128xbf16> to vector<1x8x16x128xbf16>
    tpu.vector_store %arg9[%c0_95, %c0_96, %c0_97, %c0_98], %111 {strides = array<i32>} : memref<1x8x16x128xbf16, #tpu.memory_space<vmem>>, vector<1x8x16x128xbf16>,
    return
  }
  func.func @transform_0(%arg0: i32, %arg1: i32) -> (i32, i32, i32, i32) {
    %c8_i32 = arith.constant 8 : i32
    %0 = arith.muli %arg1, %c8_i32 : i32
    %c1_i32 = arith.constant 1 : i32
    %1 = arith.subi %0, %c1_i32 : i32
    %c0_i32 = arith.constant 0 : i32
    %2 = arith.maxsi %1, %c0_i32 : i32
    %c0_i32_0 = arith.constant 0 : i32
    %c0_i32_1 = arith.constant 0 : i32
    %c0_i32_2 = arith.constant 0 : i32
    return %arg0, %2, %c0_i32_0, %c0_i32_1 : i32, i32, i32, i32
  }
  func.func @transform_1(%arg0: i32, %arg1: i32) -> (i32, i32, i32, i32) {
    %c0_i32 = arith.constant 0 : i32
    %c0_i32_0 = arith.constant 0 : i32
    %c0_i32_1 = arith.constant 0 : i32
    return %arg0, %arg1, %c0_i32, %c0_i32_0 : i32, i32, i32, i32
  }
  func.func @transform_2(%arg0: i32, %arg1: i32) -> (i32, i32, i32, i32) {
    %c8_i32 = arith.constant 8 : i32
    %0 = arith.muli %arg1, %c8_i32 : i32
    %c8_i32_0 = arith.constant 8 : i32
    %1 = arith.addi %0, %c8_i32_0 : i32
    %c15_i32 = arith.constant 15 : i32
    %2 = arith.minsi %1, %c15_i32 : i32
    %c0_i32 = arith.constant 0 : i32
    %c0_i32_1 = arith.constant 0 : i32
    %c0_i32_2 = arith.constant 0 : i32
    return %arg0, %2, %c0_i32, %c0_i32_1 : i32, i32, i32, i32
  }
  func.func @transform_3(%arg0: i32, %arg1: i32) -> (i32, i32, i32, i32) {
    %c8_i32 = arith.constant 8 : i32
    %0 = arith.muli %arg1, %c8_i32 : i32
    %c1_i32 = arith.constant 1 : i32
    %1 = arith.subi %0, %c1_i32 : i32
    %c0_i32 = arith.constant 0 : i32
    %2 = arith.maxsi %1, %c0_i32 : i32
    %c0_i32_0 = arith.constant 0 : i32
    %c0_i32_1 = arith.constant 0 : i32
    %c0_i32_2 = arith.constant 0 : i32
    return %arg0, %2, %c0_i32_0, %c0_i32_1 : i32, i32, i32, i32
  }
  func.func @transform_4(%arg0: i32, %arg1: i32) -> (i32, i32, i32, i32) {
    %c0_i32 = arith.constant 0 : i32
    %c0_i32_0 = arith.constant 0 : i32
    %c0_i32_1 = arith.constant 0 : i32
    return %arg0, %arg1, %c0_i32, %c0_i32_0 : i32, i32, i32, i32
  }
  func.func @transform_5(%arg0: i32, %arg1: i32) -> (i32, i32, i32, i32) {
    %c8_i32 = arith.constant 8 : i32
    %0 = arith.muli %arg1, %c8_i32 : i32
    %c8_i32_0 = arith.constant 8 : i32
    %1 = arith.addi %0, %c8_i32_0 : i32
    %c15_i32 = arith.constant 15 : i32
    %2 = arith.minsi %1, %c15_i32 : i32
    %c0_i32 = arith.constant 0 : i32
    %c0_i32_1 = arith.constant 0 : i32
    %c0_i32_2 = arith.constant 0 : i32
    return %arg0, %2, %c0_i32, %c0_i32_1 : i32, i32, i32, i32
  }
  func.func @transform_6(%arg0: i32, %arg1: i32) -> (i32, i32, i32) {
    %c0_i32 = arith.constant 0 : i32
    %c0_i32_0 = arith.constant 0 : i32
    %c0_i32_1 = arith.constant 0 : i32
    %c0_i32_2 = arith.constant 0 : i32
    return %c0_i32, %c0_i32_0, %c0_i32_1 : i32, i32, i32
  }
  func.func @transform_7(%arg0: i32, %arg1: i32) -> (i32, i32, i32, i32) {
    %c0_i32 = arith.constant 0 : i32
    %c0_i32_0 = arith.constant 0 : i32
    %c0_i32_1 = arith.constant 0 : i32
    return %arg0, %arg1, %c0_i32, %c0_i32_0 : i32, i32, i32, i32
  }
  func.func @transform_8(%arg0: i32, %arg1: i32) -> (i32, i32, i32) {
    %c0_i32 = arith.constant 0 : i32
    %c0_i32_0 = arith.constant 0 : i32
    %c0_i32_1 = arith.constant 0 : i32
    return %arg0, %c0_i32, %c0_i32_0 : i32, i32, i32
  }
  func.func @transform_9(%arg0: i32, %arg1: i32) -> (i32, i32, i32) {
    %c0_i32 = arith.constant 0 : i32
    %c0_i32_0 = arith.constant 0 : i32
    %c0_i32_1 = arith.constant 0 : i32
    return %arg0, %c0_i32, %c0_i32_0 : i32, i32, i32
  }
}

module attributes {stable_mosaic.version = 11 : i64} {
  func.func @kernel(%arg0: i32, %arg1: i32, %arg2: memref<1x1x16x128xbf16, #tpu.memory_space<vmem>>, %arg3: memref<1x8x16x128xbf16, #tpu.memory_space<vmem>>, %arg4: memref<1x1x16x128xbf16, #tpu.memory_space<vmem>>, %arg5: memref<1x128xf32, #tpu.memory_space<vmem>>, %arg6: memref<1x128xf32, #tpu.memory_space<vmem>>, %arg7: memref<9x128x128xbf16, #tpu.memory_space<vmem>>, %arg8: memref<1x8x16x128xbf16, #tpu.memory_space<vmem>>, %arg9: memref<1x1x128xf32, #tpu.memory_space<vmem>>, %arg10: memref<1x1x128xf32, #tpu.memory_space<vmem>>, %arg11: memref<10x16x128xbf16, #tpu.memory_space<vmem>>) attributes {dimension_semantics = [#tpu.dimension_semantics<parallel>, #tpu.dimension_semantics<arbitrary>], iteration_bounds = array<i64: 2, 2>, scalar_prefetch = 0 : i64, scratch_operands = 1 : i64, tpu.core_type = #tpu.core_type<tc>, window_params = [{transform_indices = @transform_0, window_bounds = array<i64: 1, 1, 16, 128>}, {transform_indices = @transform_1, window_bounds = array<i64: 1, 8, 16, 128>}, {transform_indices = @transform_2, window_bounds = array<i64: 1, 1, 16, 128>}, {pipeline_mode = #tpu.pipeline_mode<synchronous>, transform_indices = @transform_3, window_bounds = array<i64: 1, 128>}, {pipeline_mode = #tpu.pipeline_mode<synchronous>, transform_indices = @transform_4, window_bounds = array<i64: 1, 128>}, {pipeline_mode = #tpu.pipeline_mode<synchronous>, transform_indices = @transform_5, window_bounds = array<i64: 9, 128, 128>}, {transform_indices = @transform_6, window_bounds = array<i64: 1, 8, 16, 128>}, {transform_indices = @transform_7, window_bounds = array<i64: 1, 1, 128>}, {transform_indices = @transform_8, window_bounds = array<i64: 1, 1, 128>}]} {
    %c0 = arith.constant 0 : index
    %c0_0 = arith.constant 0 : index
    %0 = vector.load %arg5[%c0, %c0_0] : memref<1x128xf32, #tpu.memory_space<vmem>>, vector<1x128xf32>
    %1 = vector.shape_cast %0 : vector<1x128xf32> to vector<1x1x128xf32>
    %c0_1 = arith.constant 0 : index
    %c0_2 = arith.constant 0 : index
    %2 = vector.load %arg6[%c0_1, %c0_2] : memref<1x128xf32, #tpu.memory_space<vmem>>, vector<1x128xf32>
    %3 = vector.shape_cast %2 : vector<1x128xf32> to vector<1x1x128xf32>
    %cst = arith.constant 0.000000e+00 : bf16
    %4 = vector.broadcast %cst : bf16 to vector<1x16x128xbf16>
    %c0_i32 = arith.constant 0 : i32
    %5 = arith.cmpi sgt, %arg1, %c0_i32 : i32
    %c0_3 = arith.constant 0 : index
    %c0_4 = arith.constant 0 : index
    %c0_5 = arith.constant 0 : index
    %c0_6 = arith.constant 0 : index
    %6 = vector.load %arg2[%c0_3, %c0_4, %c0_5, %c0_6] : memref<1x1x16x128xbf16, #tpu.memory_space<vmem>>, vector<1x1x16x128xbf16>
    %7 = vector.shape_cast %6 : vector<1x1x16x128xbf16> to vector<1x16x128xbf16>
    %8 = arith.extf %7 : vector<1x16x128xbf16> to vector<1x16x128xf32>
    %9 = vector.broadcast %1 : vector<1x1x128xf32> to vector<1x16x128xf32>
    %10 = arith.mulf %8, %9 : vector<1x16x128xf32>
    %11 = vector.broadcast %3 : vector<1x1x128xf32> to vector<1x16x128xf32>
    %12 = arith.addf %10, %11 : vector<1x16x128xf32>
    %cst_7 = arith.constant 0.000000e+00 : f32
    %13 = vector.broadcast %cst_7 : f32 to vector<1x16x128xf32>
    %14 = arith.maximumf %12, %13 : vector<1x16x128xf32>
    %15 = arith.truncf %14 : vector<1x16x128xf32> to vector<1x16x128xbf16>
    %16 = arith.select %5, %15, %4 : vector<1x16x128xbf16>
    %c0_8 = arith.constant 0 : index
    %c0_9 = arith.constant 0 : index
    %c0_10 = arith.constant 0 : index
    %17 = vector.load %arg11[%c0_8, %c0_9, %c0_10] : memref<10x16x128xbf16, #tpu.memory_space<vmem>>, vector<1x16x128xbf16>
    tpu.vector_store %arg11[%c0_8, %c0_9, %c0_10], %16 {strides = array<i32>} : memref<10x16x128xbf16, #tpu.memory_space<vmem>>, vector<1x16x128xbf16>,
    %c0_11 = arith.constant 0 : index
    %c0_12 = arith.constant 0 : index
    %c0_13 = arith.constant 0 : index
    %c0_14 = arith.constant 0 : index
    %18 = vector.load %arg3[%c0_11, %c0_12, %c0_13, %c0_14] : memref<1x8x16x128xbf16, #tpu.memory_space<vmem>>, vector<1x8x16x128xbf16>
    %19 = vector.shape_cast %18 : vector<1x8x16x128xbf16> to vector<8x16x128xbf16>
    %20 = arith.extf %19 : vector<8x16x128xbf16> to vector<8x16x128xf32>
    %21 = vector.broadcast %1 : vector<1x1x128xf32> to vector<8x16x128xf32>
    %22 = arith.mulf %20, %21 : vector<8x16x128xf32>
    %23 = vector.broadcast %3 : vector<1x1x128xf32> to vector<8x16x128xf32>
    %24 = arith.addf %22, %23 : vector<8x16x128xf32>
    %cst_15 = arith.constant 0.000000e+00 : f32
    %25 = vector.broadcast %cst_15 : f32 to vector<8x16x128xf32>
    %26 = arith.maximumf %24, %25 : vector<8x16x128xf32>
    %27 = arith.truncf %26 : vector<8x16x128xf32> to vector<8x16x128xbf16>
    %c1 = arith.constant 1 : index
    %c0_16 = arith.constant 0 : index
    %c0_17 = arith.constant 0 : index
    %28 = vector.load %arg11[%c1, %c0_16, %c0_17] : memref<10x16x128xbf16, #tpu.memory_space<vmem>>, vector<8x16x128xbf16>
    tpu.vector_store %arg11[%c1, %c0_16, %c0_17], %27 {strides = array<i32>} : memref<10x16x128xbf16, #tpu.memory_space<vmem>>, vector<8x16x128xbf16>,
    %c1_i32 = arith.constant 1 : i32
    %29 = arith.cmpi slt, %arg1, %c1_i32 : i32
    %c0_18 = arith.constant 0 : index
    %c0_19 = arith.constant 0 : index
    %c0_20 = arith.constant 0 : index
    %c0_21 = arith.constant 0 : index
    %30 = vector.load %arg4[%c0_18, %c0_19, %c0_20, %c0_21] : memref<1x1x16x128xbf16, #tpu.memory_space<vmem>>, vector<1x1x16x128xbf16>
    %31 = vector.shape_cast %30 : vector<1x1x16x128xbf16> to vector<1x16x128xbf16>
    %32 = arith.extf %31 : vector<1x16x128xbf16> to vector<1x16x128xf32>
    %33 = vector.broadcast %1 : vector<1x1x128xf32> to vector<1x16x128xf32>
    %34 = arith.mulf %32, %33 : vector<1x16x128xf32>
    %35 = vector.broadcast %3 : vector<1x1x128xf32> to vector<1x16x128xf32>
    %36 = arith.addf %34, %35 : vector<1x16x128xf32>
    %cst_22 = arith.constant 0.000000e+00 : f32
    %37 = vector.broadcast %cst_22 : f32 to vector<1x16x128xf32>
    %38 = arith.maximumf %36, %37 : vector<1x16x128xf32>
    %39 = arith.truncf %38 : vector<1x16x128xf32> to vector<1x16x128xbf16>
    %40 = arith.select %29, %39, %4 : vector<1x16x128xbf16>
    %c9 = arith.constant 9 : index
    %c0_23 = arith.constant 0 : index
    %c0_24 = arith.constant 0 : index
    %41 = vector.load %arg11[%c9, %c0_23, %c0_24] : memref<10x16x128xbf16, #tpu.memory_space<vmem>>, vector<1x16x128xbf16>
    tpu.vector_store %arg11[%c9, %c0_23, %c0_24], %40 {strides = array<i32>} : memref<10x16x128xbf16, #tpu.memory_space<vmem>>, vector<1x16x128xbf16>,
    %cst_25 = arith.constant 0.000000e+00 : bf16
    %42 = vector.broadcast %cst_25 : bf16 to vector<8x1x128xbf16>
    %c0_26 = arith.constant 0 : index
    %c0_27 = arith.constant 0 : index
    %c0_28 = arith.constant 0 : index
    %43 = vector.load %arg11[%c0_26, %c0_27, %c0_28] : memref<10x16x128xbf16, #tpu.memory_space<vmem>>, vector<8x16x128xbf16>
    %44 = vector.extract_strided_slice %43 {offsets = [0, 0, 0], sizes = [8, 15, 128], strides = [1, 1, 1]} : vector<8x16x128xbf16> to vector<8x15x128xbf16>
    %45 = tpu.concatenate %42, %44 in 1 : vector<8x1x128xbf16>, vector<8x15x128xbf16> -> vector<8x16x128xbf16>
    %46 = vector.extract_strided_slice %43 {offsets = [0, 1, 0], sizes = [8, 15, 128], strides = [1, 1, 1]} : vector<8x16x128xbf16> to vector<8x15x128xbf16>
    %47 = tpu.concatenate %46, %42 in 1 : vector<8x15x128xbf16>, vector<8x1x128xbf16> -> vector<8x16x128xbf16>
    %48 = vector.shape_cast %45 : vector<8x16x128xbf16> to vector<128x128xbf16>
    %c0_29 = arith.constant 0 : index
    %c0_30 = arith.constant 0 : index
    %c0_31 = arith.constant 0 : index
    %49 = vector.load %arg7[%c0_29, %c0_30, %c0_31] : memref<9x128x128xbf16, #tpu.memory_space<vmem>>, vector<1x128x128xbf16>
    %50 = vector.shape_cast %49 : vector<1x128x128xbf16> to vector<128x128xbf16>
    %cst_32 = arith.constant dense<0.000000e+00> : vector<128x128xf32>
    %51 = tpu.matmul %48, %50, %cst_32 {dimension_numbers = #tpu.dot_dimension_numbers<[1], [0], [0], [1], [0, 0, 1, 1], [], []>} : vector<128x128xbf16>, vector<128x128xbf16>, vector<128x128xf32> -> vector<128x128xf32>
    %52 = vector.shape_cast %43 : vector<8x16x128xbf16> to vector<128x128xbf16>
    %c1_33 = arith.constant 1 : index
    %c0_34 = arith.constant 0 : index
    %c0_35 = arith.constant 0 : index
    %53 = vector.load %arg7[%c1_33, %c0_34, %c0_35] : memref<9x128x128xbf16, #tpu.memory_space<vmem>>, vector<1x128x128xbf16>
    %54 = vector.shape_cast %53 : vector<1x128x128xbf16> to vector<128x128xbf16>
    %cst_36 = arith.constant dense<0.000000e+00> : vector<128x128xf32>
    %55 = tpu.matmul %52, %54, %cst_36 {dimension_numbers = #tpu.dot_dimension_numbers<[1], [0], [0], [1], [0, 0, 1, 1], [], []>} : vector<128x128xbf16>, vector<128x128xbf16>, vector<128x128xf32> -> vector<128x128xf32>
    %56 = arith.addf %51, %55 : vector<128x128xf32>
    %57 = vector.shape_cast %47 : vector<8x16x128xbf16> to vector<128x128xbf16>
    %c2 = arith.constant 2 : index
    %c0_37 = arith.constant 0 : index
    %c0_38 = arith.constant 0 : index
    %58 = vector.load %arg7[%c2, %c0_37, %c0_38] : memref<9x128x128xbf16, #tpu.memory_space<vmem>>, vector<1x128x128xbf16>
    %59 = vector.shape_cast %58 : vector<1x128x128xbf16> to vector<128x128xbf16>
    %cst_39 = arith.constant dense<0.000000e+00> : vector<128x128xf32>
    %60 = tpu.matmul %57, %59, %cst_39 {dimension_numbers = #tpu.dot_dimension_numbers<[1], [0], [0], [1], [0, 0, 1, 1], [], []>} : vector<128x128xbf16>, vector<128x128xbf16>, vector<128x128xf32> -> vector<128x128xf32>
    %61 = arith.addf %56, %60 : vector<128x128xf32>
    %c1_40 = arith.constant 1 : index
    %c0_41 = arith.constant 0 : index
    %c0_42 = arith.constant 0 : index
    %62 = vector.load %arg11[%c1_40, %c0_41, %c0_42] : memref<10x16x128xbf16, #tpu.memory_space<vmem>>, vector<8x16x128xbf16>
    %63 = vector.extract_strided_slice %62 {offsets = [0, 0, 0], sizes = [8, 15, 128], strides = [1, 1, 1]} : vector<8x16x128xbf16> to vector<8x15x128xbf16>
    %64 = tpu.concatenate %42, %63 in 1 : vector<8x1x128xbf16>, vector<8x15x128xbf16> -> vector<8x16x128xbf16>
    %65 = vector.extract_strided_slice %62 {offsets = [0, 1, 0], sizes = [8, 15, 128], strides = [1, 1, 1]} : vector<8x16x128xbf16> to vector<8x15x128xbf16>
    %66 = tpu.concatenate %65, %42 in 1 : vector<8x15x128xbf16>, vector<8x1x128xbf16> -> vector<8x16x128xbf16>
    %67 = vector.shape_cast %64 : vector<8x16x128xbf16> to vector<128x128xbf16>
    %c3 = arith.constant 3 : index
    %c0_43 = arith.constant 0 : index
    %c0_44 = arith.constant 0 : index
    %68 = vector.load %arg7[%c3, %c0_43, %c0_44] : memref<9x128x128xbf16, #tpu.memory_space<vmem>>, vector<1x128x128xbf16>
    %69 = vector.shape_cast %68 : vector<1x128x128xbf16> to vector<128x128xbf16>
    %cst_45 = arith.constant dense<0.000000e+00> : vector<128x128xf32>
    %70 = tpu.matmul %67, %69, %cst_45 {dimension_numbers = #tpu.dot_dimension_numbers<[1], [0], [0], [1], [0, 0, 1, 1], [], []>} : vector<128x128xbf16>, vector<128x128xbf16>, vector<128x128xf32> -> vector<128x128xf32>
    %71 = arith.addf %61, %70 : vector<128x128xf32>
    %72 = vector.shape_cast %62 : vector<8x16x128xbf16> to vector<128x128xbf16>
    %c4 = arith.constant 4 : index
    %c0_46 = arith.constant 0 : index
    %c0_47 = arith.constant 0 : index
    %73 = vector.load %arg7[%c4, %c0_46, %c0_47] : memref<9x128x128xbf16, #tpu.memory_space<vmem>>, vector<1x128x128xbf16>
    %74 = vector.shape_cast %73 : vector<1x128x128xbf16> to vector<128x128xbf16>
    %cst_48 = arith.constant dense<0.000000e+00> : vector<128x128xf32>
    %75 = tpu.matmul %72, %74, %cst_48 {dimension_numbers = #tpu.dot_dimension_numbers<[1], [0], [0], [1], [0, 0, 1, 1], [], []>} : vector<128x128xbf16>, vector<128x128xbf16>, vector<128x128xf32> -> vector<128x128xf32>
    %76 = arith.addf %71, %75 : vector<128x128xf32>
    %77 = vector.shape_cast %66 : vector<8x16x128xbf16> to vector<128x128xbf16>
    %c5 = arith.constant 5 : index
    %c0_49 = arith.constant 0 : index
    %c0_50 = arith.constant 0 : index
    %78 = vector.load %arg7[%c5, %c0_49, %c0_50] : memref<9x128x128xbf16, #tpu.memory_space<vmem>>, vector<1x128x128xbf16>
    %79 = vector.shape_cast %78 : vector<1x128x128xbf16> to vector<128x128xbf16>
    %cst_51 = arith.constant dense<0.000000e+00> : vector<128x128xf32>
    %80 = tpu.matmul %77, %79, %cst_51 {dimension_numbers = #tpu.dot_dimension_numbers<[1], [0], [0], [1], [0, 0, 1, 1], [], []>} : vector<128x128xbf16>, vector<128x128xbf16>, vector<128x128xf32> -> vector<128x128xf32>
    %81 = arith.addf %76, %80 : vector<128x128xf32>
    %c2_52 = arith.constant 2 : index
    %c0_53 = arith.constant 0 : index
    %c0_54 = arith.constant 0 : index
    %82 = vector.load %arg11[%c2_52, %c0_53, %c0_54] : memref<10x16x128xbf16, #tpu.memory_space<vmem>>, vector<8x16x128xbf16>
    %83 = vector.extract_strided_slice %82 {offsets = [0, 0, 0], sizes = [8, 15, 128], strides = [1, 1, 1]} : vector<8x16x128xbf16> to vector<8x15x128xbf16>
    %84 = tpu.concatenate %42, %83 in 1 : vector<8x1x128xbf16>, vector<8x15x128xbf16> -> vector<8x16x128xbf16>
    %85 = vector.extract_strided_slice %82 {offsets = [0, 1, 0], sizes = [8, 15, 128], strides = [1, 1, 1]} : vector<8x16x128xbf16> to vector<8x15x128xbf16>
    %86 = tpu.concatenate %85, %42 in 1 : vector<8x15x128xbf16>, vector<8x1x128xbf16> -> vector<8x16x128xbf16>
    %87 = vector.shape_cast %84 : vector<8x16x128xbf16> to vector<128x128xbf16>
    %c6 = arith.constant 6 : index
    %c0_55 = arith.constant 0 : index
    %c0_56 = arith.constant 0 : index
    %88 = vector.load %arg7[%c6, %c0_55, %c0_56] : memref<9x128x128xbf16, #tpu.memory_space<vmem>>, vector<1x128x128xbf16>
    %89 = vector.shape_cast %88 : vector<1x128x128xbf16> to vector<128x128xbf16>
    %cst_57 = arith.constant dense<0.000000e+00> : vector<128x128xf32>
    %90 = tpu.matmul %87, %89, %cst_57 {dimension_numbers = #tpu.dot_dimension_numbers<[1], [0], [0], [1], [0, 0, 1, 1], [], []>} : vector<128x128xbf16>, vector<128x128xbf16>, vector<128x128xf32> -> vector<128x128xf32>
    %91 = arith.addf %81, %90 : vector<128x128xf32>
    %92 = vector.shape_cast %82 : vector<8x16x128xbf16> to vector<128x128xbf16>
    %c7 = arith.constant 7 : index
    %c0_58 = arith.constant 0 : index
    %c0_59 = arith.constant 0 : index
    %93 = vector.load %arg7[%c7, %c0_58, %c0_59] : memref<9x128x128xbf16, #tpu.memory_space<vmem>>, vector<1x128x128xbf16>
    %94 = vector.shape_cast %93 : vector<1x128x128xbf16> to vector<128x128xbf16>
    %cst_60 = arith.constant dense<0.000000e+00> : vector<128x128xf32>
    %95 = tpu.matmul %92, %94, %cst_60 {dimension_numbers = #tpu.dot_dimension_numbers<[1], [0], [0], [1], [0, 0, 1, 1], [], []>} : vector<128x128xbf16>, vector<128x128xbf16>, vector<128x128xf32> -> vector<128x128xf32>
    %96 = arith.addf %91, %95 : vector<128x128xf32>
    %97 = vector.shape_cast %86 : vector<8x16x128xbf16> to vector<128x128xbf16>
    %c8 = arith.constant 8 : index
    %c0_61 = arith.constant 0 : index
    %c0_62 = arith.constant 0 : index
    %98 = vector.load %arg7[%c8, %c0_61, %c0_62] : memref<9x128x128xbf16, #tpu.memory_space<vmem>>, vector<1x128x128xbf16>
    %99 = vector.shape_cast %98 : vector<1x128x128xbf16> to vector<128x128xbf16>
    %cst_63 = arith.constant dense<0.000000e+00> : vector<128x128xf32>
    %100 = tpu.matmul %97, %99, %cst_63 {dimension_numbers = #tpu.dot_dimension_numbers<[1], [0], [0], [1], [0, 0, 1, 1], [], []>} : vector<128x128xbf16>, vector<128x128xbf16>, vector<128x128xf32> -> vector<128x128xf32>
    %101 = arith.addf %96, %100 : vector<128x128xf32>
    %c0_i32_64 = arith.constant 0 : i32
    %102 = arith.cmpi eq, %arg1, %c0_i32_64 : i32
    %103 = arith.extui %102 : i1 to i32
    %c0_i32_65 = arith.constant 0 : i32
    %104 = arith.cmpi ne, %103, %c0_i32_65 : i32
    scf.if %104 {
      %cst_84 = arith.constant 0.000000e+00 : f32
      %127 = vector.broadcast %cst_84 : f32 to vector<1x128xf32>
      %c0_85 = arith.constant 0 : index
      %c0_86 = arith.constant 0 : index
      %c0_87 = arith.constant 0 : index
      %128 = vector.load %arg9[%c0_85, %c0_86, %c0_87] : memref<1x1x128xf32, #tpu.memory_space<vmem>>, vector<1x1x128xf32>
      %129 = vector.shape_cast %128 : vector<1x1x128xf32> to vector<1x128xf32>
      %130 = vector.shape_cast %127 : vector<1x128xf32> to vector<1x1x128xf32>
      tpu.vector_store %arg9[%c0_85, %c0_86, %c0_87], %130 {strides = array<i32>} : memref<1x1x128xf32, #tpu.memory_space<vmem>>, vector<1x1x128xf32>,
      %cst_88 = arith.constant 0.000000e+00 : f32
      %131 = vector.broadcast %cst_88 : f32 to vector<1x128xf32>
      %c0_89 = arith.constant 0 : index
      %c0_90 = arith.constant 0 : index
      %c0_91 = arith.constant 0 : index
      %132 = vector.load %arg10[%c0_89, %c0_90, %c0_91] : memref<1x1x128xf32, #tpu.memory_space<vmem>>, vector<1x1x128xf32>
      %133 = vector.shape_cast %132 : vector<1x1x128xf32> to vector<1x128xf32>
      %134 = vector.shape_cast %131 : vector<1x128xf32> to vector<1x1x128xf32>
      tpu.vector_store %arg10[%c0_89, %c0_90, %c0_91], %134 {strides = array<i32>} : memref<1x1x128xf32, #tpu.memory_space<vmem>>, vector<1x1x128xf32>,
    } else {
    }
    %c0_66 = arith.constant 0 : index
    %c0_67 = arith.constant 0 : index
    %c0_68 = arith.constant 0 : index
    %105 = vector.load %arg9[%c0_66, %c0_67, %c0_68] : memref<1x1x128xf32, #tpu.memory_space<vmem>>, vector<1x1x128xf32>
    %106 = vector.shape_cast %105 : vector<1x1x128xf32> to vector<1x128xf32>
    %cst_69 = arith.constant dense<0.000000e+00> : vector<128xf32>
    %107 = vector.multi_reduction <add>, %101, %cst_69 [0] : vector<128x128xf32> to vector<128xf32>
    %108 = vector.shape_cast %107 : vector<128xf32> to vector<1x128xf32>
    %109 = arith.addf %106, %108 : vector<1x128xf32>
    %c0_70 = arith.constant 0 : index
    %c0_71 = arith.constant 0 : index
    %c0_72 = arith.constant 0 : index
    %110 = vector.load %arg9[%c0_70, %c0_71, %c0_72] : memref<1x1x128xf32, #tpu.memory_space<vmem>>, vector<1x1x128xf32>
    %111 = vector.shape_cast %110 : vector<1x1x128xf32> to vector<1x128xf32>
    %112 = vector.shape_cast %109 : vector<1x128xf32> to vector<1x1x128xf32>
    tpu.vector_store %arg9[%c0_70, %c0_71, %c0_72], %112 {strides = array<i32>} : memref<1x1x128xf32, #tpu.memory_space<vmem>>, vector<1x1x128xf32>,
    %c0_73 = arith.constant 0 : index
    %c0_74 = arith.constant 0 : index
    %c0_75 = arith.constant 0 : index
    %113 = vector.load %arg10[%c0_73, %c0_74, %c0_75] : memref<1x1x128xf32, #tpu.memory_space<vmem>>, vector<1x1x128xf32>
    %114 = vector.shape_cast %113 : vector<1x1x128xf32> to vector<1x128xf32>
    %115 = arith.mulf %101, %101 : vector<128x128xf32>
    %cst_76 = arith.constant dense<0.000000e+00> : vector<128xf32>
    %116 = vector.multi_reduction <add>, %115, %cst_76 [0] : vector<128x128xf32> to vector<128xf32>
    %117 = vector.shape_cast %116 : vector<128xf32> to vector<1x128xf32>
    %118 = arith.addf %114, %117 : vector<1x128xf32>
    %c0_77 = arith.constant 0 : index
    %c0_78 = arith.constant 0 : index
    %c0_79 = arith.constant 0 : index
    %119 = vector.load %arg10[%c0_77, %c0_78, %c0_79] : memref<1x1x128xf32, #tpu.memory_space<vmem>>, vector<1x1x128xf32>
    %120 = vector.shape_cast %119 : vector<1x1x128xf32> to vector<1x128xf32>
    %121 = vector.shape_cast %118 : vector<1x128xf32> to vector<1x1x128xf32>
    tpu.vector_store %arg10[%c0_77, %c0_78, %c0_79], %121 {strides = array<i32>} : memref<1x1x128xf32, #tpu.memory_space<vmem>>, vector<1x1x128xf32>,
    %122 = vector.shape_cast %101 : vector<128x128xf32> to vector<8x16x128xf32>
    %123 = arith.truncf %122 : vector<8x16x128xf32> to vector<8x16x128xbf16>
    %c0_80 = arith.constant 0 : index
    %c0_81 = arith.constant 0 : index
    %c0_82 = arith.constant 0 : index
    %c0_83 = arith.constant 0 : index
    %124 = vector.load %arg8[%c0_80, %c0_81, %c0_82, %c0_83] : memref<1x8x16x128xbf16, #tpu.memory_space<vmem>>, vector<1x8x16x128xbf16>
    %125 = vector.shape_cast %124 : vector<1x8x16x128xbf16> to vector<8x16x128xbf16>
    %126 = vector.shape_cast %123 : vector<8x16x128xbf16> to vector<1x8x16x128xbf16>
    tpu.vector_store %arg8[%c0_80, %c0_81, %c0_82, %c0_83], %126 {strides = array<i32>} : memref<1x8x16x128xbf16, #tpu.memory_space<vmem>>, vector<1x8x16x128xbf16>,
    return
  }
  func.func @transform_0(%arg0: i32, %arg1: i32) -> (i32, i32, i32, i32) {
    %c8_i32 = arith.constant 8 : i32
    %0 = arith.muli %arg1, %c8_i32 : i32
    %c1_i32 = arith.constant 1 : i32
    %1 = arith.subi %0, %c1_i32 : i32
    %c0_i32 = arith.constant 0 : i32
    %2 = arith.maxsi %1, %c0_i32 : i32
    %c0_i32_0 = arith.constant 0 : i32
    %c0_i32_1 = arith.constant 0 : i32
    %c0_i32_2 = arith.constant 0 : i32
    return %arg0, %2, %c0_i32_0, %c0_i32_1 : i32, i32, i32, i32
  }
  func.func @transform_1(%arg0: i32, %arg1: i32) -> (i32, i32, i32, i32) {
    %c0_i32 = arith.constant 0 : i32
    %c0_i32_0 = arith.constant 0 : i32
    %c0_i32_1 = arith.constant 0 : i32
    return %arg0, %arg1, %c0_i32, %c0_i32_0 : i32, i32, i32, i32
  }
  func.func @transform_2(%arg0: i32, %arg1: i32) -> (i32, i32, i32, i32) {
    %c8_i32 = arith.constant 8 : i32
    %0 = arith.muli %arg1, %c8_i32 : i32
    %c8_i32_0 = arith.constant 8 : i32
    %1 = arith.addi %0, %c8_i32_0 : i32
    %c15_i32 = arith.constant 15 : i32
    %2 = arith.minsi %1, %c15_i32 : i32
    %c0_i32 = arith.constant 0 : i32
    %c0_i32_1 = arith.constant 0 : i32
    %c0_i32_2 = arith.constant 0 : i32
    return %arg0, %2, %c0_i32, %c0_i32_1 : i32, i32, i32, i32
  }
  func.func @transform_3(%arg0: i32, %arg1: i32) -> (i32, i32) {
    %c0_i32 = arith.constant 0 : i32
    %c0_i32_0 = arith.constant 0 : i32
    %c0_i32_1 = arith.constant 0 : i32
    return %c0_i32, %c0_i32_0 : i32, i32
  }
  func.func @transform_4(%arg0: i32, %arg1: i32) -> (i32, i32) {
    %c0_i32 = arith.constant 0 : i32
    %c0_i32_0 = arith.constant 0 : i32
    %c0_i32_1 = arith.constant 0 : i32
    return %c0_i32, %c0_i32_0 : i32, i32
  }
  func.func @transform_5(%arg0: i32, %arg1: i32) -> (i32, i32, i32) {
    %c0_i32 = arith.constant 0 : i32
    %c0_i32_0 = arith.constant 0 : i32
    %c0_i32_1 = arith.constant 0 : i32
    %c0_i32_2 = arith.constant 0 : i32
    return %c0_i32, %c0_i32_0, %c0_i32_1 : i32, i32, i32
  }
  func.func @transform_6(%arg0: i32, %arg1: i32) -> (i32, i32, i32, i32) {
    %c0_i32 = arith.constant 0 : i32
    %c0_i32_0 = arith.constant 0 : i32
    %c0_i32_1 = arith.constant 0 : i32
    return %arg0, %arg1, %c0_i32, %c0_i32_0 : i32, i32, i32, i32
  }
  func.func @transform_7(%arg0: i32, %arg1: i32) -> (i32, i32, i32) {
    %c0_i32 = arith.constant 0 : i32
    %c0_i32_0 = arith.constant 0 : i32
    %c0_i32_1 = arith.constant 0 : i32
    return %arg0, %c0_i32, %c0_i32_0 : i32, i32, i32
  }
  func.func @transform_8(%arg0: i32, %arg1: i32) -> (i32, i32, i32) {
    %c0_i32 = arith.constant 0 : i32
    %c0_i32_0 = arith.constant 0 : i32
    %c0_i32_1 = arith.constant 0 : i32
    return %arg0, %c0_i32, %c0_i32_0 : i32, i32, i32
  }
}

module attributes {stable_mosaic.version = 11 : i64} {
  func.func @kernel(%arg0: i32, %arg1: i32, %arg2: memref<1x8x16x128xbf16, #tpu.memory_space<vmem>>, %arg3: memref<1x128xf32, #tpu.memory_space<vmem>>, %arg4: memref<1x128xf32, #tpu.memory_space<vmem>>, %arg5: memref<1x8x16x128xf32, #tpu.memory_space<vmem>>) attributes {dimension_semantics = [#tpu.dimension_semantics<parallel>, #tpu.dimension_semantics<parallel>], iteration_bounds = array<i64: 2, 2>, scalar_prefetch = 0 : i64, scratch_operands = 0 : i64, tpu.core_type = #tpu.core_type<tc>, window_params = [{transform_indices = @transform_0, window_bounds = array<i64: 1, 8, 16, 128>}, {pipeline_mode = #tpu.pipeline_mode<synchronous>, transform_indices = @transform_1, window_bounds = array<i64: 1, 128>}, {pipeline_mode = #tpu.pipeline_mode<synchronous>, transform_indices = @transform_2, window_bounds = array<i64: 1, 128>}, {transform_indices = @transform_3, window_bounds = array<i64: 1, 8, 16, 128>}]} {
    %c0 = arith.constant 0 : index
    %c0_0 = arith.constant 0 : index
    %0 = vector.load %arg3[%c0, %c0_0] : memref<1x128xf32, #tpu.memory_space<vmem>>, vector<1x128xf32>
    %1 = vector.shape_cast %0 : vector<1x128xf32> to vector<1x1x128xf32>
    %c0_1 = arith.constant 0 : index
    %c0_2 = arith.constant 0 : index
    %2 = vector.load %arg4[%c0_1, %c0_2] : memref<1x128xf32, #tpu.memory_space<vmem>>, vector<1x128xf32>
    %3 = vector.shape_cast %2 : vector<1x128xf32> to vector<1x1x128xf32>
    %c0_3 = arith.constant 0 : index
    %c0_4 = arith.constant 0 : index
    %c0_5 = arith.constant 0 : index
    %c0_6 = arith.constant 0 : index
    %4 = vector.load %arg2[%c0_3, %c0_4, %c0_5, %c0_6] : memref<1x8x16x128xbf16, #tpu.memory_space<vmem>>, vector<1x8x16x128xbf16>
    %5 = vector.shape_cast %4 : vector<1x8x16x128xbf16> to vector<8x16x128xbf16>
    %6 = arith.extf %5 : vector<8x16x128xbf16> to vector<8x16x128xf32>
    %7 = vector.broadcast %1 : vector<1x1x128xf32> to vector<8x16x128xf32>
    %8 = arith.mulf %6, %7 : vector<8x16x128xf32>
    %9 = vector.broadcast %3 : vector<1x1x128xf32> to vector<8x16x128xf32>
    %10 = arith.addf %8, %9 : vector<8x16x128xf32>
    %cst = arith.constant 0.000000e+00 : f32
    %11 = vector.broadcast %cst : f32 to vector<8x16x128xf32>
    %12 = arith.maximumf %10, %11 : vector<8x16x128xf32>
    %c0_7 = arith.constant 0 : index
    %c0_8 = arith.constant 0 : index
    %c0_9 = arith.constant 0 : index
    %c0_10 = arith.constant 0 : index
    %13 = vector.load %arg5[%c0_7, %c0_8, %c0_9, %c0_10] : memref<1x8x16x128xf32, #tpu.memory_space<vmem>>, vector<1x8x16x128xf32>
    %14 = vector.shape_cast %13 : vector<1x8x16x128xf32> to vector<8x16x128xf32>
    %15 = vector.shape_cast %12 : vector<8x16x128xf32> to vector<1x8x16x128xf32>
    tpu.vector_store %arg5[%c0_7, %c0_8, %c0_9, %c0_10], %15 {strides = array<i32>} : memref<1x8x16x128xf32, #tpu.memory_space<vmem>>, vector<1x8x16x128xf32>,
    return
  }
  func.func @transform_0(%arg0: i32, %arg1: i32) -> (i32, i32, i32, i32) {
    %c0_i32 = arith.constant 0 : i32
    %c0_i32_0 = arith.constant 0 : i32
    %c0_i32_1 = arith.constant 0 : i32
    return %arg0, %arg1, %c0_i32, %c0_i32_0 : i32, i32, i32, i32
  }
  func.func @transform_1(%arg0: i32, %arg1: i32) -> (i32, i32) {
    %c0_i32 = arith.constant 0 : i32
    %c0_i32_0 = arith.constant 0 : i32
    %c0_i32_1 = arith.constant 0 : i32
    return %c0_i32, %c0_i32_0 : i32, i32
  }
  func.func @transform_2(%arg0: i32, %arg1: i32) -> (i32, i32) {
    %c0_i32 = arith.constant 0 : i32
    %c0_i32_0 = arith.constant 0 : i32
    %c0_i32_1 = arith.constant 0 : i32
    return %c0_i32, %c0_i32_0 : i32, i32
  }
  func.func @transform_3(%arg0: i32, %arg1: i32) -> (i32, i32, i32, i32) {
    %c0_i32 = arith.constant 0 : i32
    %c0_i32_0 = arith.constant 0 : i32
    %c0_i32_1 = arith.constant 0 : i32
    return %arg0, %arg1, %c0_i32, %c0_i32_0 : i32, i32, i32, i32
  }
}

</mosaic_0001>

<bundles_post_ra>
// kernel: _lambda_.4
= control target key start
LH: loop header
LB: loop body
LE: loop exit
PB: predicated region body
PF: predicated region fallthrough
CT: control target
= control target key end

     0   :  { %s908_s12 = smov 0   ;;  %s910_s13 = smov 0   ;;  %s1086_s0 = inlined_call_operand.vmem [shape: f32[2,8,8,128], index: 0, kind: input, shape index: {}]   ;;  %s1087_s1 = inlined_call_operand.vmem [shape: bf16[128,512], index: 1, kind: input, shape index: {}]   ;;  %s1088_s2 = inlined_call_operand.vmem [shape: f32[1,512], index: 2, kind: input, shape index: {}]   ;;  %s1089_s3 = inlined_call_operand.vmem [shape: bf16[2,8,2,8,256], index: 3, kind: output, shape index: {}]  }
   0x1   :  { %s912_s14 = smov 0   ;;  %s914_s15 = smov 0  }
   0x2   :  { %s916_s16 = smov 0  }
   0x3 LB: > { %s22_s17 = sadd.s32 1, %s877_s14  ;;  %s25_s18 = sadd.s32 1, %s881_s15  ;;  %s885_s16 = sphi %s916_s16, %s13_s16   ;;  %s881_s15 = sphi %s914_s15, %s1093_s15   ;;  %s877_s14 = sphi %s912_s14, %s1092_s14   ;;  %s873_s13 = sphi %s910_s13, %s1091_s13   ;;  %s869_s12 = sphi %s908_s12, %s1090_s12  }
   0x4   : > { %p23_p0 = scmp.ge.s32.totalorder %s22_s17, 2  ;;  %p696_p1 = scmp.ge.s32.totalorder %s885_s16, 1 }
   0x5   : > { %p158_p2 = scmp.lt.s32.totalorder %s885_s16, 5 }
   0x6   : > { %s1095_s17 = smov (%p23_p0, %s22_s17), 0  ;;  %s1097_s18 = smov (!%p23_p0, %s25_s18), %s881_s15 }
   0x7   : > { %p159_p3 = pnand %p696_p1, %p158_p2  ;;  %p27_p4 = scmp.ge.s32.totalorder %s1097_s18, 2 }
   0x8   : > { %s697_s21 = sshll.u32 (!%p159_p3), %s869_s12, 2  ;;  %p192_p5 = scmp.lt.s32.totalorder (!%p159_p3), %s873_s13, 1 }
   0x9   : > { %s1099_s18 = smov (%p27_p4, %s1097_s18), 0  ;;  %162 = sbr.rel (%p159_p3) target bundleno = 260 (0x104), region = 32 }
   0xa   : > { %p194_p6 = scmp.lt.s32.totalorder (!%p159_p3), %s697_s21, 7 }
   0xe   : > { %v799_v0 = vld [vmem:[%s1087_s1 + $0xe4] ss:$16 sps:$4 sm:$0xff]   ;;  %v801_v1 = vld [vmem:[%s1087_s1 + $0xec] ss:$16 sps:$4 sm:$0xff]   ;;  %v887_v2 = vmov 0   ;;  %s1101_s13 = smov (!%p192_p5, %s873_s13), 1  ;;  %v253_v39 = vlaneseq }
   0xf   : > { %465 = vmatprep.mubr.bf16.mxu0 %v887_v2  ;;  %518 = vmatprep.mubr.bf16.mxu1 %v887_v2  ;;  %v803_v3 = vld [vmem:[%s1087_s1 + $0xe0] ss:$16 sps:$4 sm:$0xff]   ;;  %v804_v4 = vld [vmem:[%s1087_s1 + $0xe8] ss:$16 sps:$4 sm:$0xff]   ;;  %v805_v5 = vld [vmem:[%s1087_s1 + $0xc4] ss:$16 sps:$4 sm:$0xff]  }
  0x10   : > { %433 = vmatprep.subr.bf16.mxu0 %v799_v0  ;;  %486 = vmatprep.subr.bf16.mxu1 %v801_v1  ;;  %v807_v6 = vld [vmem:[%s1087_s1 + $0xcc] ss:$16 sps:$4 sm:$0xff]   ;;  %v809_v7 = vld [vmem:[%s1087_s1 + $0xc0] ss:$16 sps:$4 sm:$0xff]   ;;  %s1103_s21 = smov (!%p194_p6, %s697_s21), 7  ;;  %s702_s9 = sshll.u32 %s1101_s13, 5 }
  0x11   : > { %434 = vmatpush1.bf16.msra.mxu0 %v803_v3  ;;  %487 = vmatpush1.bf16.msra.mxu1 %v804_v4  ;;  %v810_v8 = vld [vmem:[%s1087_s1 + $0xc8] ss:$16 sps:$4 sm:$0xff]   ;;  %v811_v9 = vld [vmem:[%s1087_s1 + $0xa4] ss:$16 sps:$4 sm:$0xff]   ;;  %s701_s12 = sshll.u32 %s1103_s21, 2  ;;  %s698_s25 = sshll.u32 %s1101_s13, 3 }
  0x12   : > { %435 = vmatprep.subr.bf16.mxu0 %v805_v5  ;;  %488 = vmatprep.subr.bf16.mxu1 %v807_v6  ;;  %v813_v10 = vld [vmem:[%s1087_s1 + $0xac] ss:$16 sps:$4 sm:$0xff]   ;;  %v815_v11 = vld [vmem:[%s1087_s1 + $0xa0] ss:$16 sps:$4 sm:$0xff]   ;;  %v816_v12 = vld [vmem:[%s1087_s1 + $0xa8] ss:$16 sps:$4 sm:$0xff]   ;;  %s985_s26 = sadd.s32 %s702_s9, %s701_s12  ;;  %s197_s29 = sadd.s32 %s698_s25, %s1103_s21 }
  0x13   : > { %v817_v13 = vld [vmem:[%s1087_s1 + $0x84] ss:$16 sps:$4 sm:$0xff]   ;;  %v819_v14 = vld [vmem:[%s1087_s1 + $0x8c] ss:$16 sps:$4 sm:$0xff]   ;;  %v821_v15 = vld [vmem:[%s1087_s1 + $0x80] ss:$16 sps:$4 sm:$0xff]  }
  0x14   : > { %v822_v16 = vld [vmem:[%s1087_s1 + $0x88] ss:$16 sps:$4 sm:$0xff]   ;;  %v823_v17 = vld [vmem:[%s1087_s1 + $0x64] ss:$16 sps:$4 sm:$0xff]   ;;  %v825_v18 = vld [vmem:[%s1087_s1 + $0x6c] ss:$16 sps:$4 sm:$0xff]  }
  0x15   : > { %436 = vmatpush1.bf16.msra.mxu0 %v809_v7  ;;  %489 = vmatpush1.bf16.msra.mxu1 %v810_v8  ;;  %v827_v19 = vld [vmem:[%s1087_s1 + $0x60] ss:$16 sps:$4 sm:$0xff]   ;;  %v828_v20 = vld [vmem:[%s1087_s1 + $0x68] ss:$16 sps:$4 sm:$0xff]   ;;  %v829_v21 = vld [vmem:[%s1087_s1 + $0x44] ss:$16 sps:$4 sm:$0xff]  }
  0x16   : > { %437 = vmatprep.subr.bf16.mxu0 %v811_v9  ;;  %490 = vmatprep.subr.bf16.mxu1 %v813_v10  ;;  %v831_v22 = vld [vmem:[%s1087_s1 + $0x4c] ss:$16 sps:$4 sm:$0xff]   ;;  %v833_v23 = vld [vmem:[%s1087_s1 + $0x40] ss:$16 sps:$4 sm:$0xff]   ;;  %v834_v24 = vld [vmem:[%s1087_s1 + $0x48] ss:$16 sps:$4 sm:$0xff]  }
  0x17   : > { %v835_v25 = vld [vmem:[%s1087_s1 + $0x24] ss:$16 sps:$4 sm:$0xff]   ;;  %v837_v26 = vld [vmem:[%s1087_s1 + $0x2c] ss:$16 sps:$4 sm:$0xff]   ;;  %s699_s21 = sshll.u32 %s197_s29, 3  ;;  %v254_v40 = vshrl.u32 %v253_v39, 7 }
  0x18   : > { %v839_v27 = vld [vmem:[%s1087_s1 + $0x20] ss:$16 sps:$4 sm:$0xff]   ;;  %v840_v28 = vld [vmem:[%s1087_s1 + $0x28] ss:$16 sps:$4 sm:$0xff]   ;;  %v841_v29 = vld [vmem:[%s1087_s1 + $0x4] ss:$16 sps:$4 sm:$0xff]   ;;  %s199_s28 = scalar_lea.vmem %s1086_s0, %s699_s21 }
  0x19   : > { %438 = vmatpush1.bf16.msra.mxu0 %v815_v11  ;;  %491 = vmatpush1.bf16.msra.mxu1 %v816_v12  ;;  %v843_v30 = vld [vmem:[%s1087_s1 + $0xc] ss:$16 sps:$4 sm:$0xff]   ;;  %v845_v31 = vld [vmem:[%s1087_s1] ss:$16 sps:$4 sm:$0xff]   ;;  %v846_v32 = vld [vmem:[%s1087_s1 + $0x8] ss:$16 sps:$4 sm:$0xff]  }
  0x1a   : > { %439 = vmatprep.subr.bf16.mxu0 %v817_v13  ;;  %492 = vmatprep.subr.bf16.mxu1 %v819_v14  ;;  %v213_v33 = vld [vmem:[%s199_s28] sm:$0xff]  ;;  %v214_v34 = vld [vmem:[%s199_s28 + $0x8] sm:$0xff]  ;;  %v215_v36 = vld [vmem:[%s199_s28 + $0x10] sm:$0xff]  ;;  %v255_v41 = vsub.s32 0, %v254_v40  ;;  %v263_v42 = vsub.s32 2, %v254_v40  ;;  %v259_v43 = vsub.s32 1, %v254_v40 }
  0x1b   : > { %v217_v35 = vpack.c.bf16 %v214_v34, %v213_v33  ;;  %v216_v37 = vld [vmem:[%s199_s28 + $0x18] sm:$0xff]  ;;  %v267_v44 = vsub.s32 3, %v254_v40  ;;  %v251_v45 = vld [vmem:[%s1088_s2] sm:$0xf]  ;;  %s703_s7 = sshll.u32 %s985_s26, 2 }
  0x1c   : > { %v218_v38 = vpack.c.bf16 %v216_v37, %v215_v36  ;;  %v256_v46 = vrot.slane %v251_v45, %v255_v41  ;;  %v264_v47 = vrot.slane %v251_v45, %v263_v42  ;;  %v260_v48 = vrot.slane %v251_v45, %v259_v43  ;;  %s1061_s21 = scalar_lea.vmem %s1089_s3, %s703_s7 }
  0x1d   : > { %440 = vmatpush1.bf16.msra.mxu0 %v821_v15  ;;  %493 = vmatpush1.bf16.msra.mxu1 %v822_v16  ;;  %v268_v49 = vrot.slane %v251_v45, %v267_v44 }
  0x1e   : > { %441 = vmatprep.subr.bf16.mxu0 %v823_v17  ;;  %494 = vmatprep.subr.bf16.mxu1 %v825_v18 }
  0x21   : > { %442 = vmatpush1.bf16.msra.mxu0 %v827_v19  ;;  %495 = vmatpush1.bf16.msra.mxu1 %v828_v20 }
  0x22   : > { %443 = vmatprep.subr.bf16.mxu0 %v829_v21  ;;  %496 = vmatprep.subr.bf16.mxu1 %v831_v22 }
  0x25   : > { %444 = vmatpush1.bf16.msra.mxu0 %v833_v23  ;;  %497 = vmatpush1.bf16.msra.mxu1 %v834_v24 }
  0x26   : > { %445 = vmatprep.subr.bf16.mxu0 %v835_v25  ;;  %498 = vmatprep.subr.bf16.mxu1 %v837_v26 }
  0x29   : > { %446 = vmatpush1.bf16.msra.mxu0 %v839_v27  ;;  %499 = vmatpush1.bf16.msra.mxu1 %v840_v28 }
  0x2a   : > { %447 = vmatprep.subr.bf16.mxu0 %v841_v29  ;;  %500 = vmatprep.subr.bf16.mxu1 %v843_v30 }
  0x2d   : > { %448 = vmatpush1.bf16.msra.mxu0 %v845_v31  ;;  %501 = vmatpush1.bf16.msra.mxu1 %v846_v32 }
  0x30   : > { %466 = vmatmul.mubr.bf16.vlgmr.msra.gmra.mxu0 %v217_v35  ;;  %519 = vmatmul.mubr.bf16.vlgmr.msra.gmra.mxu1 %v217_v35 }
  0x31   : > { %475 = vmatprep.mubr.bf16.mxu0 %v887_v2  ;;  %528 = vmatprep.mubr.bf16.mxu1 %v887_v2 }
  0x38   : > { %476 = vmatmul.mubr.bf16.gmra.mxu0 %v218_v38  ;;  %529 = vmatmul.mubr.bf16.gmra.mxu1 %v218_v38 }
  0xf0   : > { %v467_v50 = vpop.f32.mrf.mxu0  ;;  %v520_v51 = vpop.f32.mrf.mxu1 }
  0xf1   : > { %v468_v54 = vadd.f32 %v467_v50, %v256_v46  ;;  %v521_v55 = vadd.f32 %v520_v51, %v264_v47 }
  0xf2   : > { %v469_v52 = vpop.f32.mrf.mxu0  ;;  %v522_v53 = vpop.f32.mrf.mxu1 }
  0xf3   : > { %v470_v56 = vadd.f32 %v469_v52, %v260_v48  ;;  %v523_v57 = vadd.f32 %v522_v53, %v268_v49 }
  0xf4   : > { %v471_v58 = vpop.f32.mrf.mxu0  ;;  %v524_v59 = vpop.f32.mrf.mxu1 }
  0xf5   : > { %v750_v60 = vpack.c.bf16 %v470_v56, %v468_v54  ;;  %v754_v61 = vpack.c.bf16 %v523_v57, %v521_v55  ;;  %v472_v0 = vadd.f32 %v471_v58, %v256_v46  ;;  %v525_v1 = vadd.f32 %v524_v59, %v264_v47 }
  0xf6   : > { %v473_v62 = vpop.f32.mrf.mxu0  ;;  %v526_v63 = vpop.f32.mrf.mxu1 }
  0xf7   : > { %567 = vst [vmem:[%s1061_s21] sm:$0xff] %v750_v60  ;;  %744 = vst [vmem:[%s1061_s21 + $0x8] sm:$0xff] %v754_v61  ;;  %v474_v2 = vadd.f32 %v473_v62, %v260_v48  ;;  %v527_v3 = vadd.f32 %v526_v63, %v268_v49 }
  0xf8   : > { %v477_v4 = vpop.f32.mrf.mxu0  ;;  %v530_v5 = vpop.f32.mrf.mxu1 }
  0xf9   : > { %v751_v6 = vpack.c.bf16 %v474_v2, %v472_v0  ;;  %v755_v7 = vpack.c.bf16 %v527_v3, %v525_v1  ;;  %v478_v10 = vadd.f32 %v477_v4, %v256_v46  ;;  %v531_v11 = vadd.f32 %v530_v5, %v264_v47 }
  0xfa   : > { %v479_v8 = vpop.f32.mrf.mxu0  ;;  %v532_v9 = vpop.f32.mrf.mxu1 }
  0xfb   : > { %568 = vst [vmem:[%s1061_s21 + $0x10] sm:$0xff] %v751_v6  ;;  %745 = vst [vmem:[%s1061_s21 + $0x18] sm:$0xff] %v755_v7  ;;  %v480_v12 = vadd.f32 %v479_v8, %v260_v48  ;;  %v533_v13 = vadd.f32 %v532_v9, %v268_v49 }
  0xfc   : > { %v481_v14 = vpop.f32.mrf.mxu0  ;;  %v534_v15 = vpop.f32.mrf.mxu1 }
  0xfd   : > { %v752_v16 = vpack.c.bf16 %v480_v12, %v478_v10  ;;  %v756_v17 = vpack.c.bf16 %v533_v13, %v531_v11  ;;  %v482_v20 = vadd.f32 %v481_v14, %v256_v46  ;;  %v535_v21 = vadd.f32 %v534_v15, %v264_v47 }
  0xfe   : > { %v483_v18 = vpop.f32.mrf.mxu0  ;;  %v536_v19 = vpop.f32.mrf.mxu1 }
  0xff   : > { %569 = vst [vmem:[%s1061_s21 + $0x20] sm:$0xff] %v752_v16  ;;  %746 = vst [vmem:[%s1061_s21 + $0x28] sm:$0xff] %v756_v17  ;;  %v484_v22 = vadd.f32 %v483_v18, %v260_v48  ;;  %v537_v23 = vadd.f32 %v536_v19, %v268_v49 }
 0x101   : > { %v753_v24 = vpack.c.bf16 %v484_v22, %v482_v20  ;;  %v757_v25 = vpack.c.bf16 %v537_v23, %v535_v21 }
 0x103   : > { %570 = vst [vmem:[%s1061_s21 + $0x30] sm:$0xff] %v753_v24  ;;  %747 = vst [vmem:[%s1061_s21 + $0x38] sm:$0xff] %v757_v25 }
 0x104 PF: > { %s13_s16 = sadd.s32 1, %s885_s16   ;;  %s1090_s12 = smov %s877_s14 }
 0x105   : > { %p10_p7 = scmp.ge.s32.totalorder %s13_s16, 6   ;;  %s1091_s13 = smov %s881_s15 }
 0x106   : > { %s1092_s14 = smov %s1095_s17  ;;  %s1093_s15 = smov %s1099_s18 }
 0x107   :  { %12 = sbr.rel (!%p10_p7) target bundleno = 3 (0x3), region = 63 }

// kernel: _lambda_.7
= control target key start
LH: loop header
LB: loop body
LE: loop exit
PB: predicated region body
PF: predicated region fallthrough
CT: control target
= control target key end

     0   :  { %s580_s12 = smov 0   ;;  %s582_s13 = smov 0   ;;  %s705_s0 = inlined_call_operand.vmem [shape: bf16[2,16,16,128], index: 0, kind: input, shape index: {}]   ;;  %s706_s1 = inlined_call_operand.vmem [shape: f32[1,128], index: 1, kind: input, shape index: {}]   ;;  %s707_s2 = inlined_call_operand.vmem [shape: f32[1,128], index: 2, kind: input, shape index: {}]   ;;  %s708_s3 = inlined_call_operand.vmem [shape: f32[2,16,16,128], index: 3, kind: output, shape index: {}]  }
   0x1   :  { %s584_s14 = smov 0   ;;  %s586_s15 = smov 0  }
   0x2   :  { %s588_s16 = smov 0  }
   0x3 LB: > { %s22_s17 = sadd.s32 1, %s550_s14  ;;  %s25_s18 = sadd.s32 1, %s554_s15  ;;  %s558_s16 = sphi %s588_s16, %s13_s16   ;;  %s554_s15 = sphi %s586_s15, %s712_s15   ;;  %s550_s14 = sphi %s584_s14, %s711_s14   ;;  %s546_s13 = sphi %s582_s13, %s710_s13   ;;  %s542_s12 = sphi %s580_s12, %s709_s12  }
   0x4   : > { %p23_p0 = scmp.ge.s32.totalorder %s22_s17, 2  ;;  %p428_p1 = scmp.ge.s32.totalorder %s558_s16, 1 }
   0x5   : > { %p159_p2 = scmp.lt.s32.totalorder %s558_s16, 5 }
   0x6   : > { %s714_s17 = smov (%p23_p0, %s22_s17), 0  ;;  %s716_s18 = smov (!%p23_p0, %s25_s18), %s554_s15 }
   0x7   : > { %p160_p3 = pnand %p428_p1, %p159_p2  ;;  %p27_p4 = scmp.ge.s32.totalorder %s716_s18, 2 }
   0x8   : > { %s429_s19 = sshll.u32 (!%p160_p3), %s542_s12, 3  ;;  %p194_p5 = scmp.lt.s32.totalorder (!%p160_p3), %s546_s13, 1 }
   0x9   : > { %s718_s18 = smov (%p27_p4, %s716_s18), 0  ;;  %163 = sbr.rel (%p160_p3) target bundleno = 40 (0x28), region = 32 }
   0xa   : > { %p196_p6 = scmp.lt.s32.totalorder (!%p160_p3), %s429_s19, 15 }
   0xe   : > { %s720_s13 = smov (!%p194_p5, %s546_s13), 1  ;;  %s722_s19 = smov (!%p196_p6, %s429_s19), 15  ;;  %v621_v0 = vld [vmem:[%s706_s1] ss:$0 sm:$0xff] }
   0xf   : > { %s431_s20 = sshll.u32 %s720_s13, 5  ;;  %s430_s21 = sshll.u32 %s722_s19, 1  ;;  %v630_v9 = vld [vmem:[%s707_s2] ss:$0 sm:$0xff] }
  0x10   : > { %s610_s22 = sadd.s32 %s431_s20, %s430_s21 }
  0x11   : > { %s432_s23 = sshll.u32 %s610_s22, 2  ;;  %s436_s4 = sshll.u32 %s610_s22, 3 }
  0x12   : > { %s616_s26 = scalar_lea.vmem %s705_s0, %s432_s23  ;;  %s648_s7 = scalar_lea.vmem %s708_s3, %s436_s4 }
  0x13   : > { %v442_v1 = vld [vmem:[%s616_s26] sm:$0xff]   ;;  %v473_v2 = vld [vmem:[%s616_s26 + $0x8] sm:$0xff]   ;;  %v474_v3 = vld [vmem:[%s616_s26 + $0x10] sm:$0xff]  }
  0x14   : > { %v443_v4 = vunpack.c.l.bf16 %v442_v1  ;;  %v444_v5 = vunpack.c.h.bf16 %v442_v1  ;;  %v447_v6 = vunpack.c.l.bf16 %v473_v2  ;;  %v448_v7 = vunpack.c.h.bf16 %v473_v2  ;;  %v475_v8 = vld [vmem:[%s616_s26 + $0x18] sm:$0xff]   ;;  %v476_v30 = vld [vmem:[%s616_s26 + $0x20] sm:$0xff]   ;;  %v477_v31 = vld [vmem:[%s616_s26 + $0x28] sm:$0xff]  }
  0x15   : > { %v451_v10 = vunpack.c.l.bf16 %v474_v3  ;;  %v452_v11 = vunpack.c.h.bf16 %v474_v3  ;;  %v455_v12 = vunpack.c.l.bf16 %v475_v8  ;;  %v456_v13 = vunpack.c.h.bf16 %v475_v8  ;;  %v478_v36 = vld [vmem:[%s616_s26 + $0x30] sm:$0xff]   ;;  %v479_v37 = vld [vmem:[%s616_s26 + $0x38] sm:$0xff]  }
  0x16   : > { %v255_v14 = vmul.f32 %v443_v4, %v621_v0  ;;  %v256_v15 = vmul.f32 %v444_v5, %v621_v0  ;;  %v257_v16 = vmul.f32 %v447_v6, %v621_v0  ;;  %v258_v17 = vmul.f32 %v448_v7, %v621_v0 }
  0x17   : > { %v259_v18 = vmul.f32 %v451_v10, %v621_v0  ;;  %v260_v19 = vmul.f32 %v452_v11, %v621_v0  ;;  %v261_v20 = vmul.f32 %v455_v12, %v621_v0  ;;  %v262_v21 = vmul.f32 %v456_v13, %v621_v0 }
  0x18   : > { %v277_v22 = vadd.f32 %v630_v9, %v255_v14  ;;  %v278_v23 = vadd.f32 %v630_v9, %v256_v15  ;;  %v279_v24 = vadd.f32 %v630_v9, %v257_v16  ;;  %v280_v25 = vadd.f32 %v630_v9, %v258_v17 }
  0x19   : > { %v281_v26 = vadd.f32 %v630_v9, %v259_v18  ;;  %v282_v27 = vadd.f32 %v630_v9, %v260_v19  ;;  %v283_v28 = vadd.f32 %v630_v9, %v261_v20  ;;  %v284_v29 = vadd.f32 %v630_v9, %v262_v21 }
  0x1a   : > { %v293_v32 = vmax.f32 %v277_v22, 0.0  ;;  %v294_v33 = vmax.f32 %v278_v23, 0.0  ;;  %v295_v34 = vmax.f32 %v279_v24, 0.0  ;;  %v296_v35 = vmax.f32 %v280_v25, 0.0 }
  0x1b   : > { %v297_v38 = vmax.f32 %v281_v26, 0.0  ;;  %v298_v39 = vmax.f32 %v282_v27, 0.0  ;;  %v299_v40 = vmax.f32 %v283_v28, 0.0  ;;  %v300_v41 = vmax.f32 %v284_v29, 0.0 }
  0x1c   : > { %309 = vst [vmem:[%s648_s7] sm:$0xff] %v293_v32  ;;  %310 = vst [vmem:[%s648_s7 + $0x8] sm:$0xff] %v294_v33  ;;  %v459_v42 = vunpack.c.l.bf16 %v476_v30  ;;  %v460_v43 = vunpack.c.h.bf16 %v476_v30  ;;  %v463_v44 = vunpack.c.l.bf16 %v477_v31  ;;  %v464_v45 = vunpack.c.h.bf16 %v477_v31 }
  0x1d   : > { %311 = vst [vmem:[%s648_s7 + $0x10] sm:$0xff] %v295_v34  ;;  %312 = vst [vmem:[%s648_s7 + $0x18] sm:$0xff] %v296_v35  ;;  %v467_v46 = vunpack.c.l.bf16 %v478_v36  ;;  %v468_v47 = vunpack.c.h.bf16 %v478_v36  ;;  %v471_v48 = vunpack.c.l.bf16 %v479_v37  ;;  %v472_v49 = vunpack.c.h.bf16 %v479_v37 }
  0x1e   : > { %313 = vst [vmem:[%s648_s7 + $0x20] sm:$0xff] %v297_v38  ;;  %314 = vst [vmem:[%s648_s7 + $0x28] sm:$0xff] %v298_v39  ;;  %v263_v50 = vmul.f32 %v459_v42, %v621_v0  ;;  %v264_v51 = vmul.f32 %v460_v43, %v621_v0  ;;  %v265_v52 = vmul.f32 %v463_v44, %v621_v0 }
  0x1f   : > { %315 = vst [vmem:[%s648_s7 + $0x30] sm:$0xff] %v299_v40  ;;  %316 = vst [vmem:[%s648_s7 + $0x38] sm:$0xff] %v300_v41  ;;  %v266_v53 = vmul.f32 %v464_v45, %v621_v0  ;;  %v267_v54 = vmul.f32 %v467_v46, %v621_v0  ;;  %v268_v55 = vmul.f32 %v468_v47, %v621_v0 }
  0x20   : > { %v269_v56 = vmul.f32 %v471_v48, %v621_v0  ;;  %v270_v57 = vmul.f32 %v472_v49, %v621_v0  ;;  %v285_v58 = vadd.f32 %v630_v9, %v263_v50  ;;  %v286_v59 = vadd.f32 %v630_v9, %v264_v51 }
  0x21   : > { %v287_v60 = vadd.f32 %v630_v9, %v265_v52  ;;  %v288_v61 = vadd.f32 %v630_v9, %v266_v53  ;;  %v289_v62 = vadd.f32 %v630_v9, %v267_v54  ;;  %v290_v63 = vadd.f32 %v630_v9, %v268_v55 }
  0x22   : > { %v291_v0 = vadd.f32 %v630_v9, %v269_v56  ;;  %v292_v1 = vadd.f32 %v630_v9, %v270_v57  ;;  %v301_v2 = vmax.f32 %v285_v58, 0.0  ;;  %v302_v3 = vmax.f32 %v286_v59, 0.0 }
  0x23   : > { %v303_v4 = vmax.f32 %v287_v60, 0.0  ;;  %v304_v5 = vmax.f32 %v288_v61, 0.0  ;;  %v305_v6 = vmax.f32 %v289_v62, 0.0  ;;  %v306_v7 = vmax.f32 %v290_v63, 0.0 }
  0x24   : > { %v307_v8 = vmax.f32 %v291_v0, 0.0  ;;  %v308_v10 = vmax.f32 %v292_v1, 0.0  ;;  %317 = vst [vmem:[%s648_s7 + $0x40] sm:$0xff] %v301_v2  ;;  %318 = vst [vmem:[%s648_s7 + $0x48] sm:$0xff] %v302_v3 }
  0x25   : > { %319 = vst [vmem:[%s648_s7 + $0x50] sm:$0xff] %v303_v4  ;;  %320 = vst [vmem:[%s648_s7 + $0x58] sm:$0xff] %v304_v5 }
  0x26   : > { %321 = vst [vmem:[%s648_s7 + $0x60] sm:$0xff] %v305_v6  ;;  %322 = vst [vmem:[%s648_s7 + $0x68] sm:$0xff] %v306_v7 }
  0x27   : > { %323 = vst [vmem:[%s648_s7 + $0x70] sm:$0xff] %v307_v8  ;;  %324 = vst [vmem:[%s648_s7 + $0x78] sm:$0xff] %v308_v10 }
  0x28 PF: > { %s13_s16 = sadd.s32 1, %s558_s16   ;;  %s709_s12 = smov %s550_s14 }
  0x29   : > { %p10_p7 = scmp.ge.s32.totalorder %s13_s16, 6   ;;  %s710_s13 = smov %s554_s15 }
  0x2a   : > { %s711_s14 = smov %s714_s17  ;;  %s712_s15 = smov %s718_s18 }
  0x2b   :  { %12 = sbr.rel (!%p10_p7) target bundleno = 3 (0x3), region = 62 }

// kernel: _lambda_.6
= control target key start
LH: loop header
LB: loop body
LE: loop exit
PB: predicated region body
PF: predicated region fallthrough
CT: control target
= control target key end

     0   :  { %s4286_s27 = smov 0   ;;  %s4288_s28 = smov 0   ;;  %s5290_s0 = inlined_call_operand.vmem [shape: bf16[2,16,16,128], index: 0, kind: input, shape index: {}, may-alias: {0,1,2}]   ;;  %s5291_s1 = inlined_call_operand.vmem [shape: bf16[2,16,16,128], index: 1, kind: input, shape index: {}, may-alias: {0,1,2}]   ;;  %s5292_s2 = inlined_call_operand.vmem [shape: bf16[2,16,16,128], index: 2, kind: input, shape index: {}, may-alias: {0,1,2}]   ;;  %s5293_s3 = inlined_call_operand.vmem [shape: f32[1,128], index: 3, kind: input, shape index: {}]   ;;  %s5294_s4 = inlined_call_operand.vmem [shape: f32[1,128], index: 4, kind: input, shape index: {}]   ;;  %s5295_s5 = inlined_call_operand.vmem [shape: bf16[9,128,128], index: 5, kind: input, shape index: {}]   ;;  %s5296_s6 = inlined_call_operand.vmem [shape: bf16[2,16,16,128], index: 6, kind: output, shape index: {0}]   ;;  %s5297_s7 = inlined_call_operand.vmem [shape: f32[2,1,128], index: 7, kind: output, shape index: {1}]   ;;  %s5298_s8 = inlined_call_operand.vmem [shape: f32[2,1,128], index: 8, kind: output, shape index: {2}]  }
   0x1   :  { %s4290_s29 = smov 0   ;;  %s4292_s30 = smov 0  }
   0x2   :  { %s4294_s9 = smov 0  }
   0x3 LB: > { %s28_s10 = sadd.s32 1, %s4230_s29  ;;  %s31_s11 = sadd.s32 1, %s4234_s30  ;;  %s4238_s9 = sphi %s4294_s9, %s19_s9   ;;  %s4234_s30 = sphi %s4292_s30, %s5333_s30   ;;  %s4230_s29 = sphi %s4290_s29, %s5332_s29   ;;  %s4226_s28 = sphi %s4288_s28, %s5331_s28   ;;  %s4222_s27 = sphi %s4286_s27, %s5330_s27  }
   0x4   : > { %p29_p0 = scmp.ge.s32.totalorder %s28_s10, 2  ;;  %p3149_p1 = scmp.ge.s32.totalorder %s4238_s9, 1 }
   0x5   : > { %p353_p2 = scmp.lt.s32.totalorder %s4238_s9, 5 }
   0x6   : > { %s5335_s10 = smov (%p29_p0, %s28_s10), 0  ;;  %s5337_s11 = smov (!%p29_p0, %s31_s11), %s4234_s30 }
   0x7   : > { %p354_p3 = pnand %p3149_p1, %p353_p2  ;;  %p33_p4 = scmp.ge.s32.totalorder %s5337_s11, 2 }
   0x9   : > { %s5339_s11 = smov (%p33_p4, %s5337_s11), 0  ;;  %357 = sbr.rel (%p354_p3) target bundleno = 440 (0x1b8), region = 44 }
   0xe   : > { %v4104_v0 = vld [vmem:[%s5295_s5 + $0x78] sm:$0xff]   ;;  %s4324_s14 = sshll.u32 %s4222_s27, 3  ;;  %v4105_v1 = vld [vmem:[%s5295_s5 + $0x70] sm:$0xff]   ;;  %v4107_v3 = vld [vmem:[%s5295_s5 + $0x68] sm:$0xff]   ;;  %p433_p6 = scmp.lt.s32.totalorder %s4226_s28, 1  ;;  %vm838_vm1 = vcmask 1040384  }
   0xf   : > { %s3151_s17 = sadd.s32 4294967295, %s4324_s14  ;;  %3759 = vmatprep.subr.bf16.mxu0 %v4104_v0  ;;  %v4106_v2 = vld [vmem:[%s5295_s5 + $0x38] sm:$0xff]   ;;  %v4108_v4 = vld [vmem:[%s5295_s5 + $0x30] sm:$0xff]   ;;  %v4110_v5 = vld [vmem:[%s5295_s5 + $0x28] sm:$0xff]   ;;  %p449_p8 = scmp.lt.s32.totalorder %s4324_s14, 15  ;;  %vm873_vm5 = vcmask 1047552  }
  0x10   : > { %p431_p5 = scmp.gt.s32.totalorder %s3151_s17, 0  ;;  %3760 = vmatpush3.bf16.msra.mxu0 %v4104_v0  ;;  %3791 = vmatprep.subr.bf16.mxu1 %v4106_v2  ;;  %s5341_s28 = smov (!%p433_p6, %s4226_s28), 1  ;;  %v4109_v6 = vld [vmem:[%s5295_s5 + $0x60] sm:$0xff]   ;;  %v4111_v8 = vld [vmem:[%s5295_s5 + $0x58] sm:$0xff]   ;;  %v4113_v13 = vld [vmem:[%s5295_s5 + $0x50] sm:$0xff]  }
  0x11   : > { %3761 = vmatprep.subr.bf16.mxu0 %v4105_v1  ;;  %3792 = vmatpush3.bf16.msra.mxu1 %v4106_v2  ;;  %p3152_p7 = scmp.lt.s32.totalorder %s3151_s17, 15  ;;  %s4344_s12 = sshll.u32 %s5341_s28, 5  ;;  %v4112_v7 = vld [vmem:[%s5295_s5 + $0x20] sm:$0xff]   ;;  %v4114_v9 = vld [vmem:[%s5295_s5 + $0x18] sm:$0xff]   ;;  %v4116_v16 = vld [vmem:[%s5295_s5 + $0x10] sm:$0xff]  }
  0x12   : > { %s432_s24 = scalar_select %p431_p5, %s3151_s17, 0  ;;  %3793 = vmatprep.subr.bf16.mxu1 %v4108_v4  ;;  %v4386_v10 = vld [vmem:[%s5293_s3] ss:$0 sm:$0xff]  ;;  %v4115_v19 = vld [vmem:[%s5295_s5 + $0x48] sm:$0xff]   ;;  %v4446_v45 = vld [vmem:[%s5295_s5 + $0xb8] sm:$0xff]  }
  0x13   : > { %s4349_s16 = scalar_lea.vmem %s5297_s7, %s5341_s28  ;;  %s4360_s23 = scalar_lea.vmem %s5298_s8, %s5341_s28  ;;  %v4391_v11 = vld [vmem:[%s5294_s4] ss:$0 sm:$0xff]  ;;  %v4118_v27 = vld [vmem:[%s5295_s5 + $0x8] sm:$0xff]   ;;  %vm839_vm2 = vsmask.f32 256  ;;  %v4462_v0 = vld [vmem:[%s5295_s5 + $0xf8] sm:$0xff]  }
  0x14   : > { %3762 = vmatpush3.bf16.msra.mxu0 %v4105_v1  ;;  %s5343_s24 = smov (!%p3152_p7, %s432_s24), 15  ;;  %s458_s13 = sadd.s32 8, %s4324_s14  ;;  %v4117_v32 = vld [vmem:[%s5295_s5 + $0x40] sm:$0xff]   ;;  %vm4512_vm3 = vmand %vm838_vm1, %vm839_vm2  ;;  %vm874_vm4 = vsmask.f32 7424 }
  0x15   : > { %3763 = vmatprep.subr.bf16.mxu0 %v4107_v3  ;;  %3794 = vmatpush3.bf16.msra.mxu1 %v4108_v4  ;;  %s3157_s25 = sshll.u32 %s5343_s24, 1  ;;  %p4371_p9 = scmp.lt.s32.totalorder %s458_s13, 15  ;;  %v4122_v46 = vld [vmem:[%s5295_s5] sm:$0xff]   ;;  %vm4609_vm6 = vmand %vm873_vm5, %vm874_vm4 }
  0x16   : > { %3795 = vmatprep.subr.bf16.mxu1 %v4110_v5  ;;  %s439_s26 = sadd.s32 %s4344_s12, %s3157_s25  ;;  %s5345_s14 = smov (!%p449_p8, %s4324_s14), 15 }
  0x17   : > { %s3159_s19 = sshll.u32 %s439_s26, 2  ;;  %s5347_s13 = smov (!%p4371_p9, %s458_s13), 15 }
  0x18   : > { %3764 = vmatpush3.bf16.msra.mxu0 %v4107_v3  ;;  %s441_s17 = scalar_lea.vmem %s5290_s0, %s3159_s19  ;;  %s3161_s21 = sshll.u32 %s5345_s14, 1 }
  0x19   : > { %3765 = vmatprep.subr.bf16.mxu0 %v4109_v6  ;;  %3796 = vmatpush3.bf16.msra.mxu1 %v4110_v5  ;;  %v3475_v12 = vld [vmem:[%s441_s17] sm:$0xff]   ;;  %s453_s24 = sadd.s32 %s3161_s21, %s4344_s12  ;;  %p494_p10 = scmp.gt.s32.totalorder %s4222_s27, 0 }
  0x1a   : > { %3797 = vmatprep.subr.bf16.mxu1 %v4112_v7  ;;  %v3476_v14 = vunpack.c.l.bf16 %v3475_v12  ;;  %v3477_v15 = vunpack.c.h.bf16 %v3475_v12  ;;  %s3163_s17 = sshll.u32 %s453_s24, 2  ;;  %s5349_s13 = smov (!%p4371_p9, %s5347_s13), 15 }
  0x1b   : > { %s4406_s15 = scalar_lea.vmem %s5291_s1, %s3163_s17  ;;  %s4411_s20 = scalar_lea.vmem %s5296_s6, %s3163_s17 }
  0x1c   : > { %3766 = vmatpush3.bf16.msra.mxu0 %v4109_v6  ;;  %v505_v17 = vmul.f32 %v3476_v14, %v4386_v10  ;;  %v506_v18 = vmul.f32 %v3477_v15, %v4386_v10  ;;  %v3479_v22 = vld [vmem:[%s4406_s15] sm:$0xff]   ;;  %s518_s22 = scalar_select %p494_p10, 1, 0  ;;  %v3594_v25 = vld [vmem:[%s4406_s15 + $0x8] sm:$0xff]   ;;  %v3595_v26 = vld [vmem:[%s4406_s15 + $0x10] sm:$0xff]  }
  0x1d   : > { %3767 = vmatprep.subr.bf16.mxu0 %v4111_v8  ;;  %3798 = vmatpush3.bf16.msra.mxu1 %v4112_v7  ;;  %v3480_v23 = vunpack.c.l.bf16 %v3479_v22  ;;  %v3481_v24 = vunpack.c.h.bf16 %v3479_v22  ;;  %s3168_s28 = sshll.u32 %s5349_s13, 1  ;;  %v3484_v30 = vunpack.c.l.bf16 %v3594_v25  ;;  %v3485_v31 = vunpack.c.h.bf16 %v3594_v25  ;;  %v3596_v49 = vld [vmem:[%s4406_s15 + $0x18] sm:$0xff]   ;;  %v3597_v55 = vld [vmem:[%s4406_s15 + $0x20] sm:$0xff]   ;;  %p692_p11 = scmp.lt.s32.totalorder %s4222_s27, 1 }
  0x1e   : > { %3799 = vmatprep.subr.bf16.mxu1 %v4114_v9  ;;  %v513_v20 = vadd.f32 %v4391_v11, %v505_v17  ;;  %v514_v21 = vadd.f32 %v4391_v11, %v506_v18  ;;  %s467_s18 = sadd.s32 %s3168_s28, %s4344_s12  ;;  %v519_v33 = vstv %s518_s22  ;;  %v3488_v36 = vunpack.c.l.bf16 %v3595_v26  ;;  %p3421_p12 = scmp.ne.s32.totalorder %s4222_s27, 0 }
  0x1f   : > { %v563_v34 = vmul.f32 %v3480_v23, %v4386_v10  ;;  %v564_v35 = vmul.f32 %v3481_v24, %v4386_v10  ;;  %s3170_s19 = sshll.u32 %s467_s18, 2  ;;  %vm520_vm0 = vcmp.eq.s32.totalorder %v519_v33, 1  ;;  %v565_v38 = vmul.f32 %v3484_v30, %v4386_v10 }
  0x20   : > { %3768 = vmatpush3.bf16.msra.mxu0 %v4111_v8  ;;  %v515_v28 = vmax.f32 %v513_v20, 0.0  ;;  %v516_v29 = vmax.f32 %v514_v21, 0.0  ;;  %v566_v39 = vmul.f32 %v3485_v31, %v4386_v10  ;;  %s469_s12 = scalar_lea.vmem %s5292_s2, %s3170_s19  ;;  %v3489_v42 = vunpack.c.h.bf16 %v3595_v26  ;;  %v3598_v8 = vld [vmem:[%s4406_s15 + $0x28] sm:$0xff]  }
  0x21   : > { %3769 = vmatprep.subr.bf16.mxu0 %v4113_v13  ;;  %3800 = vmatpush3.bf16.msra.mxu1 %v4114_v9  ;;  %v579_v40 = vadd.f32 %v4391_v11, %v563_v34  ;;  %v580_v41 = vadd.f32 %v4391_v11, %v564_v35  ;;  %v567_v43 = vmul.f32 %v3488_v36, %v4386_v10  ;;  %v4454_v52 = vld [vmem:[%s469_s12] sm:$0xff]   ;;  %v3492_v61 = vunpack.c.l.bf16 %v3596_v49  ;;  %v4123_v34 = vld [vmem:[%s5295_s5 + $0xb0] sm:$0xff]   ;;  %s704_s28 = scalar_select %p692_p11, 1, 0 }
  0x22   : > { %3801 = vmatprep.subr.bf16.mxu1 %v4116_v16  ;;  %v517_v37 = vpack.c.bf16 %v516_v29, %v515_v28  ;;  %v581_v47 = vadd.f32 %v4391_v11, %v565_v38  ;;  %v582_v48 = vadd.f32 %v4391_v11, %v566_v39  ;;  %v568_v58 = vmul.f32 %v3489_v42, %v4386_v10 }
  0x23   : > { %v595_v53 = vmax.f32 %v579_v40, 0.0  ;;  %v596_v54 = vmax.f32 %v580_v41, 0.0  ;;  %v583_v59 = vadd.f32 %v4391_v11, %v567_v43  ;;  %v3493_v62 = vunpack.c.h.bf16 %v3596_v49 }
  0x24   : > { %3770 = vmatpush3.bf16.msra.mxu0 %v4113_v13  ;;  %v521_v44 = vsel %vm520_vm0, %v517_v37, 0  ;;  %v597_v56 = vmax.f32 %v581_v47, 0.0  ;;  %v598_v57 = vmax.f32 %v582_v48, 0.0  ;;  %v3496_v63 = vunpack.c.l.bf16 %v3597_v55 }
  0x25   : > { %3771 = vmatprep.subr.bf16.mxu0 %v4115_v19  ;;  %3802 = vmatpush3.bf16.msra.mxu1 %v4116_v16  ;;  %v3177_v50 = vcombine.low %v521_v44, %v521_v44  ;;  %v3178_v51 = vcombine.high %v521_v44, %v521_v44  ;;  %v3513_v60 = vpack.c.bf16 %v596_v54, %v595_v53  ;;  %v599_v3 = vmax.f32 %v583_v59, 0.0  ;;  %v3599_v16 = vld [vmem:[%s4406_s15 + $0x30] sm:$0xff]   ;;  %v4127_v59 = vld [vmem:[%s5295_s5 + $0xa8] sm:$0xff]  }
  0x26   : > { %3803 = vmatprep.subr.bf16.mxu1 %v4118_v27  ;;  %v3518_v1 = vpack.c.bf16 %v598_v57, %v597_v56  ;;  %v584_v2 = vadd.f32 %v4391_v11, %v568_v58  ;;  %v3497_v4 = vunpack.c.h.bf16 %v3597_v55  ;;  %v569_v5 = vmul.f32 %v3492_v61, %v4386_v10 }
  0x27   : > { %529 = vst [vmem:[#allocation2] sm:$0xf] %v3177_v50  ;;  %530 = vst [vmem:[#allocation2 + $0x4] sm:$0xf] %v3178_v51  ;;  %v570_v6 = vmul.f32 %v3493_v62, %v4386_v10  ;;  %v571_v7 = vmul.f32 %v3496_v63, %v4386_v10  ;;  %v3552_v9 = vunpack.c.l.bf16 %v4454_v52  ;;  %v3500_v14 = vunpack.c.l.bf16 %v3598_v8  ;;  %v4128_v62 = vld [vmem:[%s5295_s5 + $0xf0] sm:$0xff]  }
  0x28   : > { %3772 = vmatpush3.bf16.msra.mxu0 %v4115_v19  ;;  %3514 = vst [vmem:[#allocation2 + $0x8] sm:$0xff] %v3513_v60   ;;  %3601 = vst [vmem:[#allocation2 + $0x10] sm:$0xff] %v3518_v1   ;;  %v600_v12 = vmax.f32 %v584_v2, 0.0  ;;  %v572_v13 = vmul.f32 %v3497_v4, %v4386_v10  ;;  %v3501_v15 = vunpack.c.h.bf16 %v3598_v8  ;;  %v585_v17 = vadd.f32 %v4391_v11, %v569_v5  ;;  %v4129_v5 = vld [vmem:[%s5295_s5 + $0xa0] sm:$0xff]  }
  0x29   : > { %3773 = vmatprep.subr.bf16.mxu0 %v4117_v32  ;;  %3804 = vmatpush3.bf16.msra.mxu1 %v4118_v27  ;;  %v586_v18 = vadd.f32 %v4391_v11, %v570_v6  ;;  %v587_v19 = vadd.f32 %v4391_v11, %v571_v7  ;;  %v3504_v20 = vunpack.c.l.bf16 %v3599_v16  ;;  %v573_v23 = vmul.f32 %v3500_v14, %v4386_v10 }
  0x2a   : > { %3805 = vmatprep.subr.bf16.mxu1 %v4122_v46  ;;  %v3523_v21 = vpack.c.bf16 %v600_v12, %v599_v3  ;;  %v588_v22 = vadd.f32 %v4391_v11, %v572_v13  ;;  %v574_v24 = vmul.f32 %v3501_v15, %v4386_v10  ;;  %v601_v25 = vmax.f32 %v585_v17, 0.0 }
  0x2b   : > { %v602_v26 = vmax.f32 %v586_v18, 0.0  ;;  %v603_v27 = vmax.f32 %v587_v19, 0.0  ;;  %v3505_v28 = vunpack.c.h.bf16 %v3599_v16  ;;  %v589_v31 = vadd.f32 %v4391_v11, %v573_v23  ;;  %v4130_v16 = vld [vmem:[%s5295_s5 + $0xe8] sm:$0xff]  }
  0x2c   : > { %3774 = vmatpush3.bf16.msra.mxu0 %v4117_v32  ;;  %3602 = vst [vmem:[#allocation2 + $0x18] sm:$0xff] %v3523_v21   ;;  %v604_v30 = vmax.f32 %v588_v22, 0.0  ;;  %v590_v32 = vadd.f32 %v4391_v11, %v574_v24  ;;  %v575_v33 = vmul.f32 %v3504_v20, %v4386_v10  ;;  %v3553_v37 = vunpack.c.h.bf16 %v4454_v52  ;;  %v4134_v24 = vld [vmem:[%s5295_s5 + $0xe0] sm:$0xff]  }
  0x2d   : > { %3823 = vmatprep.subr.bf16.mxu0 %v4446_v45  ;;  %3806 = vmatpush3.bf16.msra.mxu1 %v4122_v46  ;;  %v3528_v35 = vpack.c.bf16 %v602_v26, %v601_v25  ;;  %v576_v36 = vmul.f32 %v3505_v28, %v4386_v10  ;;  %v697_v38 = vmul.f32 %v3552_v9, %v4386_v10  ;;  %v605_v52 = vmax.f32 %v589_v31, 0.0  ;;  %v4135_v31 = vld [vmem:[%s5295_s5 + $0x90] sm:$0xff]  }
  0x2e   : > { %3855 = vmatprep.subr.bf16.mxu1 %v4462_v0  ;;  %v4480_v29 = vld [vmem:[#allocation2] sm:$0xff]   ;;  %v3533_v41 = vpack.c.bf16 %v604_v30, %v603_v27  ;;  %v591_v42 = vadd.f32 %v4391_v11, %v575_v33  ;;  %v698_v47 = vmul.f32 %v3553_v37, %v4386_v10  ;;  %v606_v56 = vmax.f32 %v590_v32, 0.0 }
  0x2f   : > { %3775 = vmatprep.mubr.bf16.mxu0 %v4480_v29  ;;  %v4492_v39 = vld [vmem:[#allocation2 + $0x8] sm:$0xff]   ;;  %v775_v40 = vshrl.u32 %v4480_v29, 16  ;;  %v778_v43 = vshll.u32 %v4480_v29, 16  ;;  %v4497_v44 = vld [vmem:[#allocation2 + $0x10] sm:$0xff]   ;;  %3603 = vst [vmem:[#allocation2 + $0x20] sm:$0xff] %v3528_v35   ;;  %v592_v46 = vadd.f32 %v4391_v11, %v576_v36  ;;  %v4502_v48 = vadd.f32 %v4391_v11, %v697_v38 }
  0x30   : > { %3776 = vmatmul.mubr.bf16.vlgmr.msra.gmra.mxu0 %v4492_v39  ;;  %v782_v50 = vshrl.u32 %v4492_v39, 16  ;;  %v785_v51 = vshll.u32 %v4492_v39, 16  ;;  %3604 = vst [vmem:[#allocation2 + $0x28] sm:$0xff] %v3533_v41   ;;  %v789_v54 = vshrl.u32 %v4497_v44, 16  ;;  %v792_v55 = vshll.u32 %v4497_v44, 16 }
  0x31   : > { %v777_v49 = vrot.slane %v775_v40, 7  ;;  %3824 = vmatpush3.bf16.msra.mxu0 %v4446_v45  ;;  %3779 = vmatprep.mubr.bf16.mxu0 %v4497_v44  ;;  %v607_v57 = vmax.f32 %v591_v42, 0.0  ;;  %v608_v60 = vmax.f32 %v592_v46, 0.0  ;;  %v3538_v1 = vpack.c.bf16 %v606_v56, %v605_v52  ;;  %v4136_v42 = vld [vmem:[%s5295_s5 + $0xd8] sm:$0xff]   ;;  %v4139_v46 = vld [vmem:[%s5295_s5 + $0x88] sm:$0xff]  }
  0x32   : > { %3825 = vmatprep.subr.bf16.mxu0 %v4123_v34  ;;  %v784_v45 = vrot.slane %v782_v50, 7  ;;  %v791_v63 = vrot.slane %v789_v54, 7  ;;  %v4534_v2 = vadd.f32 %v4391_v11, %v698_v47  ;;  %v849_v33 = vrot.slane %v778_v43, 1 }
  0x33   : > { %v780_v58 = vor.u32 %v778_v43, %v777_v49  ;;  %v4526_v61 = vld [vmem:[#allocation2 + $0x18] sm:$0xff]   ;;  %v3543_v6 = vpack.c.bf16 %v608_v60, %v607_v57  ;;  %3605 = vst [vmem:[#allocation2 + $0x30] sm:$0xff] %v3538_v1   ;;  %v851_v29 = vrot.slane %v785_v51, 1 }
  0x34   : > { %v787_v4 = vor.u32 %v785_v51, %v784_v45  ;;  %v794_v7 = vor.u32 %v792_v55, %v791_v63  ;;  %v796_v8 = vshrl.u32 %v4526_v61, 16  ;;  %v799_v9 = vshll.u32 %v4526_v61, 16  ;;  %v4627_v45 = vld [vmem:[#allocation2 + $0x10] sm:$0xff]   ;;  %v4640_v63 = vld [vmem:[#allocation2 + $0x18] sm:$0xff]  }
  0x35   : > { %v841_v3 = vsel %vm4512_vm3, 0, %v780_v58  ;;  %3826 = vmatpush3.bf16.msra.mxu0 %v4123_v34  ;;  %3606 = vst [vmem:[#allocation2 + $0x38] sm:$0xff] %v3543_v6   ;;  %v4593_v34 = vld [vmem:[#allocation2 + $0x8] sm:$0xff]   ;;  %v850_v47 = vor.u32 %v849_v33, %v775_v40  ;;  %v4140_v40 = vld [vmem:[%s5295_s5 + $0xd0] sm:$0xff]   ;;  %v1460_v39 = vshll.u32 %v4627_v45, 16 }
  0x36   : > { %3807 = vmatprep.mubr.bf16.mxu1 %v841_v3  ;;  %v842_v12 = vsel %vm4512_vm3, 0, %v787_v4  ;;  %3827 = vmatprep.subr.bf16.mxu0 %v4127_v59  ;;  %v4549_v13 = vld [vmem:[#allocation2 + $0x20] sm:$0xff]   ;;  %v843_v14 = vsel %vm4512_vm3, 0, %v794_v7  ;;  %v798_v15 = vrot.slane %v796_v8, 7  ;;  %v1450_v49 = vshrl.u32 %v4593_v34, 16  ;;  %v4142_v6 = vld [vmem:[%s5295_s5 + $0xc8] sm:$0xff]  }
  0x37   : > { %3808 = vmatmul.mubr.bf16.vlgmr.msra.gmra.mxu1 %v842_v12  ;;  %v4560_v17 = vld [vmem:[#allocation2 + $0x28] sm:$0xff]   ;;  %v803_v18 = vshrl.u32 %v4549_v13, 16  ;;  %v806_v19 = vshll.u32 %v4549_v13, 16  ;;  %v876_v60 = vsel %vm4609_vm6, %v850_v47, 0  ;;  %v853_v4 = vrot.slane %v792_v55, 1  ;;  %v4143_v55 = vld [vmem:[%s5295_s5 + $0x138] sm:$0xff]  }
  0x38   : > { %3856 = vmatpush3.bf16.msra.mxu1 %v4462_v0  ;;  %3780 = vmatmul.mubr.bf16.gmra.mxu0 %v4526_v61  ;;  %v801_v20 = vor.u32 %v799_v9, %v798_v15  ;;  %v4133_v0 = vld [vmem:[%s5295_s5 + $0x98] sm:$0xff]   ;;  %v810_v22 = vshrl.u32 %v4560_v17, 16  ;;  %v813_v25 = vshll.u32 %v4560_v17, 16  ;;  %v1452_v1 = vrot.slane %v1450_v49, 7  ;;  %v4663_v15 = vld [vmem:[#allocation2 + $0x20] sm:$0xff]   ;;  %v4693_v33 = vld [vmem:[#allocation2 + $0x28] sm:$0xff]  }
  0x39   : > { %3828 = vmatpush3.bf16.msra.mxu0 %v4127_v59  ;;  %3857 = vmatprep.subr.bf16.mxu1 %v4128_v62  ;;  %v805_v21 = vrot.slane %v803_v18, 7  ;;  %v4141_v59 = vld [vmem:[%s5295_s5 + $0x80] sm:$0xff]   ;;  %v852_v7 = vor.u32 %v851_v29, %v782_v50  ;;  %v855_v12 = vrot.slane %v799_v9, 1  ;;  %v854_v9 = vor.u32 %v853_v4, %v789_v54 }
  0x3a   : > { %3829 = vmatprep.subr.bf16.mxu0 %v4129_v5  ;;  %3811 = vmatprep.mubr.bf16.mxu1 %v843_v14  ;;  %v844_v23 = vsel %vm4512_vm3, 0, %v801_v20  ;;  %v4581_v27 = vld [vmem:[#allocation2 + $0x30] sm:$0xff]   ;;  %v812_v28 = vrot.slane %v810_v22, 7  ;;  %v1464_v14 = vshrl.u32 %v4640_v63, 16  ;;  %v1467_v54 = vshll.u32 %v4640_v63, 16  ;;  %v4151_v29 = vld [vmem:[%s5295_s5 + $0x120] sm:$0xff]  }
  0x3b   : > { %3783 = vmatprep.mubr.bf16.mxu0 %v4549_v13  ;;  %v808_v26 = vor.u32 %v806_v19, %v805_v21  ;;  %v817_v32 = vshrl.u32 %v4581_v27, 16  ;;  %v820_v36 = vshll.u32 %v4581_v27, 16  ;;  %v4144_v21 = vld [vmem:[%s5295_s5 + $0xc0] sm:$0xff]   ;;  %v856_v44 = vor.u32 %v855_v12, %v796_v8 }
  0x3c   : > { %3858 = vmatpush3.bf16.msra.mxu1 %v4128_v62  ;;  %v4585_v30 = vld [vmem:[#allocation2 + $0x38] sm:$0xff]   ;;  %v815_v37 = vor.u32 %v813_v25, %v812_v28  ;;  %v1453_v62 = vshll.u32 %v4593_v34, 16  ;;  %v878_v61 = vsel %vm4609_vm6, %v854_v9, 0  ;;  %v1474_v47 = vshll.u32 %v4663_v15, 16 }
  0x3d   : > { %3830 = vmatpush3.bf16.msra.mxu0 %v4129_v5  ;;  %3859 = vmatprep.subr.bf16.mxu1 %v4130_v16  ;;  %v845_v35 = vsel %vm4512_vm3, 0, %v808_v26  ;;  %v819_v38 = vrot.slane %v817_v32, 7  ;;  %v824_v41 = vshrl.u32 %v4585_v30, 16  ;;  %v827_v58 = vshll.u32 %v4585_v30, 16  ;;  %v4738_v12 = vld [vmem:[#allocation2 + $0x38] sm:$0xff]  }
  0x3e   : > { %3831 = vmatprep.subr.bf16.mxu0 %v4133_v0  ;;  %v846_v56 = vsel %vm4512_vm3, 0, %v815_v37  ;;  %v1457_v5 = vshrl.u32 %v4627_v45, 16  ;;  %v1471_v26 = vshrl.u32 %v4663_v15, 16  ;;  %v879_v37 = vsel %vm4609_vm6, %v856_v44, 0 }
  0x3f   : > { %3812 = vmatmul.mubr.bf16.gmra.mxu1 %v844_v23  ;;  %v822_v52 = vor.u32 %v820_v36, %v819_v38  ;;  %v826_v57 = vrot.slane %v824_v41, 7  ;;  %v4145_v23 = vld [vmem:[%s5295_s5 + $0x130] sm:$0xff]   ;;  %v4149_v38 = vld [vmem:[%s5295_s5 + $0x128] sm:$0xff]  }
  0x40   : > { %3860 = vmatpush3.bf16.msra.mxu1 %v4130_v16  ;;  %3784 = vmatmul.mubr.bf16.gmra.mxu0 %v4560_v17  ;;  %v1455_v16 = vor.u32 %v1453_v62, %v1452_v1  ;;  %v1459_v20 = vrot.slane %v1457_v5, 7  ;;  %v859_v1 = vrot.slane %v813_v25, 1 }
  0x41   : > { %3832 = vmatpush3.bf16.msra.mxu0 %v4133_v0  ;;  %3861 = vmatprep.subr.bf16.mxu1 %v4134_v24  ;;  %v847_v51 = vsel %vm4512_vm3, 0, %v822_v52  ;;  %v829_v3 = vor.u32 %v827_v58, %v826_v57  ;;  %v877_v0 = vsel %vm4609_vm6, %v852_v7, 0  ;;  %v1478_v52 = vshrl.u32 %v4693_v33, 16 }
  0x42   : > { %3833 = vmatprep.subr.bf16.mxu0 %v4135_v31  ;;  %3815 = vmatprep.mubr.bf16.mxu1 %v845_v35  ;;  %v1513_v28 = vsel %vm4512_vm3, 0, %v1455_v16  ;;  %v1462_v8 = vor.u32 %v1460_v39, %v1459_v20  ;;  %v857_v35 = vrot.slane %v806_v19, 1  ;;  %v4150_v19 = vld [vmem:[%s5295_s5 + $0x170] sm:$0xff]   ;;  %v860_v9 = vor.u32 %v859_v1, %v810_v22  ;;  %v4155_v20 = vld [vmem:[%s5295_s5 + $0x118] sm:$0xff]  }
  0x43   : > { %3787 = vmatprep.mubr.bf16.mxu0 %v4581_v27  ;;  %v848_v50 = vsel %vm4512_vm3, 0, %v829_v3  ;;  %v861_v3 = vrot.slane %v820_v36, 1  ;;  %v1480_v25 = vrot.slane %v1478_v52, 7  ;;  %v1492_v22 = vshrl.u32 %v4738_v12, 16  ;;  %v4157_v27 = vld [vmem:[%s5295_s5 + $0x110] sm:$0xff]  }
  0x44   : > { %3862 = vmatpush3.bf16.msra.mxu1 %v4134_v24  ;;  %v1466_v24 = vrot.slane %v1464_v14, 7  ;;  %v1514_v57 = vsel %vm4512_vm3, 0, %v1462_v8  ;;  %v863_v8 = vrot.slane %v827_v58, 1 }
  0x45   : > { %3834 = vmatpush3.bf16.msra.mxu0 %v4135_v31  ;;  %3863 = vmatprep.subr.bf16.mxu1 %v4136_v42  ;;  %v4147_v31 = vld [vmem:[%s5295_s5 + $0x178] sm:$0xff]   ;;  %v862_v44 = vor.u32 %v861_v3, %v817_v32  ;;  %v1495_v32 = vshll.u32 %v4738_v12, 16  ;;  %v1521_v3 = vrot.slane %v1453_v62, 1  ;;  %v702_v62 = vmax.f32 %v4534_v2, 0.0 }
  0x46   : > { %3835 = vmatprep.subr.bf16.mxu0 %v4139_v46 }
  0x47   : > { %3816 = vmatmul.mubr.bf16.gmra.mxu1 %v846_v56  ;;  %v3600_v56 = vld [vmem:[%s4406_s15 + $0x38] sm:$0xff]   ;;  %v882_v58 = vsel %vm4609_vm6, %v862_v44, 0 }
  0x48   : > { %3864 = vmatpush3.bf16.msra.mxu1 %v4136_v42  ;;  %3788 = vmatmul.mubr.bf16.gmra.mxu0 %v4585_v30  ;;  %v1469_v42 = vor.u32 %v1467_v54, %v1466_v24  ;;  %v4162_v30 = vld [vmem:[%s5295_s5 + $0x150] sm:$0xff]  }
  0x49   : > { %3836 = vmatpush3.bf16.msra.mxu0 %v4139_v46  ;;  %3865 = vmatprep.subr.bf16.mxu1 %v4140_v40  ;;  %v1473_v46 = vrot.slane %v1471_v26, 7 }
  0x4a   : > { %3837 = vmatprep.subr.bf16.mxu0 %v4141_v59  ;;  %3819 = vmatprep.mubr.bf16.mxu1 %v847_v51  ;;  %v3509_v51 = vunpack.c.h.bf16 %v3600_v56  ;;  %v1515_v4 = vsel %vm4512_vm3, 0, %v1469_v42  ;;  %v4159_v42 = vld [vmem:[%s5295_s5 + $0x158] sm:$0xff]  }
  0x4b   : > { %3839 = vmatprep.mubr.bf16.mxu0 %v876_v60  ;;  %v3508_v60 = vunpack.c.l.bf16 %v3600_v56  ;;  %v1476_v7 = vor.u32 %v1474_v47, %v1473_v46  ;;  %v864_v46 = vor.u32 %v863_v8, %v824_v41 }
  0x4c   : > { %3866 = vmatpush3.bf16.msra.mxu1 %v4140_v40  ;;  %v858_v40 = vor.u32 %v857_v35, %v803_v18  ;;  %v578_v18 = vmul.f32 %v3509_v51, %v4386_v10 }
  0x4d   : > { %3838 = vmatpush3.bf16.msra.mxu0 %v4141_v59  ;;  %3867 = vmatprep.subr.bf16.mxu1 %v4142_v6  ;;  %v4723_v59 = vld [vmem:[#allocation2 + $0x30] sm:$0xff]   ;;  %v577_v13 = vmul.f32 %v3508_v60, %v4386_v10  ;;  %v883_v41 = vsel %vm4609_vm6, %v864_v46, 0  ;;  %v4178_v46 = vld [vmem:[%s5295_s5 + $0x1d8] sm:$0xff]  }
  0x4e   : > { %3887 = vmatprep.subr.bf16.mxu0 %v4143_v55  ;;  %v880_v36 = vsel %vm4609_vm6, %v858_v40, 0  ;;  %v594_v10 = vadd.f32 %v4391_v11, %v578_v18  ;;  %v4163_v40 = vld [vmem:[%s5295_s5 + $0x100] sm:$0xff]  }
  0x4f   : > { %3820 = vmatmul.mubr.bf16.gmra.mxu1 %v848_v50  ;;  %v593_v16 = vadd.f32 %v4391_v11, %v577_v13  ;;  %v4153_v50 = vld [vmem:[%s5295_s5 + $0x168] sm:$0xff]   ;;  %v1516_v11 = vsel %vm4512_vm3, 0, %v1476_v7  ;;  %v4167_v7 = vld [vmem:[%s5295_s5 + $0x1b8] sm:$0xff]  }
  0x50   : > { %3868 = vmatpush3.bf16.msra.mxu1 %v4142_v6  ;;  %3840 = vmatmul.mubr.bf16.vlgmr.msra.gmra.mxu0 %v877_v0  ;;  %v1481_v6 = vshll.u32 %v4693_v33, 16  ;;  %v4165_v13 = vld [vmem:[%s5295_s5 + $0x148] sm:$0xff]  }
  0x51   : > { %3888 = vmatpush3.bf16.msra.mxu0 %v4143_v55  ;;  %3869 = vmatprep.subr.bf16.mxu1 %v4144_v21  ;;  %v1485_v55 = vshrl.u32 %v4723_v59, 16  ;;  %v609_v0 = vmax.f32 %v593_v16, 0.0 }
  0x52   : > { %3889 = vmatprep.subr.bf16.mxu0 %v4145_v23  ;;  %3871 = vmatprep.mubr.bf16.mxu1 %v1513_v28  ;;  %v1483_v17 = vor.u32 %v1481_v6, %v1480_v25  ;;  %v1488_v28 = vshll.u32 %v4723_v59, 16  ;;  %v1522_v25 = vor.u32 %v1521_v3, %v1450_v49  ;;  %v1525_v49 = vrot.slane %v1467_v54, 1  ;;  %v4171_v54 = vld [vmem:[%s5295_s5 + $0x1a8] sm:$0xff]  }
  0x53   : > { %3843 = vmatprep.mubr.bf16.mxu0 %v878_v61  ;;  %v1487_v24 = vrot.slane %v1485_v55, 7  ;;  %v881_v61 = vsel %vm4609_vm6, %v860_v9, 0  ;;  %v705_v9 = vstv %s704_s28 }
  0x54   : > { %3870 = vmatpush3.bf16.msra.mxu1 %v4144_v21  ;;  %v610_v21 = vmax.f32 %v594_v10, 0.0  ;;  %v1517_v35 = vsel %vm4512_vm3, 0, %v1483_v17  ;;  %v4168_v10 = vld [vmem:[%s5295_s5 + $0x140] sm:$0xff]   ;;  %vm706_vm7 = vcmp.eq.s32.totalorder %v705_v9, 1 }
  0x55   : > { %3890 = vmatpush3.bf16.msra.mxu0 %v4145_v23  ;;  %3919 = vmatprep.subr.bf16.mxu1 %v4147_v31  ;;  %v4156_v23 = vld [vmem:[%s5295_s5 + $0x160] sm:$0xff]  }
  0x56   : > { %3891 = vmatprep.subr.bf16.mxu0 %v4149_v38 }
  0x57   : > { %3872 = vmatmul.mubr.bf16.vlgmr.msra.gmra.mxu1 %v1514_v57 }
  0x58   : > { %3920 = vmatpush3.bf16.msra.mxu1 %v4147_v31  ;;  %3844 = vmatmul.mubr.bf16.gmra.mxu0 %v879_v37  ;;  %v3548_v31 = vpack.c.bf16 %v610_v21, %v609_v0  ;;  %v1494_v37 = vrot.slane %v1492_v22, 7  ;;  %v1526_v0 = vor.u32 %v1525_v49, %v1464_v14  ;;  %v4172_v21 = vld [vmem:[%s5295_s5 + $0x1f0] sm:$0xff]   ;;  %v4173_v14 = vld [vmem:[%s5295_s5 + $0x1a0] sm:$0xff]  }
  0x59   : > { %3892 = vmatpush3.bf16.msra.mxu0 %v4149_v38  ;;  %3921 = vmatprep.subr.bf16.mxu1 %v4150_v19  ;;  %v1490_v38 = vor.u32 %v1488_v28, %v1487_v24  ;;  %v4871_v24 = vld [vmem:[#allocation2 + $0x10] sm:$0xff]  }
  0x5a   : > { %3893 = vmatprep.subr.bf16.mxu0 %v4151_v29  ;;  %3875 = vmatprep.mubr.bf16.mxu1 %v1515_v4  ;;  %3607 = vst [vmem:[#allocation2 + $0x40] sm:$0xff] %v3548_v31   ;;  %v1497_v56 = vor.u32 %v1495_v32, %v1494_v37  ;;  %v701_v4 = vmax.f32 %v4502_v48, 0.0  ;;  %v4174_v31 = vld [vmem:[%s5295_s5 + $0x1e8] sm:$0xff]   ;;  %v2153_v8 = vshrl.u32 %v4871_v24, 16  ;;  %v2156_v37 = vshll.u32 %v4871_v24, 16 }
  0x5b   : > { %3847 = vmatprep.mubr.bf16.mxu0 %v880_v36  ;;  %v1518_v57 = vsel %vm4512_vm3, 0, %v1490_v38  ;;  %v1523_v36 = vrot.slane %v1460_v39, 1  ;;  %v1545_v39 = vsel %vm4609_vm6, %v1522_v25, 0 }
  0x5c   : > { %3922 = vmatpush3.bf16.msra.mxu1 %v4150_v19  ;;  %v4161_v19 = vld [vmem:[%s5295_s5 + $0x108] sm:$0xff]   ;;  %v1519_v60 = vsel %vm4512_vm3, 0, %v1497_v56  ;;  %v703_v16 = vpack.c.bf16 %v702_v62, %v701_v4  ;;  %v2155_v38 = vrot.slane %v2153_v8, 7 }
  0x5d   : > { %3894 = vmatpush3.bf16.msra.mxu0 %v4151_v29  ;;  %3923 = vmatprep.subr.bf16.mxu1 %v4153_v50  ;;  %v4182_v62 = vld [vmem:[%s5295_s5 + $0x1c8] sm:$0xff]  }
  0x5e   : > { %3895 = vmatprep.subr.bf16.mxu0 %v4155_v20 }
  0x5f   : > { %3876 = vmatmul.mubr.bf16.gmra.mxu1 %v1516_v11  ;;  %v1529_v11 = vrot.slane %v1481_v6, 1  ;;  %v4175_v6 = vld [vmem:[%s5295_s5 + $0x198] sm:$0xff]  }
  0x60   : > { %3924 = vmatpush3.bf16.msra.mxu1 %v4153_v50  ;;  %3848 = vmatmul.mubr.bf16.gmra.mxu0 %v881_v61  ;;  %v1524_v50 = vor.u32 %v1523_v36, %v1457_v5  ;;  %v1527_v5 = vrot.slane %v1474_v47, 1  ;;  %v1531_v61 = vrot.slane %v1488_v28, 1  ;;  %v1533_v28 = vrot.slane %v1495_v32, 1 }
  0x61   : > { %3896 = vmatpush3.bf16.msra.mxu0 %v4155_v20  ;;  %3925 = vmatprep.subr.bf16.mxu1 %v4156_v23  ;;  %v4799_v29 = vld [vmem:[#allocation2 + $0x40] sm:$0xff]   ;;  %v4170_v20 = vld [vmem:[%s5295_s5 + $0x1f8] sm:$0xff]  }
  0x62   : > { %3897 = vmatprep.subr.bf16.mxu0 %v4157_v27  ;;  %3879 = vmatprep.mubr.bf16.mxu1 %v1517_v35  ;;  %v1499_v51 = vshrl.u32 %v4799_v29, 16  ;;  %v1502_v1 = vshll.u32 %v4799_v29, 16  ;;  %v1528_v44 = vor.u32 %v1527_v5, %v1471_v26  ;;  %v4890_v35 = vld [vmem:[#allocation2 + $0x18] sm:$0xff]  }
  0x63   : > { %3851 = vmatprep.mubr.bf16.mxu0 %v882_v58  ;;  %v1532_v58 = vor.u32 %v1531_v61, %v1485_v55  ;;  %v2160_v32 = vshrl.u32 %v4890_v35, 16  ;;  %v1534_v55 = vor.u32 %v1533_v28, %v1492_v22  ;;  %v2163_v22 = vshll.u32 %v4890_v35, 16 }
  0x64   : > { %3926 = vmatpush3.bf16.msra.mxu1 %v4156_v23  ;;  %v1501_v18 = vrot.slane %v1499_v51, 7  ;;  %v707_v23 = vsel %vm706_vm7, %v703_v16, 0  ;;  %v1548_v26 = vsel %vm4609_vm6, %v1528_v44, 0  ;;  %v1535_v56 = vrot.slane %v1502_v1, 1  ;;  %v4191_v44 = vld [vmem:[%s5295_s5 + $0x220] sm:$0xff]  }
  0x65   : > { %3898 = vmatpush3.bf16.msra.mxu0 %v4157_v27  ;;  %3927 = vmatprep.subr.bf16.mxu1 %v4159_v42  ;;  %v3195_v47 = vcombine.low %v707_v23, %v707_v23  ;;  %v3196_v17 = vcombine.high %v707_v23, %v707_v23  ;;  %v4176_v27 = vld [vmem:[%s5295_s5 + $0x1e0] sm:$0xff]  }
  0x66   : > { %3899 = vmatprep.subr.bf16.mxu0 %v4161_v19  ;;  %v1504_v48 = vor.u32 %v1502_v1, %v1501_v18  ;;  %v1551_v1 = vsel %vm4609_vm6, %v1534_v55, 0  ;;  %v1536_v3 = vor.u32 %v1535_v56, %v1499_v51 }
  0x67   : > { %3880 = vmatmul.mubr.bf16.gmra.mxu1 %v1518_v57  ;;  %716 = vst [vmem:[#allocation2 + $0x48] sm:$0xf] %v3195_v47  ;;  %717 = vst [vmem:[#allocation2 + $0x4c] sm:$0xf] %v3196_v17  ;;  %v2158_v57 = vor.u32 %v2156_v37, %v2155_v38  ;;  %v4195_v38 = vld [vmem:[%s5295_s5 + $0x210] sm:$0xff]  }
  0x68   : > { %3928 = vmatpush3.bf16.msra.mxu1 %v4159_v42  ;;  %3852 = vmatmul.mubr.bf16.gmra.mxu0 %v883_v41  ;;  %v1520_v2 = vsel %vm4512_vm3, 0, %v1504_v48  ;;  %v4905_v42 = vld [vmem:[#allocation2 + $0x20] sm:$0xff]   ;;  %v4180_v41 = vld [vmem:[%s5295_s5 + $0x1d0] sm:$0xff]   ;;  %v4185_v48 = vld [vmem:[%s5295_s5 + $0x238] sm:$0xff]   ;;  %v1552_v25 = vsel %vm4609_vm6, %v1536_v3, 0 }
  0x69   : > { %3900 = vmatpush3.bf16.msra.mxu0 %v4161_v19  ;;  %3929 = vmatprep.subr.bf16.mxu1 %v4162_v30  ;;  %v1550_v19 = vsel %vm4609_vm6, %v1532_v58, 0  ;;  %v2216_v4 = vsel %vm4512_vm3, 0, %v2158_v57  ;;  %v2170_v18 = vshll.u32 %v4905_v42, 16  ;;  %v2226_v57 = vrot.slane %v2163_v22, 1 }
  0x6a   : > { %3901 = vmatprep.subr.bf16.mxu0 %v4163_v40  ;;  %3883 = vmatprep.mubr.bf16.mxu1 %v1519_v60  ;;  %v4181_v60 = vld [vmem:[%s5295_s5 + $0x180] sm:$0xff]  }
  0x6b   : > { %3903 = vmatprep.mubr.bf16.mxu0 %v4593_v34  ;;  %v4169_v34 = vld [vmem:[%s5295_s5 + $0x1b0] sm:$0xff]  }
  0x6c   : > { %3930 = vmatpush3.bf16.msra.mxu1 %v4162_v30  ;;  %v2167_v30 = vshrl.u32 %v4905_v42, 16 }
  0x6d   : > { %3902 = vmatpush3.bf16.msra.mxu0 %v4163_v40  ;;  %3931 = vmatprep.subr.bf16.mxu1 %v4165_v13  ;;  %v4930_v40 = vld [vmem:[#allocation2 + $0x28] sm:$0xff]  }
  0x6e   : > { %3951 = vmatprep.subr.bf16.mxu0 %v4167_v7  ;;  %v2174_v51 = vshrl.u32 %v4930_v40, 16  ;;  %v2177_v49 = vshll.u32 %v4930_v40, 16  ;;  %v4996_v17 = vld [vmem:[#allocation2 + $0x48] sm:$0xff]  }
  0x6f   : > { %3884 = vmatmul.mubr.bf16.gmra.mxu1 %v1520_v2  ;;  %v2202_v61 = vshrl.u32 %v4996_v17, 16  ;;  %v2205_v58 = vshll.u32 %v4996_v17, 16 }
  0x70   : > { %3932 = vmatpush3.bf16.msra.mxu1 %v4165_v13  ;;  %3904 = vmatmul.mubr.bf16.vlgmr.msra.gmra.mxu0 %v4627_v45  ;;  %v1546_v45 = vsel %vm4609_vm6, %v1524_v50, 0  ;;  %v2169_v13 = vrot.slane %v2167_v30, 7  ;;  %v4187_v50 = vld [vmem:[%s5295_s5 + $0x230] sm:$0xff]  }
  0x71   : > { %3952 = vmatpush3.bf16.msra.mxu0 %v4167_v7  ;;  %3933 = vmatprep.subr.bf16.mxu1 %v4168_v10  ;;  %v4945_v7 = vld [vmem:[#allocation2 + $0x30] sm:$0xff]   ;;  %v2204_v28 = vrot.slane %v2202_v61, 7 }
  0x72   : > { %3953 = vmatprep.subr.bf16.mxu0 %v4169_v34  ;;  %3935 = vmatprep.mubr.bf16.mxu1 %v1545_v39  ;;  %v2172_v36 = vor.u32 %v2170_v18, %v2169_v13  ;;  %v2181_v16 = vshrl.u32 %v4945_v7, 16  ;;  %v4969_v39 = vld [vmem:[#allocation2 + $0x38] sm:$0xff]  }
  0x73   : > { %3907 = vmatprep.mubr.bf16.mxu0 %v4640_v63  ;;  %v1547_v63 = vsel %vm4609_vm6, %v1526_v0, 0  ;;  %v4979_v0 = vld [vmem:[#allocation2 + $0x40] sm:$0xff]   ;;  %v2188_v5 = vshrl.u32 %v4969_v39, 16  ;;  %v2191_v47 = vshll.u32 %v4969_v39, 16  ;;  %v2207_v55 = vor.u32 %v2205_v58, %v2204_v28 }
  0x74   : > { %3934 = vmatpush3.bf16.msra.mxu1 %v4168_v10  ;;  %v4186_v10 = vld [vmem:[%s5295_s5 + $0x1c0] sm:$0xff]   ;;  %v2218_v9 = vsel %vm4512_vm3, 0, %v2172_v36 }
  0x75   : > { %3954 = vmatpush3.bf16.msra.mxu0 %v4169_v34  ;;  %3983 = vmatprep.subr.bf16.mxu1 %v4170_v20  ;;  %v2176_v34 = vrot.slane %v2174_v51, 7  ;;  %v2190_v23 = vrot.slane %v2188_v5, 7 }
  0x76   : > { %3955 = vmatprep.subr.bf16.mxu0 %v4171_v54 }
  0x77   : > { %3936 = vmatmul.mubr.bf16.vlgmr.msra.gmra.mxu1 %v1546_v45  ;;  %v2179_v45 = vor.u32 %v2177_v49, %v2176_v34 }
  0x78   : > { %3984 = vmatpush3.bf16.msra.mxu1 %v4170_v20  ;;  %3908 = vmatmul.mubr.bf16.gmra.mxu0 %v4663_v15  ;;  %v1530_v15 = vor.u32 %v1529_v11, %v1478_v52  ;;  %v2183_v20 = vrot.slane %v2181_v16, 7 }
  0x79   : > { %3956 = vmatpush3.bf16.msra.mxu0 %v4171_v54  ;;  %3985 = vmatprep.subr.bf16.mxu1 %v4172_v21  ;;  %v2184_v54 = vshll.u32 %v4945_v7, 16  ;;  %v2219_v11 = vsel %vm4512_vm3, 0, %v2179_v45 }
  0x7a   : > { %3957 = vmatprep.subr.bf16.mxu0 %v4173_v14  ;;  %3939 = vmatprep.mubr.bf16.mxu1 %v1547_v63  ;;  %v1549_v52 = vsel %vm4609_vm6, %v1530_v15, 0  ;;  %v2195_v63 = vshrl.u32 %v4979_v0, 16  ;;  %v2198_v15 = vshll.u32 %v4979_v0, 16 }
  0x7b   : > { %3911 = vmatprep.mubr.bf16.mxu0 %v4693_v33  ;;  %v4177_v33 = vld [vmem:[%s5295_s5 + $0x190] sm:$0xff]  }
  0x7c   : > { %3986 = vmatpush3.bf16.msra.mxu1 %v4172_v21  ;;  %v4190_v21 = vld [vmem:[%s5295_s5 + $0x228] sm:$0xff]  }
  0x7d   : > { %3958 = vmatpush3.bf16.msra.mxu0 %v4173_v14  ;;  %3987 = vmatprep.subr.bf16.mxu1 %v4174_v31  ;;  %v2186_v14 = vor.u32 %v2184_v54, %v2183_v20 }
  0x7e   : > { %3959 = vmatprep.subr.bf16.mxu0 %v4175_v6 }
  0x7f   : > { %3940 = vmatmul.mubr.bf16.gmra.mxu1 %v1548_v26  ;;  %v2193_v26 = vor.u32 %v2191_v47, %v2190_v23 }
  0x80   : > { %3988 = vmatpush3.bf16.msra.mxu1 %v4174_v31  ;;  %3912 = vmatmul.mubr.bf16.gmra.mxu0 %v4723_v59  ;;  %v4179_v59 = vld [vmem:[%s5295_s5 + $0x188] sm:$0xff]   ;;  %v2220_v31 = vsel %vm4512_vm3, 0, %v2186_v14 }
  0x81   : > { %3960 = vmatpush3.bf16.msra.mxu0 %v4175_v6  ;;  %3989 = vmatprep.subr.bf16.mxu1 %v4176_v27  ;;  %v2197_v6 = vrot.slane %v2195_v63, 7 }
  0x82   : > { %3961 = vmatprep.subr.bf16.mxu0 %v4177_v33  ;;  %3943 = vmatprep.mubr.bf16.mxu1 %v1549_v52  ;;  %v2221_v52 = vsel %vm4512_vm3, 0, %v2193_v26 }
  0x83   : > { %3915 = vmatprep.mubr.bf16.mxu0 %v4738_v12  ;;  %v2162_v12 = vrot.slane %v2160_v32, 7 }
  0x84   : > { %3990 = vmatpush3.bf16.msra.mxu1 %v4176_v27  ;;  %v4194_v27 = vld [vmem:[%s5295_s5 + $0x218] sm:$0xff]  }
  0x85   : > { %3962 = vmatpush3.bf16.msra.mxu0 %v4177_v33  ;;  %3991 = vmatprep.subr.bf16.mxu1 %v4178_v46  ;;  %v2200_v33 = vor.u32 %v2198_v15, %v2197_v6 }
  0x86   : > { %3963 = vmatprep.subr.bf16.mxu0 %v4179_v59 }
  0x87   : > { %3944 = vmatmul.mubr.bf16.gmra.mxu1 %v1550_v19  ;;  %v4198_v19 = vld [vmem:[%s5295_s5 + $0x208] sm:$0xff]  }
  0x88   : > { %3992 = vmatpush3.bf16.msra.mxu1 %v4178_v46  ;;  %3916 = vmatmul.mubr.bf16.gmra.mxu0 %v4799_v29  ;;  %v2165_v29 = vor.u32 %v2163_v22, %v2162_v12  ;;  %v2222_v46 = vsel %vm4512_vm3, 0, %v2200_v33  ;;  %v2232_v12 = vrot.slane %v2184_v54, 1 }
  0x89   : > { %3964 = vmatpush3.bf16.msra.mxu0 %v4179_v59  ;;  %3993 = vmatprep.subr.bf16.mxu1 %v4180_v41  ;;  %v2224_v59 = vrot.slane %v2156_v37, 1  ;;  %v2223_v37 = vsel %vm4512_vm3, 0, %v2207_v55 }
  0x8a   : > { %3965 = vmatprep.subr.bf16.mxu0 %v4181_v60  ;;  %3947 = vmatprep.mubr.bf16.mxu1 %v1551_v1  ;;  %v2217_v2 = vsel %vm4512_vm3, 0, %v2165_v29  ;;  %v2233_v22 = vor.u32 %v2232_v12, %v2181_v16  ;;  %v2234_v1 = vrot.slane %v2191_v47, 1 }
  0x8b   : > { %3967 = vmatprep.mubr.bf16.mxu0 %v2216_v4  ;;  %v2225_v56 = vor.u32 %v2224_v59, %v2153_v8  ;;  %v2227_v8 = vor.u32 %v2226_v57, %v2160_v32  ;;  %v2236_v32 = vrot.slane %v2198_v15, 1 }
  0x8c   : > { %3994 = vmatpush3.bf16.msra.mxu1 %v4180_v41  ;;  %v4199_v41 = vld [vmem:[%s5295_s5 + $0x200] sm:$0xff]   ;;  %v2252_v4 = vsel %vm4609_vm6, %v2233_v22, 0 }
  0x8d   : > { %3966 = vmatpush3.bf16.msra.mxu0 %v4181_v60  ;;  %3995 = vmatprep.subr.bf16.mxu1 %v4182_v62  ;;  %v2248_v53 = vsel %vm4609_vm6, %v2225_v56, 0  ;;  %v2249_v3 = vsel %vm4609_vm6, %v2227_v8, 0 }
  0x8e   : > { %4015 = vmatprep.subr.bf16.mxu0 %v4185_v48 }
  0x8f   : > { %3948 = vmatmul.mubr.bf16.gmra.mxu1 %v1552_v25 }
  0x90   : > { %3996 = vmatpush3.bf16.msra.mxu1 %v4182_v62  ;;  %3968 = vmatmul.mubr.bf16.vlgmr.msra.gmra.mxu0 %v2217_v2  ;;  %v2238_v62 = vrot.slane %v2205_v58, 1 }
  0x91   : > { %4016 = vmatpush3.bf16.msra.mxu0 %v4185_v48  ;;  %3997 = vmatprep.subr.bf16.mxu1 %v4186_v10 }
  0x92   : > { %4017 = vmatprep.subr.bf16.mxu0 %v4187_v50  ;;  %3999 = vmatprep.mubr.bf16.mxu1 %v4871_v24  ;;  %v2228_v24 = vrot.slane %v2170_v18, 1  ;;  %v2237_v18 = vor.u32 %v2236_v32, %v2195_v63 }
  0x93   : > { %3971 = vmatprep.mubr.bf16.mxu0 %v2218_v9 }
  0x94   : > { %3998 = vmatpush3.bf16.msra.mxu1 %v4186_v10  ;;  %v2229_v60 = vor.u32 %v2228_v24, %v2167_v30  ;;  %v2235_v30 = vor.u32 %v2234_v1, %v2188_v5 }
  0x95   : > { %4018 = vmatpush3.bf16.msra.mxu0 %v4187_v50  ;;  %4047 = vmatprep.subr.bf16.mxu1 %v4185_v48 }
  0x96   : > { %4019 = vmatprep.subr.bf16.mxu0 %v4190_v21 }
  0x97   : > { %4000 = vmatmul.mubr.bf16.vlgmr.msra.gmra.mxu1 %v4890_v35  ;;  %v2230_v35 = vrot.slane %v2177_v49, 1 }
  0x98   : > { %4055 = vmatpush3.bf16.msra.mxu1 %v4185_v48  ;;  %3972 = vmatmul.mubr.bf16.gmra.mxu0 %v2219_v11  ;;  %v2254_v48 = vsel %vm4609_vm6, %v2237_v18, 0 }
  0x99   : > { %4020 = vmatpush3.bf16.msra.mxu0 %v4190_v21  ;;  %4048 = vmatprep.subr.bf16.mxu1 %v4187_v50  ;;  %v2231_v13 = vor.u32 %v2230_v35, %v2174_v51 }
  0x9a   : > { %4021 = vmatprep.subr.bf16.mxu0 %v4191_v44  ;;  %4003 = vmatprep.mubr.bf16.mxu1 %v4905_v42  ;;  %v2250_v42 = vsel %vm4609_vm6, %v2229_v60, 0 }
  0x9b   : > { %3975 = vmatprep.mubr.bf16.mxu0 %v2220_v31  ;;  %v2251_v29 = vsel %vm4609_vm6, %v2231_v13, 0 }
  0x9c   : > { %4056 = vmatpush3.bf16.msra.mxu1 %v4187_v50 }
  0x9d   : > { %4022 = vmatpush3.bf16.msra.mxu0 %v4191_v44  ;;  %4049 = vmatprep.subr.bf16.mxu1 %v4190_v21 }
  0x9e   : > { %4023 = vmatprep.subr.bf16.mxu0 %v4194_v27 }
  0x9f   : > { %4004 = vmatmul.mubr.bf16.gmra.mxu1 %v4930_v40  ;;  %v2239_v40 = vor.u32 %v2238_v62, %v2202_v61 }
  0xa0   : > { %4057 = vmatpush3.bf16.msra.mxu1 %v4190_v21  ;;  %3976 = vmatmul.mubr.bf16.gmra.mxu0 %v2221_v52 }
  0xa1   : > { %4024 = vmatpush3.bf16.msra.mxu0 %v4194_v27  ;;  %4050 = vmatprep.subr.bf16.mxu1 %v4191_v44  ;;  %v2255_v51 = vsel %vm4609_vm6, %v2239_v40, 0 }
  0xa2   : > { %4025 = vmatprep.subr.bf16.mxu0 %v4195_v38  ;;  %4007 = vmatprep.mubr.bf16.mxu1 %v4945_v7  ;;  %v2253_v7 = vsel %vm4609_vm6, %v2235_v30, 0 }
  0xa3   : > { %3979 = vmatprep.mubr.bf16.mxu0 %v2222_v46 }
  0xa4   : > { %4058 = vmatpush3.bf16.msra.mxu1 %v4191_v44 }
  0xa5   : > { %4026 = vmatpush3.bf16.msra.mxu0 %v4195_v38  ;;  %4051 = vmatprep.subr.bf16.mxu1 %v4194_v27 }
  0xa6   : > { %4027 = vmatprep.subr.bf16.mxu0 %v4198_v19 }
  0xa7   : > { %4008 = vmatmul.mubr.bf16.gmra.mxu1 %v4969_v39 }
  0xa8   : > { %4059 = vmatpush3.bf16.msra.mxu1 %v4194_v27  ;;  %3980 = vmatmul.mubr.bf16.gmra.mxu0 %v2223_v37 }
  0xa9   : > { %4028 = vmatpush3.bf16.msra.mxu0 %v4198_v19  ;;  %4052 = vmatprep.subr.bf16.mxu1 %v4195_v38 }
  0xaa   : > { %4029 = vmatprep.subr.bf16.mxu0 %v4199_v41  ;;  %4011 = vmatprep.mubr.bf16.mxu1 %v4979_v0 }
  0xab   : > { %4031 = vmatprep.mubr.bf16.mxu0 %v2248_v53 }
  0xac   : > { %4060 = vmatpush3.bf16.msra.mxu1 %v4195_v38 }
  0xad   : > { %4030 = vmatpush3.bf16.msra.mxu0 %v4199_v41  ;;  %4053 = vmatprep.subr.bf16.mxu1 %v4198_v19 }
  0xaf   : > { %4012 = vmatmul.mubr.bf16.gmra.mxu1 %v4996_v17 }
  0xb0   : > { %4061 = vmatpush3.bf16.msra.mxu1 %v4198_v19  ;;  %4032 = vmatmul.mubr.bf16.vlgmr.msra.gmra.mxu0 %v2249_v3 }
  0xb1   : > { %4054 = vmatprep.subr.bf16.mxu1 %v4199_v41  ;;  %4039 = vmatprep.mubr.bf16.mxu1 %v2252_v4 }
  0xb2   : > { %4035 = vmatprep.mubr.bf16.mxu0 %v2250_v42 }
  0xb4   : > { %4062 = vmatpush3.bf16.msra.mxu1 %v4199_v41 }
  0xb7   : > { %4040 = vmatmul.mubr.bf16.vlgmr.msra.gmra.mxu1 %v2253_v7 }
  0xb8   : > { %4036 = vmatmul.mubr.bf16.gmra.mxu0 %v2251_v29  ;;  %4043 = vmatprep.mubr.bf16.mxu1 %v2254_v48 }
  0xbf   : > { %4044 = vmatmul.mubr.bf16.gmra.mxu1 %v2255_v51 }
  0xf0   : > { %v3777_v25 = vpop.f32.mrf.mxu0 }
  0xf2   : > { %v1007_v36 = vpop.f32.mrf.mxu0 }
  0xf4   : > { %v3778_v16 = vpop.f32.mrf.mxu0 }
  0xf6   : > { %v1010_v2 = vpop.f32.mrf.mxu0 }
  0xf7   : > { %v3809_v10 = vpop.f32.mrf.mxu1 }
  0xf8   : > { %v1161_v34 = vadd.f32 %v3809_v10, %v3777_v25  ;;  %v3781_v49 = vpop.f32.mrf.mxu0 }
  0xf9   : > { %v1152_v39 = vpop.f32.mrf.mxu1 }
  0xfa   : > { %v1153_v50 = vadd.f32 %v1152_v39, %v1007_v36  ;;  %v1023_v9 = vpop.f32.mrf.mxu0 }
  0xfb   : > { %v3810_v20 = vpop.f32.mrf.mxu1 }
  0xfc   : > { %v1164_v54 = vadd.f32 %v3810_v20, %v3778_v16  ;;  %v3782_v0 = vpop.f32.mrf.mxu0 }
  0xfd   : > { %v1155_v45 = vpop.f32.mrf.mxu1 }
  0xfe   : > { %v1156_v5 = vadd.f32 %v1155_v45, %v1010_v2  ;;  %v1026_v21 = vpop.f32.mrf.mxu0 }
  0xff   : > { %v3813_v14 = vpop.f32.mrf.mxu1 }
 0x100   : > { %v1177_v43 = vadd.f32 %v3813_v14, %v3781_v49  ;;  %v3785_v63 = vpop.f32.mrf.mxu0 }
 0x101   : > { %v1168_v11 = vpop.f32.mrf.mxu1 }
 0x102   : > { %v1169_v23 = vadd.f32 %v1168_v11, %v1023_v9  ;;  %v1039_v47 = vpop.f32.mrf.mxu0 }
 0x103   : > { %v3814_v17 = vpop.f32.mrf.mxu1 }
 0x104   : > { %v1180_v44 = vadd.f32 %v3814_v17, %v3782_v0  ;;  %v3786_v31 = vpop.f32.mrf.mxu0 }
 0x105   : > { %v1171_v6 = vpop.f32.mrf.mxu1 }
 0x106   : > { %v1172_v15 = vadd.f32 %v1171_v6, %v1026_v21  ;;  %v1042_v26 = vpop.f32.mrf.mxu0 }
 0x107   : > { %v3817_v61 = vpop.f32.mrf.mxu1 }
 0x108   : > { %v1193_v27 = vadd.f32 %v3817_v61, %v3785_v63  ;;  %v3789_v33 = vpop.f32.mrf.mxu0 }
 0x109   : > { %v1184_v52 = vpop.f32.mrf.mxu1 }
 0x10a   : > { %v1185_v28 = vadd.f32 %v1184_v52, %v1039_v47  ;;  %v1055_v58 = vpop.f32.mrf.mxu0 }
 0x10b   : > { %v3818_v38 = vpop.f32.mrf.mxu1 }
 0x10c   : > { %v1196_v46 = vadd.f32 %v3818_v38, %v3786_v31  ;;  %v3790_v59 = vpop.f32.mrf.mxu0 }
 0x10d   : > { %v1187_v55 = vpop.f32.mrf.mxu1 }
 0x10e   : > { %v1188_v19 = vadd.f32 %v1187_v55, %v1042_v26  ;;  %v1058_v56 = vpop.f32.mrf.mxu0 }
 0x10f   : > { %v3821_v37 = vpop.f32.mrf.mxu1 }
 0x110   : > { %v1209_v57 = vadd.f32 %v3821_v37, %v3789_v33  ;;  %v3841_v41 = vpop.f32.mrf.mxu0 }
 0x111   : > { %v1379_v12 = vadd.f32 %v3841_v41, %v1161_v34  ;;  %v1200_v24 = vpop.f32.mrf.mxu1 }
 0x112   : > { %v1201_v53 = vadd.f32 %v1200_v24, %v1055_v58  ;;  %v1314_v8 = vpop.f32.mrf.mxu0 }
 0x113   : > { %v1377_v22 = vadd.f32 %v1314_v8, %v1153_v50  ;;  %v3822_v60 = vpop.f32.mrf.mxu1 }
 0x114   : > { %v1212_v1 = vadd.f32 %v3822_v60, %v3790_v59  ;;  %v3842_v3 = vpop.f32.mrf.mxu0 }
 0x115   : > { %v1380_v35 = vadd.f32 %v3842_v3, %v1164_v54  ;;  %v1203_v32 = vpop.f32.mrf.mxu1 }
 0x116   : > { %v1204_v4 = vadd.f32 %v1203_v32, %v1058_v56  ;;  %v1317_v42 = vpop.f32.mrf.mxu0 }
 0x117   : > { %v1378_v30 = vadd.f32 %v1317_v42, %v1156_v5  ;;  %v3873_v13 = vpop.f32.mrf.mxu1 }
 0x118   : > { %v1717_v18 = vadd.f32 %v3873_v13, %v1379_v12  ;;  %v3845_v7 = vpop.f32.mrf.mxu0 }
 0x119   : > { %v1383_v62 = vadd.f32 %v3845_v7, %v1177_v43  ;;  %v1652_v29 = vpop.f32.mrf.mxu1 }
 0x11a   : > { %v1715_v48 = vadd.f32 %v1652_v29, %v1377_v22  ;;  %v1330_v40 = vpop.f32.mrf.mxu0 }
 0x11b   : > { %v1381_v51 = vadd.f32 %v1330_v40, %v1169_v23  ;;  %v3874_v25 = vpop.f32.mrf.mxu1 }
 0x11c   : > { %v1718_v36 = vadd.f32 %v3874_v25, %v1380_v35  ;;  %v3846_v16 = vpop.f32.mrf.mxu0 }
 0x11d   : > { %v1384_v2 = vadd.f32 %v3846_v16, %v1180_v44  ;;  %v1655_v10 = vpop.f32.mrf.mxu1 }
 0x11e   : > { %v1716_v34 = vadd.f32 %v1655_v10, %v1378_v30  ;;  %v1333_v49 = vpop.f32.mrf.mxu0 }
 0x11f   : > { %v1382_v39 = vadd.f32 %v1333_v49, %v1172_v15  ;;  %v3877_v50 = vpop.f32.mrf.mxu1 }
 0x120   : > { %v1721_v9 = vadd.f32 %v3877_v50, %v1383_v62  ;;  %v3849_v20 = vpop.f32.mrf.mxu0 }
 0x121   : > { %v1387_v54 = vadd.f32 %v3849_v20, %v1193_v27  ;;  %v1668_v0 = vpop.f32.mrf.mxu1 }
 0x122   : > { %v5077_v45 = vadd.f32 %v1668_v0, %v1381_v51  ;;  %v1346_v5 = vpop.f32.mrf.mxu0 }
 0x123   : > { %v1385_v21 = vadd.f32 %v1346_v5, %v1185_v28  ;;  %v3878_v14 = vpop.f32.mrf.mxu1 }
 0x124   : > { %v5079_v43 = vadd.f32 %v3878_v14, %v1384_v2  ;;  %v3850_v63 = vpop.f32.mrf.mxu0 }
 0x125   : > { %v1388_v11 = vadd.f32 %v3850_v63, %v1196_v46  ;;  %v1671_v23 = vpop.f32.mrf.mxu1 }
 0x126   : > { %v5081_v47 = vadd.f32 %v1671_v23, %v1382_v39  ;;  %v1349_v17 = vpop.f32.mrf.mxu0 }
 0x127   : > { %v1386_v44 = vadd.f32 %v1349_v17, %v1188_v19  ;;  %v3881_v31 = vpop.f32.mrf.mxu1 }
 0x128   : > { %v5083_v6 = vadd.f32 %v3881_v31, %v1387_v54  ;;  %v3853_v15 = vpop.f32.mrf.mxu0 }
 0x129   : > { %v1391_v26 = vadd.f32 %v3853_v15, %v1209_v57  ;;  %v1684_v61 = vpop.f32.mrf.mxu1 }
 0x12a   : > { %v5085_v27 = vadd.f32 %v1684_v61, %v1385_v21  ;;  %v1362_v33 = vpop.f32.mrf.mxu0 }
 0x12b   : > { %v1389_v52 = vadd.f32 %v1362_v33, %v1201_v53  ;;  %v3882_v28 = vpop.f32.mrf.mxu1 }
 0x12c   : > { %v5087_v58 = vadd.f32 %v3882_v28, %v1388_v11  ;;  %v3854_v38 = vpop.f32.mrf.mxu0 }
 0x12d   : > { %v1392_v46 = vadd.f32 %v3854_v38, %v1212_v1  ;;  %v1687_v59 = vpop.f32.mrf.mxu1 }
 0x12e   : > { %v5089_v55 = vadd.f32 %v1687_v59, %v1386_v44  ;;  %v1365_v56 = vpop.f32.mrf.mxu0 }
 0x12f   : > { %v1390_v19 = vadd.f32 %v1365_v56, %v1204_v4  ;;  %v3885_v37 = vpop.f32.mrf.mxu1 }
 0x130   : > { %v5091_v41 = vadd.f32 %v3885_v37, %v1391_v26  ;;  %v3905_v12 = vpop.f32.mrf.mxu0 }
 0x131   : > { %v1903_v57 = vadd.f32 %v3905_v12, %v1717_v18  ;;  %v1700_v24 = vpop.f32.mrf.mxu1 }
 0x132   : > { %v5093_v8 = vadd.f32 %v1700_v24, %v1389_v52  ;;  %v1838_v22 = vpop.f32.mrf.mxu0 }
 0x133   : > { %v1901_v53 = vadd.f32 %v1838_v22, %v1715_v48  ;;  %v3886_v60 = vpop.f32.mrf.mxu1 }
 0x134   : > { %v5095_v3 = vadd.f32 %v3886_v60, %v1392_v46  ;;  %v3906_v35 = vpop.f32.mrf.mxu0 }
 0x135   : > { %v1904_v1 = vadd.f32 %v3906_v35, %v1718_v36  ;;  %v1703_v32 = vpop.f32.mrf.mxu1 }
 0x136   : > { %5304 = vst [vmem:[#allocation3_spill] sm:$0xff] %v5095_v3  ;;  %v5097_v42 = vadd.f32 %v1703_v32, %v1390_v19  ;;  %v1841_v30 = vpop.f32.mrf.mxu0 }
 0x137   : > { %v1902_v4 = vadd.f32 %v1841_v30, %v1716_v34  ;;  %v3937_v13 = vpop.f32.mrf.mxu1 }
 0x138   : > { %5305 = vst [vmem:[#allocation4_spill] sm:$0xff] %v5097_v42  ;;  %v2081_v7 = vadd.f32 %v3937_v13, %v1903_v57  ;;  %v3909_v62 = vpop.f32.mrf.mxu0 }
 0x139   : > { %v2016_v29 = vpop.f32.mrf.mxu1  ;;  %v1907_v2 = vadd.f32 %v3909_v62, %v1721_v9 }
 0x13a   : > { %v2079_v18 = vadd.f32 %v2016_v29, %v1901_v53  ;;  %v5099_v40 = vpop.f32.mrf.mxu0 }
 0x13b   : > { %v3938_v51 = vpop.f32.mrf.mxu1 }
 0x13c   : > { %v2082_v25 = vadd.f32 %v3938_v51, %v1904_v1  ;;  %v5101_v48 = vpop.f32.mrf.mxu0 }
 0x13d   : > { %v2019_v16 = vpop.f32.mrf.mxu1 }
 0x13e   : > { %v5103_v10 = vadd.f32 %v2019_v16, %v1902_v4  ;;  %v1857_v36 = vpop.f32.mrf.mxu0 }
 0x13f   : > { %v3941_v49 = vpop.f32.mrf.mxu1 }
 0x140   : > { %v5105_v39 = vadd.f32 %v3941_v49, %v1907_v2  ;;  %v3913_v34 = vpop.f32.mrf.mxu0 }
 0x141   : > { %v2032_v50 = vpop.f32.mrf.mxu1 }
 0x142   : > { %v1870_v20 = vpop.f32.mrf.mxu0 }
 0x143   : > { %v5107_v54 = vpop.f32.mrf.mxu1 }
 0x144   : > { %v5109_v0 = vpop.f32.mrf.mxu0 }
 0x145   : > { %v5111_v5 = vpop.f32.mrf.mxu1 }
 0x146   : > { %v5113_v21 = vpop.f32.mrf.mxu0 }
 0x147   : > { %v3945_v14 = vpop.f32.mrf.mxu1 }
 0x148   : > { %v5115_v63 = vpop.f32.mrf.mxu0 }
 0x149   : > { %v2048_v9 = vpop.f32.mrf.mxu1 }
 0x14a   : > { %v5117_v11 = vpop.f32.mrf.mxu0 }
 0x14b   : > { %v5119_v23 = vpop.f32.mrf.mxu1 }
 0x14c   : > { %v5121_v17 = vpop.f32.mrf.mxu0 }
 0x14d   : > { %5306 = vst [vmem:[#allocation5_spill] sm:$0xff] %v5121_v17  ;;  %v5123_v44 = vpop.f32.mrf.mxu1 }
 0x14e   : > { %v5125_v31 = vpop.f32.mrf.mxu0 }
 0x14f   : > { %5307 = vst [vmem:[#allocation6_spill] sm:$0xff] %v5125_v31  ;;  %v5127_v15 = vpop.f32.mrf.mxu1 }
 0x150   : > { %v3969_v26 = vpop.f32.mrf.mxu0 }
 0x151   : > { %v5129_v61 = vpop.f32.mrf.mxu1 }
 0x152   : > { %5308 = vst [vmem:[#allocation7_spill] sm:$0xff] %v5129_v61  ;;  %v2355_v33 = vpop.f32.mrf.mxu0 }
 0x153   : > { %v5131_v52 = vpop.f32.mrf.mxu1  ;;  %v2418_v42 = vadd.f32 %v2355_v33, %v2079_v18  ;;  %v1906_v18 = vadd.f32 %v1857_v36, %v5081_v47 }
 0x154   : > { %5309 = vst [vmem:[#allocation8_spill] sm:$0xff] %v5131_v52  ;;  %v3970_v28 = vpop.f32.mrf.mxu0 }
 0x155   : > { %v5133_v38 = vpop.f32.mrf.mxu1  ;;  %v2421_v17 = vadd.f32 %v3970_v28, %v2082_v25  ;;  %v1912_v25 = vadd.f32 %v5109_v0, %v5087_v58  ;;  %v1915_v58 = vadd.f32 %v5115_v63, %v5091_v41 }
 0x156   : > { %5310 = vst [vmem:[#allocation9_spill] sm:$0xff] %v5133_v38  ;;  %v2358_v46 = vpop.f32.mrf.mxu0  ;;  %v2420_v38 = vadd.f32 %v3969_v26, %v2081_v7  ;;  %v1908_v7 = vadd.f32 %v5101_v48, %v5079_v43  ;;  %v1909_v26 = vadd.f32 %v1870_v20, %v5085_v27  ;;  %v2084_v27 = vadd.f32 %v5111_v5, %v1906_v18 }
 0x157   : > { %v4001_v59 = vpop.f32.mrf.mxu1  ;;  %v2093_v63 = vadd.f32 %v5127_v15, %v1915_v58 }
 0x158   : > { %v3973_v56 = vpop.f32.mrf.mxu0  ;;  %v2606_v61 = vadd.f32 %v4001_v59, %v2420_v38  ;;  %v2087_v43 = vadd.f32 %v2048_v9, %v1909_v26  ;;  %v5323_v26 = vld [vmem:[#allocation4_spill] sm:$0xff] }
 0x159   : > { %v2541_v19 = vpop.f32.mrf.mxu1  ;;  %v2424_v36 = vadd.f32 %v3973_v56, %v5105_v39 }
 0x15a   : > { %v2371_v37 = vpop.f32.mrf.mxu0 }
 0x15b   : > { %v4002_v12 = vpop.f32.mrf.mxu1 }
 0x15c   : > { %v5135_v57 = vpop.f32.mrf.mxu0  ;;  %v2607_v59 = vadd.f32 %v4002_v12, %v2421_v17  ;;  %v2090_v17 = vadd.f32 %v5119_v23, %v1912_v25  ;;  %v5326_v25 = vld [vmem:[#allocation8_spill] sm:$0xff] }
 0x15d   : > { %v2544_v24 = vpop.f32.mrf.mxu1 }
 0x15e   : > { %v5137_v22 = vpop.f32.mrf.mxu0 }
 0x15f   : > { %5311 = vst [vmem:[#allocation10_spill] sm:$0xff] %v5137_v22  ;;  %v4005_v53 = vpop.f32.mrf.mxu1 }
 0x160   : > { %v3977_v60 = vpop.f32.mrf.mxu0  ;;  %v2610_v9 = vadd.f32 %v4005_v53, %v2424_v36 }
 0x161   : > { %v2557_v35 = vpop.f32.mrf.mxu1 }
 0x162   : > { %v2387_v1 = vpop.f32.mrf.mxu0 }
 0x163   : > { %v5139_v32 = vpop.f32.mrf.mxu1 }
 0x164   : > { %5312 = vst [vmem:[#allocation11_spill] sm:$0xff] %v5139_v32  ;;  %v3978_v30 = vpop.f32.mrf.mxu0 }
 0x165   : > { %v5141_v4 = vpop.f32.mrf.mxu1  ;;  %v2429_v56 = vadd.f32 %v3978_v30, %v2090_v17  ;;  %v5318_v30 = vld [vmem:[#allocation5_spill] sm:$0xff] }
 0x166   : > { %5313 = vst [vmem:[#allocation12_spill] sm:$0xff] %v5141_v4  ;;  %v2390_v13 = vpop.f32.mrf.mxu0  ;;  %v1911_v4 = vadd.f32 %v3913_v34, %v5083_v6  ;;  %v2419_v34 = vadd.f32 %v2358_v46, %v5103_v10  ;;  %v5328_v17 = vld [vmem:[#allocation9_spill] sm:$0xff] }
 0x167   : > { %v4009_v62 = vpop.f32.mrf.mxu1 }
 0x168   : > { %v5143_v29 = vpop.f32.mrf.mxu0  ;;  %v2089_v33 = vadd.f32 %v3945_v14, %v1911_v4  ;;  %v1910_v14 = vadd.f32 %v5113_v21, %v5089_v55  ;;  %v1913_v21 = vadd.f32 %v5117_v11, %v5093_v8 }
 0x169   : > { %5314 = vst [vmem:[#allocation13_spill] sm:$0xff] %v5143_v29  ;;  %v2573_v51 = vpop.f32.mrf.mxu1  ;;  %v1905_v29 = vadd.f32 %v5099_v40, %v5077_v45  ;;  %v2086_v40 = vadd.f32 %v5107_v54, %v1908_v7  ;;  %v2426_v54 = vadd.f32 %v2387_v1, %v2087_v43  ;;  %v5317_v1 = vld [vmem:[#allocation3_spill] sm:$0xff] }
 0x16a   : > { %v5145_v16 = vpop.f32.mrf.mxu0  ;;  %v2428_v48 = vadd.f32 %v3977_v60, %v2089_v33  ;;  %v2088_v46 = vadd.f32 %v5123_v44, %v1910_v14  ;;  %v1916_v4 = vadd.f32 %v5318_v30, %v5317_v1  ;;  %v5324_v33 = vld [vmem:[#allocation6_spill] sm:$0xff] }
 0x16b   : > { %5315 = vst [vmem:[#allocation14_spill] sm:$0xff] %v5145_v16  ;;  %v4010_v2 = vpop.f32.mrf.mxu1  ;;  %v2604_v16 = vadd.f32 %v2541_v19, %v2418_v42  ;;  %v2083_v6 = vadd.f32 %v2032_v50, %v1905_v29  ;;  %v2605_v50 = vadd.f32 %v2544_v24, %v2419_v34  ;;  %v2612_v19 = vadd.f32 %v2573_v51, %v2426_v54  ;;  %v5320_v51 = vld [vmem:[#allocation11_spill] sm:$0xff] }
 0x16c   : > { %v5147_v49 = vpop.f32.mrf.mxu0  ;;  %v2425_v23 = vadd.f32 %v5135_v57, %v2086_v40  ;;  %v2615_v53 = vadd.f32 %v4010_v2, %v2429_v56  ;;  %v2094_v43 = vadd.f32 %v5326_v25, %v1916_v4 }
 0x16d   : > { %5316 = vst [vmem:[#allocation15_spill] sm:$0xff] %v5147_v49  ;;  %v5149_v52 = vpop.f32.mrf.mxu1  ;;  %v2422_v0 = vadd.f32 %v2371_v37, %v2083_v6  ;;  %v2427_v37 = vadd.f32 %v2390_v13, %v2088_v46  ;;  %v5325_v6 = vld [vmem:[#allocation12_spill] sm:$0xff] }
 0x16e   : > { %v5151_v31 = vpop.f32.mrf.mxu0  ;;  %v2611_v8 = vadd.f32 %v5320_v51, %v2425_v23 }
 0x16f   : > { %v5153_v32 = vpop.f32.mrf.mxu1  ;;  %v2608_v24 = vadd.f32 %v2557_v35, %v2422_v0  ;;  %v5321_v35 = vld [vmem:[#allocation7_spill] sm:$0xff]  ;;  %v2613_v15 = vadd.f32 %v5149_v52, %v2427_v37 }
 0x170   : > { %v4033_v22 = vpop.f32.mrf.mxu0  ;;  %v5322_v7 = vld [vmem:[#allocation13_spill] sm:$0xff] }
 0x171   : > { %v5158_v3 = vadd.f32 %v4033_v22, %v2606_v61  ;;  %v5160_v49 = vpop.f32.mrf.mxu1  ;;  %v2614_v61 = vadd.f32 %v4009_v62, %v2428_v48  ;;  %v5319_v62 = vld [vmem:[#allocation10_spill] sm:$0xff]  ;;  %v2432_v18 = vadd.f32 %v5322_v7, %v2093_v63 }
 0x172   : > { %v2719_v38 = vpop.f32.mrf.mxu0  ;;  %v2423_v29 = vadd.f32 %v5319_v62, %v2084_v27  ;;  %v5327_v48 = vld [vmem:[#allocation14_spill] sm:$0xff] }
 0x173   : > { %v5167_v45 = vadd.f32 %v2719_v38, %v2604_v16  ;;  %v5169_v42 = vpop.f32.mrf.mxu1  ;;  %v2091_v16 = vadd.f32 %v5321_v35, %v1913_v21  ;;  %v1914_v38 = vadd.f32 %v5324_v33, %v5323_v26  ;;  %v2618_v27 = vadd.f32 %v5153_v32, %v2432_v18 }
 0x174   : > { %v4034_v47 = vpop.f32.mrf.mxu0  ;;  %v2609_v34 = vadd.f32 %v5325_v6, %v2423_v29 }
 0x175   : > { %v5176_v20 = vadd.f32 %v4034_v47, %v2607_v59  ;;  %v2592_v10 = vpop.f32.mrf.mxu1  ;;  %v2430_v47 = vadd.f32 %v5327_v48, %v2091_v16  ;;  %v2092_v54 = vadd.f32 %v5328_v17, %v1914_v38 }
 0x176   : > { %v2722_v28 = vpop.f32.mrf.mxu0 }
 0x177   : > { %v5183_v5 = vadd.f32 %v2722_v28, %v2605_v50  ;;  %v4041_v39 = vpop.f32.mrf.mxu1  ;;  %v2616_v58 = vadd.f32 %v5160_v49, %v2430_v47 }
 0x178   : > { %v5186_v12 = vadd.f32 %v4041_v39, %v2614_v61  ;;  %v4037_v55 = vpop.f32.mrf.mxu0  ;;  %v5329_v61 = vld [vmem:[#allocation15_spill] sm:$0xff]  ;;  %v2431_v39 = vadd.f32 %v5151_v31, %v2092_v54 }
 0x179   : > { %v5191_v22 = vadd.f32 %v4037_v55, %v2610_v9  ;;  %v2751_v41 = vpop.f32.mrf.mxu1  ;;  %v2433_v28 = vadd.f32 %v5329_v61, %v2094_v43 }
 0x17a   : > { %v5194_v60 = vadd.f32 %v2751_v41, %v2612_v19  ;;  %v2735_v44 = vpop.f32.mrf.mxu0  ;;  %v2617_v32 = vadd.f32 %v2592_v10, %v2431_v39 }
 0x17b   : > { %v2786_v11 = vadd.f32 %v2735_v44, %v2608_v24  ;;  %v4042_v57 = vpop.f32.mrf.mxu1  ;;  %v2619_v46 = vadd.f32 %v5169_v42, %v2433_v28 }
 0x17c   : > { %v5203_v13 = vadd.f32 %v4042_v57, %v2615_v53  ;;  %v4038_v2 = vpop.f32.mrf.mxu0 }
 0x17d   : > { %v2789_v59 = vadd.f32 %v4038_v2, %v2611_v8  ;;  %v2754_v40 = vpop.f32.mrf.mxu1 }
 0x17e   : > { %v2791_v36 = vadd.f32 %v2754_v40, %v2613_v15  ;;  %v2738_v50 = vpop.f32.mrf.mxu0 }
 0x17f   : > { %v2787_v14 = vadd.f32 %v2738_v50, %v2609_v34  ;;  %v4045_v52 = vpop.f32.mrf.mxu1 }
 0x180   : > { %v5214_v0 = vadd.f32 %v4045_v52, %v2618_v27 }
 0x181   : > { %v2767_v9 = vpop.f32.mrf.mxu1 }
 0x182   : > { %v2794_v56 = vadd.f32 %v2767_v9, %v2616_v58  ;;  %2801 = sbr.rel (%p3421_p12) target bundleno = 393 (0x189), region = 48 }
 0x183   : > { %v4046_v19 = vpop.f32.mrf.mxu1 }
 0x184   : > { %v5218_v55 = vadd.f32 %v4046_v19, %v2619_v46 }
 0x185   : > { %v2770_v21 = vpop.f32.mrf.mxu1 }
 0x186   : > { %v2795_v23 = vadd.f32 %v2770_v21, %v2617_v32 }
 0x187   : > { %v4240_v24 = vmov 0.0  }
 0x188   : > { %2802 = vst [vmem:[%s4349_s16] sm:$0x1] %v4240_v24  ;;  %2803 = vst [vmem:[%s4360_s23] sm:$0x1] %v4240_v24 }
 0x189 PF: > { %v2805_v31 = vadd.f32 %v5183_v5, %v5167_v45  ;;  %v2829_v49 = vmul.f32 %v5167_v45, %v5167_v45  ;;  %v2830_v42 = vmul.f32 %v5183_v5, %v5183_v5  ;;  %v2831_v41 = vmul.f32 %v5158_v3, %v5158_v3 }
 0x18a   : > { %v2832_v37 = vmul.f32 %v5176_v20, %v5176_v20  ;;  %v2833_v53 = vmul.f32 %v2786_v11, %v2786_v11  ;;  %v3557_v1 = vpack.c.bf16 %v5183_v5, %v5167_v45  ;;  %v3562_v30 = vpack.c.bf16 %v5176_v20, %v5158_v3 }
 0x18b   : > { %v2806_v10 = vadd.f32 %v2805_v31, %v5158_v3  ;;  %v2845_v44 = vadd.f32 %v2830_v42, %v2829_v49  ;;  %v3567_v4 = vpack.c.bf16 %v2787_v14, %v2786_v11  ;;  %v3572_v62 = vpack.c.bf16 %v2789_v59, %v5191_v22 }
 0x18c   : > { %v3577_v8 = vpack.c.bf16 %v2791_v36, %v5194_v60  ;;  %v3582_v57 = vpack.c.bf16 %v5203_v13, %v5186_v12  ;;  %3558 = vst [vmem:[%s4411_s20] sm:$0xff] %v3557_v1   ;;  %3608 = vst [vmem:[%s4411_s20 + $0x8] sm:$0xff] %v3562_v30   ;;  %v3587_v45 = vpack.c.bf16 %v2795_v23, %v2794_v56 }
 0x18d   : > { %v2807_v63 = vadd.f32 %v2806_v10, %v5176_v20  ;;  %v2846_v51 = vadd.f32 %v2845_v44, %v2831_v41  ;;  %3609 = vst [vmem:[%s4411_s20 + $0x10] sm:$0xff] %v3567_v4   ;;  %3610 = vst [vmem:[%s4411_s20 + $0x18] sm:$0xff] %v3572_v62   ;;  %v3592_v3 = vpack.c.bf16 %v5218_v55, %v5214_v0 }
 0x18e   : > { %v2834_v5 = vmul.f32 %v2787_v14, %v2787_v14  ;;  %3611 = vst [vmem:[%s4411_s20 + $0x20] sm:$0xff] %v3577_v8   ;;  %3612 = vst [vmem:[%s4411_s20 + $0x28] sm:$0xff] %v3582_v57   ;;  %v2835_v16 = vmul.f32 %v5191_v22, %v5191_v22  ;;  %v2836_v15 = vmul.f32 %v2789_v59, %v2789_v59 }
 0x18f   : > { %v2808_v29 = vadd.f32 %v2807_v63, %v2786_v11  ;;  %v2847_v35 = vadd.f32 %v2846_v51, %v2832_v37  ;;  %3613 = vst [vmem:[%s4411_s20 + $0x30] sm:$0xff] %v3587_v45   ;;  %3614 = vst [vmem:[%s4411_s20 + $0x38] sm:$0xff] %v3592_v3   ;;  %v2837_v33 = vmul.f32 %v5194_v60, %v5194_v60  ;;  %v2804_v24 = vld [vmem:[%s4349_s16] sm:$0x1] }
 0x190   : > { %v2838_v34 = vmul.f32 %v2791_v36, %v2791_v36  ;;  %v2839_v43 = vmul.f32 %v5186_v12, %v5186_v12  ;;  %v2841_v50 = vmul.f32 %v2794_v56, %v2794_v56  ;;  %v2842_v52 = vmul.f32 %v2795_v23, %v2795_v23 }
 0x191   : > { %v2809_v20 = vadd.f32 %v2808_v29, %v2787_v14  ;;  %v2848_v7 = vadd.f32 %v2847_v35, %v2833_v53  ;;  %v2843_v54 = vmul.f32 %v5214_v0, %v5214_v0  ;;  %v2844_v28 = vmul.f32 %v5218_v55, %v5218_v55 }
 0x193   : > { %v2810_v11 = vadd.f32 %v2809_v20, %v5191_v22  ;;  %v2849_v2 = vadd.f32 %v2848_v7, %v2834_v5 }
 0x195   : > { %v2811_v18 = vadd.f32 %v2810_v11, %v2789_v59  ;;  %v2850_v38 = vadd.f32 %v2849_v2, %v2835_v16  ;;  %v2840_v59 = vmul.f32 %v5203_v13, %v5203_v13 }
 0x197   : > { %v2812_v26 = vadd.f32 %v2811_v18, %v5194_v60  ;;  %v2851_v40 = vadd.f32 %v2850_v38, %v2836_v15 }
 0x199   : > { %v2813_v6 = vadd.f32 %v2812_v26, %v2791_v36  ;;  %v2852_v48 = vadd.f32 %v2851_v40, %v2837_v33 }
 0x19b   : > { %v2814_v25 = vadd.f32 %v2813_v6, %v5186_v12  ;;  %v2853_v47 = vadd.f32 %v2852_v48, %v2838_v34 }
 0x19d   : > { %v2815_v22 = vadd.f32 %v2814_v25, %v5203_v13  ;;  %v2854_v14 = vadd.f32 %v2853_v47, %v2839_v43 }
 0x19f   : > { %v2816_v27 = vadd.f32 %v2815_v22, %v2794_v56  ;;  %v2855_v17 = vadd.f32 %v2854_v14, %v2840_v59 }
 0x1a1   : > { %v2817_v60 = vadd.f32 %v2816_v27, %v2795_v23  ;;  %v2856_v12 = vadd.f32 %v2855_v17, %v2841_v50 }
 0x1a3   : > { %v2818_v36 = vadd.f32 %v2817_v60, %v5214_v0  ;;  %v2857_v13 = vadd.f32 %v2856_v12, %v2842_v52 }
 0x1a5   : > { %v2819_v61 = vadd.f32 %v2818_v36, %v5218_v55  ;;  %v2858_v9 = vadd.f32 %v2857_v13, %v2843_v54  ;;  %v2828_v55 = vld [vmem:[%s4360_s23] sm:$0x1] }
 0x1a7   : > { %v2820_v58 = vrot.slane %v2819_v61, 4  ;;  %v2859_v46 = vadd.f32 %v2858_v9, %v2844_v28 }
 0x1a9   : > { %v2821_v39 = vadd.f32 %v2820_v58, %v2819_v61  ;;  %v2860_v19 = vrot.slane %v2859_v46, 4 }
 0x1ab   : > { %v2822_v56 = vrot.slane %v2821_v39, 2  ;;  %v2861_v21 = vadd.f32 %v2860_v19, %v2859_v46 }
 0x1ad   : > { %v2823_v32 = vadd.f32 %v2822_v56, %v2821_v39  ;;  %v2862_v0 = vrot.slane %v2861_v21, 2 }
 0x1af   : > { %v2824_v23 = vrot.slane %v2823_v32, 1  ;;  %v2863_v49 = vadd.f32 %v2862_v0, %v2861_v21 }
 0x1b1   : > { %v2825_v31 = vadd.f32 %v2824_v23, %v2823_v32  ;;  %v2864_v10 = vrot.slane %v2863_v49, 1 }
 0x1b3   : > { %v2826_v42 = vadd.f32 %v2825_v31, %v2804_v24  ;;  %v2865_v41 = vadd.f32 %v2864_v10, %v2863_v49 }
 0x1b5   : > { %2827 = vst [vmem:[%s4349_s16] sm:$0x1] %v2826_v42  ;;  %v2866_v63 = vadd.f32 %v2865_v41, %v2828_v55 }
 0x1b7   : > { %2867 = vst [vmem:[%s4360_s23] sm:$0x1] %v2866_v63 }
 0x1b8 PF: > { %s19_s9 = sadd.s32 1, %s4238_s9   ;;  %s5330_s27 = smov %s4230_s29 }
 0x1b9   : > { %p16_p13 = scmp.ge.s32.totalorder %s19_s9, 6   ;;  %s5331_s28 = smov %s4234_s30 }
 0x1ba   : > { %s5332_s29 = smov %s5335_s10  ;;  %s5333_s30 = smov %s5339_s11 }
 0x1bb   :  { %18 = sbr.rel (!%p16_p13) target bundleno = 3 (0x3), region = 119 }

// kernel: _lambda_.5
= control target key start
LH: loop header
LB: loop body
LE: loop exit
PB: predicated region body
PF: predicated region fallthrough
CT: control target
= control target key end

     0   :  { %s5764_s30 = smov 0   ;;  %s5766_s10 = smov 0   ;;  %s7279_s0 = inlined_call_operand.vmem [shape: bf16[2,16,16,128], index: 0, kind: input, shape index: {}, may-alias: {0,1,2}]   ;;  %s7280_s1 = inlined_call_operand.vmem [shape: bf16[2,16,16,128], index: 1, kind: input, shape index: {}, may-alias: {0,1,2}]   ;;  %s7281_s2 = inlined_call_operand.vmem [shape: bf16[2,16,16,128], index: 2, kind: input, shape index: {}, may-alias: {0,1,2}]   ;;  %s7282_s3 = inlined_call_operand.vmem [shape: bf16[2,16,16,128], index: 3, kind: input, shape index: {}, may-alias: {3,4,5}]   ;;  %s7283_s4 = inlined_call_operand.vmem [shape: bf16[2,16,16,128], index: 4, kind: input, shape index: {}, may-alias: {3,4,5}]   ;;  %s7284_s5 = inlined_call_operand.vmem [shape: bf16[2,16,16,128], index: 5, kind: input, shape index: {}, may-alias: {3,4,5}]   ;;  %s7285_s6 = inlined_call_operand.vmem [shape: bf16[9,256,128], index: 6, kind: input, shape index: {}]   ;;  %s7286_s7 = inlined_call_operand.vmem [shape: bf16[2,16,16,128], index: 7, kind: output, shape index: {0}]   ;;  %s7287_s8 = inlined_call_operand.vmem [shape: f32[2,1,128], index: 8, kind: output, shape index: {1}]   ;;  %s7288_s9 = inlined_call_operand.vmem [shape: f32[2,1,128], index: 9, kind: output, shape index: {2}]  }
   0x1   :  { %7293 = sst [smem:[#allocation5_spill]] %s7287_s8  ;;  %s5768_s11 = smov 0  }
   0x2   :  { %7294 = sst [smem:[#allocation6_spill]] %s7288_s9  ;;  %s5770_s12 = smov 0  }
   0x3   :  { %s5772_s13 = smov 0  }
   0x4 LB: > { %s29_s14 = sadd.s32 1, %s5703_s11  ;;  %s32_s15 = sadd.s32 1, %s5707_s12  ;;  %s5711_s13 = sphi %s5772_s13, %s20_s13   ;;  %s5707_s12 = sphi %s5770_s12, %s7315_s12   ;;  %s5703_s11 = sphi %s5768_s11, %s7314_s11   ;;  %s5699_s10 = sphi %s5766_s10, %s7313_s10   ;;  %s5695_s30 = sphi %s5764_s30, %s7312_s30  }
   0x5   : > { %p30_p0 = scmp.ge.s32.totalorder %s29_s14, 2  ;;  %p4264_p1 = scmp.ge.s32.totalorder %s5711_s13, 1 }
   0x6   : > { %p460_p2 = scmp.lt.s32.totalorder %s5711_s13, 5 }
   0x7   : > { %s7317_s14 = smov (%p30_p0, %s29_s14), 0  ;;  %s7319_s15 = smov (!%p30_p0, %s32_s15), %s5707_s12 }
   0x8   : > { %7295 = sst [smem:[#allocation3_spill]] %s7317_s14  ;;  %p461_p3 = pnand %p4264_p1, %p460_p2 }
   0x9   : > { %p34_p4 = scmp.ge.s32.totalorder %s7319_s15, 2  ;;  %s5802_s18 = sshll.u32 (!%p461_p3), %s5695_s30, 3 }
   0xa   : > { %464 = sbr.rel (%p461_p3) target bundleno = 583 (0x247), region = 48  ;;  %s4266_s21 = sadd.s32 (!%p461_p3), 4294967295, %s5802_s18 }
   0xb   : > { %s7321_s15 = smov (%p34_p4, %s7319_s15), 0  ;;  %p576_p5 = scmp.gt.s32.totalorder (!%p461_p3), %s4266_s21, 0 }
   0xc   : > { %7296 = sst [smem:[#allocation4_spill]] %s7321_s15  ;;  %p578_p6 = scmp.lt.s32.totalorder (!%p461_p3), %s5699_s10, 1 }
   0xd   : > { %p4267_p7 = scmp.lt.s32.totalorder (!%p461_p3), %s4266_s21, 15  ;;  %s7297_s8 = sld [smem:[#allocation5_spill]] (!%p461_p3) }
   0xe   : > { %s7298_s9 = sld [smem:[#allocation6_spill]] (!%p461_p3)  ;;  %p594_p8 = scmp.lt.s32.totalorder (!%p461_p3), %s5802_s18, 15 }
   0xf   : > { %v5478_v0 = vld [vmem:[%s7285_s6 + $0xf8] sm:$0xff]   ;;  %v5480_v2 = vld [vmem:[%s7285_s6 + $0xf0] sm:$0xff]   ;;  %v5482_v4 = vld [vmem:[%s7285_s6 + $0xe8] sm:$0xff]   ;;  %s577_s28 = scalar_select %p576_p5, %s4266_s21, 0  ;;  %vm989_vm1 = vsmask.f32 256 }
  0x10   : > { %v5479_v1 = vld [vmem:[%s7285_s6 + $0xb8] sm:$0xff]   ;;  %4845 = vmatprep.subr.bf16.mxu0 %v5478_v0  ;;  %5421 = vmatprep.subr.bf16.mxu1 %v5478_v0  ;;  %v5481_v3 = vld [vmem:[%s7285_s6 + $0xb0] sm:$0xff]   ;;  %s7323_s10 = smov (!%p578_p6, %s5699_s10), 1  ;;  %v5483_v5 = vld [vmem:[%s7285_s6 + $0xa8] sm:$0xff]   ;;  %s603_s20 = sadd.s32 8, %s5802_s18  ;;  %vm988_vm2 = vcmask 1040384  }
  0x11   : > { %4846 = vmatpush3.bf16.msra.mxu0 %v5479_v1  ;;  %5429 = vmatpush3.bf16.msra.mxu1 %v5479_v1  ;;  %s5822_s17 = sshll.u32 %s7323_s10, 5  ;;  %v5484_v6 = vld [vmem:[%s7285_s6 + $0xe0] sm:$0xff]   ;;  %s7325_s28 = smov (!%p4267_p7, %s577_s28), 15  ;;  %v5486_v8 = vld [vmem:[%s7285_s6 + $0xd8] sm:$0xff]   ;;  %v5488_v10 = vld [vmem:[%s7285_s6 + $0xd0] sm:$0xff]   ;;  %vm1055_vm4 = vcmask 1047552  }
  0x12   : > { %4847 = vmatprep.subr.bf16.mxu0 %v5480_v2  ;;  %5422 = vmatprep.subr.bf16.mxu1 %v5480_v2  ;;  %s4272_s27 = sshll.u32 %s7325_s28, 1  ;;  %v5485_v7 = vld [vmem:[%s7285_s6 + $0xa0] sm:$0xff]   ;;  %p5849_p9 = scmp.lt.s32.totalorder %s603_s20, 15  ;;  %v5487_v9 = vld [vmem:[%s7285_s6 + $0x98] sm:$0xff]   ;;  %v5489_v11 = vld [vmem:[%s7285_s6 + $0x90] sm:$0xff]  }
  0x13   : > { %s5827_s22 = scalar_lea.vmem %s7297_s8, %s7323_s10  ;;  %s5842_s19 = sadd.s32 %s5822_s17, %s4272_s27  ;;  %v5490_v12 = vld [vmem:[%s7285_s6 + $0xc8] sm:$0xff]   ;;  %v5492_v18 = vld [vmem:[%s7285_s6 + $0xc0] sm:$0xff]   ;;  %v5500_v24 = vld [vmem:[%s7285_s6 + $0x78] sm:$0xff]   ;;  %vm1056_vm5 = vsmask.f32 7424 }
  0x14   : > { %s5835_s26 = scalar_lea.vmem %s7298_s9, %s7323_s10  ;;  %s4274_s10 = sshll.u32 %s5842_s19, 2  ;;  %v5491_v15 = vld [vmem:[%s7285_s6 + $0x88] sm:$0xff]   ;;  %v5493_v22 = vld [vmem:[%s7285_s6 + $0x80] sm:$0xff]   ;;  %v5501_v31 = vld [vmem:[%s7285_s6 + $0x178] sm:$0xff]  }
  0x15   : > { %4848 = vmatpush3.bf16.msra.mxu0 %v5481_v3  ;;  %5430 = vmatpush3.bf16.msra.mxu1 %v5481_v3  ;;  %s7327_s18 = smov (!%p594_p8, %s5802_s18), 15  ;;  %s7329_s20 = smov (!%p5849_p9, %s603_s20), 15  ;;  %v5502_v38 = vld [vmem:[%s7285_s6 + $0x38] sm:$0xff]   ;;  %v5504_v43 = vld [vmem:[%s7285_s6 + $0x70] sm:$0xff]   ;;  %v5514_v46 = vld [vmem:[%s7285_s6 + $0x68] sm:$0xff]  }
  0x16   : > { %4849 = vmatprep.subr.bf16.mxu0 %v5482_v4  ;;  %5423 = vmatprep.subr.bf16.mxu1 %v5482_v4  ;;  %s4276_s16 = sshll.u32 %s7327_s18, 1  ;;  %s5868_s9 = scalar_lea.vmem %s7279_s0, %s4274_s10  ;;  %v5506_v44 = vld [vmem:[%s7285_s6 + $0x30] sm:$0xff]   ;;  %v5503_v45 = vld [vmem:[%s7285_s6 + $0x138] sm:$0xff]   ;;  %v5515_v54 = vld [vmem:[%s7285_s6 + $0x168] sm:$0xff]  }
  0x17   : > { %s598_s21 = sadd.s32 %s4276_s16, %s5822_s17  ;;  %p682_p10 = scmp.gt.s32.totalorder %s5695_s30, 0  ;;  %v683_v19 = vld [vmem:[%s5868_s9] sm:$0xf]  ;;  %v684_v20 = vld [vmem:[%s5868_s9 + $0x4] sm:$0xf]  ;;  %v5505_v50 = vld [vmem:[%s7285_s6 + $0x170] sm:$0xff]  }
  0x18   : > { %s4278_s25 = sshll.u32 %s598_s21, 2  ;;  %s7331_s20 = smov (!%p5849_p9, %s7329_s20), 15  ;;  %v5507_v51 = vld [vmem:[%s7285_s6 + $0x130] sm:$0xff]   ;;  %v5516_v55 = vld [vmem:[%s7285_s6 + $0x28] sm:$0xff]   ;;  %v5518_v56 = vld [vmem:[%s7285_s6 + $0x60] sm:$0xff]  }
  0x19   : > { %4850 = vmatpush3.bf16.msra.mxu0 %v5483_v5  ;;  %5431 = vmatpush3.bf16.msra.mxu1 %v5483_v5  ;;  %s5875_s27 = scalar_lea.vmem %s7280_s1, %s4278_s25  ;;  %s5880_s19 = scalar_lea.vmem %s7283_s4, %s4278_s25  ;;  %v5517_v58 = vld [vmem:[%s7285_s6 + $0x128] sm:$0xff]   ;;  %v5520_v59 = vld [vmem:[%s7285_s6 + $0x20] sm:$0xff]   ;;  %v5528_v5 = vld [vmem:[%s7285_s6 + $0x58] sm:$0xff]  }
  0x1a   : > { %4851 = vmatprep.subr.bf16.mxu0 %v5484_v6  ;;  %5424 = vmatprep.subr.bf16.mxu1 %v5484_v6  ;;  %v698_v13 = vld [vmem:[%s5875_s27 + $0x18] sm:$0xf]  ;;  %v699_v14 = vld [vmem:[%s5875_s27 + $0x1c] sm:$0xf]  ;;  %s631_s21 = scalar_lea.vmem %s7282_s3, %s4274_s10  ;;  %s5898_s8 = scalar_lea.vmem %s7286_s7, %s4278_s25  ;;  %v692_v25 = vld [vmem:[%s5875_s27] sm:$0xf] }
  0x1b   : > { %715 = vst [vmem:[#allocation2 + $0x40] sm:$0xf] %v698_v13  ;;  %716 = vst [vmem:[#allocation2 + $0x48] sm:$0xf] %v699_v14  ;;  %v748_v16 = vld [vmem:[%s5880_s19 + $0x18] sm:$0xf] }
  0x1c   : > { %v749_v17 = vld [vmem:[%s5880_s19 + $0x1c] sm:$0xf]  ;;  %s5905_s14 = sshll.u32 %s7331_s20, 1  ;;  %764 = vst [vmem:[#allocation2 + $0x44] sm:$0xf] %v748_v16  ;;  %v5519_v62 = vld [vmem:[%s7285_s6 + $0x160] sm:$0xff]   ;;  %vm6049_vm3 = vmand %vm988_vm2, %vm989_vm1 }
  0x1d   : > { %4852 = vmatpush3.bf16.msra.mxu0 %v5485_v7  ;;  %5432 = vmatpush3.bf16.msra.mxu1 %v5485_v7  ;;  %765 = vst [vmem:[#allocation2 + $0x4c] sm:$0xf] %v749_v17  ;;  %s612_s10 = sadd.s32 %s5905_s14, %s5822_s17  ;;  %v736_v21 = vld [vmem:[%s631_s21] sm:$0xf]  ;;  %v737_v23 = vld [vmem:[%s631_s21 + $0x4] sm:$0xf]  ;;  %vm6150_vm6 = vmand %vm1055_vm4, %vm1056_vm5 }
  0x1e   : > { %4853 = vmatprep.subr.bf16.mxu0 %v5486_v8  ;;  %5425 = vmatprep.subr.bf16.mxu1 %v5486_v8  ;;  %s685_s20 = scalar_select %p682_p10, 1, 0  ;;  %v693_v27 = vld [vmem:[%s5875_s27 + $0x4] sm:$0xf]  ;;  %709 = vst [vmem:[#allocation2 + $0x10] sm:$0xf] %v692_v25 }
  0x1f   : > { %v742_v28 = vld [vmem:[%s5880_s19] sm:$0xf]  ;;  %v743_v29 = vld [vmem:[%s5880_s19 + $0x4] sm:$0xf]  ;;  %710 = vst [vmem:[#allocation2 + $0x18] sm:$0xf] %v693_v27 }
  0x20   : > { %v686_v26 = vstv %s685_s20  ;;  %758 = vst [vmem:[#allocation2 + $0x14] sm:$0xf] %v742_v28  ;;  %759 = vst [vmem:[#allocation2 + $0x1c] sm:$0xf] %v743_v29  ;;  %v700_v32 = vld [vmem:[%s5875_s27 + $0x20] sm:$0xf] }
  0x21   : > { %4854 = vmatpush3.bf16.msra.mxu0 %v5487_v9  ;;  %5433 = vmatpush3.bf16.msra.mxu1 %v5487_v9  ;;  %vm5923_vm0 = vcmp.eq.s32.totalorder %v686_v26, 1  ;;  %v701_v33 = vld [vmem:[%s5875_s27 + $0x24] sm:$0xf]  ;;  %717 = vst [vmem:[#allocation2 + $0x50] sm:$0xf] %v700_v32  ;;  %v5530_v7 = vld [vmem:[%s7285_s6 + $0x18] sm:$0xff]  }
  0x22   : > { %4855 = vmatprep.subr.bf16.mxu0 %v5488_v10  ;;  %5426 = vmatprep.subr.bf16.mxu1 %v5488_v10  ;;  %v688_v34 = vsel %vm5923_vm0, %v683_v19, 0  ;;  %v689_v35 = vsel %vm5923_vm0, %v684_v20, 0  ;;  %v738_v36 = vsel %vm5923_vm0, %v736_v21, 0  ;;  %v739_v37 = vsel %vm5923_vm0, %v737_v23, 0  ;;  %718 = vst [vmem:[#allocation2 + $0x58] sm:$0xf] %v701_v33 }
  0x23   : > { %690 = vst [vmem:[#allocation2] sm:$0xf] %v688_v34  ;;  %691 = vst [vmem:[#allocation2 + $0x8] sm:$0xf] %v689_v35  ;;  %v5945_v40 = vld [vmem:[#allocation2 + $0x40] ss:$8 sps:$4 sm:$0xff]  }
  0x24   : > { %740 = vst [vmem:[#allocation2 + $0x4] sm:$0xf] %v738_v36  ;;  %741 = vst [vmem:[#allocation2 + $0xc] sm:$0xf] %v739_v37  ;;  %v5943_v39 = vld [vmem:[#allocation2 + $0x44] ss:$8 sps:$4 sm:$0xff]  }
  0x25   : > { %4856 = vmatpush3.bf16.msra.mxu0 %v5489_v11  ;;  %5434 = vmatpush3.bf16.msra.mxu1 %v5489_v11  ;;  %v750_v41 = vld [vmem:[%s5880_s19 + $0x20] sm:$0xf]  ;;  %v751_v42 = vld [vmem:[%s5880_s19 + $0x24] sm:$0xf]  ;;  %v694_v60 = vld [vmem:[%s5875_s27 + $0x8] sm:$0xf] }
  0x26   : > { %4857 = vmatprep.subr.bf16.mxu0 %v5490_v12  ;;  %5427 = vmatprep.subr.bf16.mxu1 %v5490_v12  ;;  %766 = vst [vmem:[#allocation2 + $0x54] sm:$0xf] %v750_v41  ;;  %767 = vst [vmem:[#allocation2 + $0x5c] sm:$0xf] %v751_v42  ;;  %v5992_v57 = vld [vmem:[#allocation2 + $0x10] ss:$8 sps:$4 sm:$0xff]  }
  0x27   : > { %1315 = vmatprep.mubr.bf16.mxu1 %v5943_v39  ;;  %v5963_v47 = vld [vmem:[#allocation2 + $0x14] ss:$8 sps:$4 sm:$0xff]   ;;  %v695_v61 = vld [vmem:[%s5875_s27 + $0xc] sm:$0xf]  ;;  %711 = vst [vmem:[#allocation2 + $0x20] sm:$0xf] %v694_v60 }
  0x28   : > { %712 = vst [vmem:[#allocation2 + $0x28] sm:$0xf] %v695_v61  ;;  %v744_v63 = vld [vmem:[%s5880_s19 + $0x8] sm:$0xf]  ;;  %v745_v0 = vld [vmem:[%s5880_s19 + $0xc] sm:$0xf] }
  0x29   : > { %4858 = vmatpush3.bf16.msra.mxu0 %v5491_v15  ;;  %5435 = vmatpush3.bf16.msra.mxu1 %v5491_v15  ;;  %v5978_v53 = vld [vmem:[#allocation2 + $0x50] ss:$8 sps:$4 sm:$0xff]   ;;  %v702_v1 = vld [vmem:[%s5875_s27 + $0x28] sm:$0xf]  ;;  %760 = vst [vmem:[#allocation2 + $0x24] sm:$0xf] %v744_v63 }
  0x2a   : > { %4859 = vmatprep.subr.bf16.mxu0 %v5492_v18  ;;  %5428 = vmatprep.subr.bf16.mxu1 %v5492_v18  ;;  %v5967_v49 = vld [vmem:[#allocation2] ss:$8 sps:$4 sm:$0xff]   ;;  %761 = vst [vmem:[#allocation2 + $0x2c] sm:$0xf] %v745_v0  ;;  %v703_v2 = vld [vmem:[%s5875_s27 + $0x2c] sm:$0xf] }
  0x2b   : > { %v5965_v48 = vld [vmem:[#allocation2 + $0x4] ss:$8 sps:$4 sm:$0xff]   ;;  %719 = vst [vmem:[#allocation2 + $0x60] sm:$0xf] %v702_v1  ;;  %v752_v3 = vld [vmem:[%s5880_s19 + $0x28] sm:$0xf] }
  0x2c   : > { %1283 = vmatprep.mubr.bf16.mxu0 %v5965_v48  ;;  %v753_v4 = vld [vmem:[%s5880_s19 + $0x2c] sm:$0xf]  ;;  %720 = vst [vmem:[#allocation2 + $0x68] sm:$0xf] %v703_v2  ;;  %768 = vst [vmem:[#allocation2 + $0x64] sm:$0xf] %v752_v3 }
  0x2d   : > { %4860 = vmatpush3.bf16.msra.mxu0 %v5493_v22  ;;  %5436 = vmatpush3.bf16.msra.mxu1 %v5493_v22  ;;  %v5976_v52 = vld [vmem:[#allocation2 + $0x54] ss:$8 sps:$4 sm:$0xff]   ;;  %769 = vst [vmem:[#allocation2 + $0x6c] sm:$0xf] %v753_v4  ;;  %v5521_v6 = vld [vmem:[%s7285_s6 + $0x120] sm:$0xff]   ;;  %v924_v8 = vshrl.u32 %v5943_v39, 16 }
  0x2e   : > { %4909 = vmatprep.subr.bf16.mxu1 %v5500_v24  ;;  %4973 = vmatprep.subr.bf16.mxu0 %v5501_v31  ;;  %v5529_v9 = vld [vmem:[%s7285_s6 + $0x158] sm:$0xff]   ;;  %v868_v10 = vshrl.u32 %v5965_v48, 16  ;;  %v5532_v11 = vld [vmem:[%s7285_s6 + $0x50] sm:$0xff]   ;;  %v882_v12 = vshrl.u32 %v5963_v47, 16  ;;  %v861_v13 = vshrl.u32 %v5967_v49, 16  ;;  %v864_v15 = vshll.u32 %v5967_v49, 16 }
  0x2f   : > { %v5531_v14 = vld [vmem:[%s7285_s6 + $0x118] sm:$0xff]   ;;  %v5533_v17 = vld [vmem:[%s7285_s6 + $0x150] sm:$0xff]   ;;  %v885_v18 = vshll.u32 %v5963_v47, 16  ;;  %v871_v21 = vshll.u32 %v5965_v48, 16  ;;  %v6054_v23 = vld [vmem:[#allocation2 + $0x20] ss:$8 sps:$4 sm:$0xff]  }
  0x30   : > { %1316 = vmatmul.mubr.bf16.vlgmr.msra.gmra.mxu1 %v5945_v40  ;;  %1284 = vmatmul.mubr.bf16.vlgmr.msra.gmra.mxu0 %v5967_v49  ;;  %v870_v20 = vrot.slane %v868_v10, 7  ;;  %v5534_v25 = vld [vmem:[%s7285_s6 + $0x10] sm:$0xff]   ;;  %v863_v26 = vrot.slane %v861_v13, 7  ;;  %v875_v29 = vshrl.u32 %v5992_v57, 16  ;;  %v5542_v37 = vld [vmem:[%s7285_s6 + $0x48] sm:$0xff]   ;;  %v884_v41 = vrot.slane %v882_v12, 7 }
  0x31   : > { %4910 = vmatpush3.bf16.msra.mxu1 %v5502_v38  ;;  %4974 = vmatpush3.bf16.msra.mxu0 %v5503_v45  ;;  %v6036_v16 = vld [vmem:[#allocation2 + $0x24] ss:$8 sps:$4 sm:$0xff]   ;;  %v5535_v27 = vld [vmem:[%s7285_s6 + $0x110] sm:$0xff]   ;;  %v1007_v60 = vrot.slane %v864_v15, 1  ;;  %v1013_v0 = vrot.slane %v885_v18, 1  ;;  %s4285_s24 = sshll.u32 %s612_s10, 2 }
  0x32   : > { %4911 = vmatprep.subr.bf16.mxu1 %v5504_v43  ;;  %1291 = vmatprep.mubr.bf16.mxu0 %v5963_v47  ;;  %v696_v28 = vld [vmem:[%s5875_s27 + $0x10] sm:$0xf]  ;;  %v697_v30 = vld [vmem:[%s5875_s27 + $0x14] sm:$0xf]  ;;  %v873_v38 = vor.u32 %v871_v21, %v870_v20  ;;  %v5543_v42 = vld [vmem:[%s7285_s6 + $0x148] sm:$0xff]   ;;  %v6088_v43 = vor.u32 %v864_v15, %v863_v26  ;;  %v896_v1 = vshrl.u32 %v6036_v16, 16  ;;  %s614_s10 = scalar_lea.vmem %s7281_s2, %s4285_s24  ;;  %s659_s18 = scalar_lea.vmem %s7284_s5, %s4285_s24 }
  0x33   : > { %4975 = vmatprep.subr.bf16.mxu0 %v5505_v50  ;;  %1323 = vmatprep.mubr.bf16.mxu1 %v5976_v52  ;;  %v6056_v24 = vld [vmem:[#allocation2 + $0x60] ss:$8 sps:$4 sm:$0xff]   ;;  %713 = vst [vmem:[#allocation2 + $0x30] sm:$0xf] %v696_v28  ;;  %v746_v31 = vld [vmem:[%s5880_s19 + $0x10] sm:$0xf] }
  0x34   : > { %v6042_v19 = vld [vmem:[#allocation2 + $0x64] ss:$8 sps:$4 sm:$0xff]   ;;  %v747_v32 = vld [vmem:[%s5880_s19 + $0x14] sm:$0xf]  ;;  %714 = vst [vmem:[#allocation2 + $0x38] sm:$0xf] %v697_v30 }
  0x35   : > { %4912 = vmatpush3.bf16.msra.mxu1 %v5506_v44  ;;  %4976 = vmatpush3.bf16.msra.mxu0 %v5507_v51  ;;  %762 = vst [vmem:[#allocation2 + $0x34] sm:$0xf] %v746_v31  ;;  %763 = vst [vmem:[#allocation2 + $0x3c] sm:$0xf] %v747_v32  ;;  %v704_v33 = vld [vmem:[%s5875_s27 + $0x30] sm:$0xf] }
  0x36   : > { %4913 = vmatprep.subr.bf16.mxu1 %v5514_v46  ;;  %4977 = vmatprep.subr.bf16.mxu0 %v5515_v54  ;;  %v705_v34 = vld [vmem:[%s5875_s27 + $0x34] sm:$0xf]  ;;  %v754_v35 = vld [vmem:[%s5880_s19 + $0x30] sm:$0xf]  ;;  %721 = vst [vmem:[#allocation2 + $0x70] sm:$0xf] %v704_v33 }
  0x37   : > { %722 = vst [vmem:[#allocation2 + $0x78] sm:$0xf] %v705_v34  ;;  %v755_v36 = vld [vmem:[%s5880_s19 + $0x34] sm:$0xf]  ;;  %770 = vst [vmem:[#allocation2 + $0x74] sm:$0xf] %v754_v35 }
  0x38   : > { %1324 = vmatmul.mubr.bf16.gmra.mxu1 %v5978_v53  ;;  %1292 = vmatmul.mubr.bf16.gmra.mxu0 %v5992_v57  ;;  %771 = vst [vmem:[#allocation2 + $0x7c] sm:$0xf] %v755_v36  ;;  %v877_v44 = vrot.slane %v875_v29, 7  ;;  %v5544_v45 = vld [vmem:[%s7285_s6 + $0x8] sm:$0xff]   ;;  %v1009_v46 = vrot.slane %v871_v21, 1  ;;  %v878_v51 = vshll.u32 %v5992_v57, 16 }
  0x39   : > { %4914 = vmatpush3.bf16.msra.mxu1 %v5516_v55  ;;  %4978 = vmatpush3.bf16.msra.mxu0 %v5517_v58  ;;  %v5545_v50 = vld [vmem:[%s7285_s6 + $0x108] sm:$0xff]   ;;  %v5546_v54 = vld [vmem:[%s7285_s6 + $0x40] sm:$0xff]   ;;  %v992_v55 = vsel %vm6049_vm3, 0, %v873_v38  ;;  %v892_v20 = vshll.u32 %v6054_v23, 16  ;;  %v5553_v21 = vld [vmem:[%s7285_s6 + $0x238] sm:$0xff]   ;;  %p725_p11 = scmp.lt.s32.totalorder %s5695_s30, 1 }
  0x3a   : > { %4915 = vmatprep.subr.bf16.mxu1 %v5518_v56  ;;  %4979 = vmatprep.subr.bf16.mxu0 %v5519_v62  ;;  %v887_v56 = vor.u32 %v885_v18, %v884_v41  ;;  %v880_v61 = vor.u32 %v878_v51, %v877_v44  ;;  %v5547_v63 = vld [vmem:[%s7285_s6 + $0x140] sm:$0xff]   ;;  %v1010_v4 = vor.u32 %v1009_v46, %v868_v10  ;;  %v1011_v15 = vrot.slane %v878_v51, 1  ;;  %v5551_v26 = vld [vmem:[%s7285_s6 + $0x1b8] sm:$0xff]   ;;  %v5554_v28 = vld [vmem:[%s7285_s6 + $0x1f0] sm:$0xff]   ;;  %p4759_p12 = scmp.ne.s32.totalorder %s5695_s30, 0 }
  0x3b   : > { %1299 = vmatprep.mubr.bf16.mxu0 %v6036_v16  ;;  %1331 = vmatprep.mubr.bf16.mxu1 %v6042_v19  ;;  %v6113_v62 = vld [vmem:[#allocation2 + $0x30] ss:$8 sps:$4 sm:$0xff]   ;;  %v5549_v48 = vld [vmem:[%s7285_s6 + $0x100] sm:$0xff]   ;;  %v1015_v31 = vrot.slane %v892_v20, 1  ;;  %v5558_v41 = vld [vmem:[%s7285_s6 + $0x1e8] sm:$0xff]  }
  0x3c   : > { %v6106_v58 = vld [vmem:[#allocation2 + $0x34] ss:$8 sps:$4 sm:$0xff]   ;;  %v6145_v10 = vsel %vm6049_vm3, 0, %v880_v61  ;;  %v1059_v49 = vsel %vm6150_vm6, %v1010_v4, 0  ;;  %v1012_v32 = vor.u32 %v1011_v15, %v875_v29  ;;  %v5561_v46 = vld [vmem:[%s7285_s6 + $0x228] sm:$0xff]   ;;  %v927_v61 = vshll.u32 %v5943_v39, 16 }
  0x3d   : > { %4916 = vmatpush3.bf16.msra.mxu1 %v5520_v59  ;;  %4980 = vmatpush3.bf16.msra.mxu0 %v5521_v6  ;;  %v991_v59 = vsel %vm6049_vm3, 0, %v6088_v43  ;;  %v5548_v6 = vld [vmem:[%s7285_s6] sm:$0xff]   ;;  %v5556_v33 = vld [vmem:[%s7285_s6 + $0x270] sm:$0xff]   ;;  %v910_v34 = vshrl.u32 %v6106_v58, 16  ;;  %v5560_v43 = vld [vmem:[%s7285_s6 + $0x268] sm:$0xff]   ;;  %v926_v4 = vrot.slane %v924_v8, 7 }
  0x3e   : > { %4917 = vmatprep.subr.bf16.mxu1 %v5528_v5  ;;  %4981 = vmatprep.subr.bf16.mxu0 %v5529_v9  ;;  %v6124_v3 = vld [vmem:[#allocation2 + $0x70] ss:$8 sps:$4 sm:$0xff]   ;;  %v899_v5 = vshll.u32 %v6036_v16, 16  ;;  %v1008_v9 = vor.u32 %v1007_v60, %v861_v13  ;;  %v5564_v60 = vld [vmem:[%s7285_s6 + $0x260] sm:$0xff]   ;;  %s728_s29 = scalar_select %p725_p11, 1, 0 }
  0x3f   : > { %v6122_v2 = vld [vmem:[#allocation2 + $0x74] ss:$8 sps:$4 sm:$0xff]  }
  0x40   : > { %1300 = vmatmul.mubr.bf16.gmra.mxu0 %v6054_v23  ;;  %1332 = vmatmul.mubr.bf16.gmra.mxu1 %v6056_v24  ;;  %v5550_v13 = vld [vmem:[%s7285_s6 + $0x1f8] sm:$0xff]   ;;  %v1017_v18 = vrot.slane %v899_v5, 1  ;;  %v1058_v47 = vsel %vm6150_vm6, %v1008_v9, 0  ;;  %v5557_v35 = vld [vmem:[%s7285_s6 + $0x230] sm:$0xff]  }
  0x41   : > { %4918 = vmatpush3.bf16.msra.mxu1 %v5530_v7  ;;  %4982 = vmatpush3.bf16.msra.mxu0 %v5531_v14  ;;  %v6135_v7 = vsel %vm6049_vm3, 0, %v887_v56  ;;  %v1014_v14 = vor.u32 %v1013_v0, %v882_v12  ;;  %v5552_v12 = vld [vmem:[%s7285_s6 + $0x278] sm:$0xff]   ;;  %v5555_v57 = vld [vmem:[%s7285_s6 + $0x1b0] sm:$0xff]   ;;  %v906_v56 = vshll.u32 %v6113_v62, 16 }
  0x42   : > { %4919 = vmatprep.subr.bf16.mxu1 %v5532_v11  ;;  %4983 = vmatprep.subr.bf16.mxu0 %v5533_v17  ;;  %v898_v17 = vrot.slane %v896_v1, 7  ;;  %v1018_v36 = vor.u32 %v1017_v18, %v896_v1  ;;  %v5565_v1 = vld [vmem:[%s7285_s6 + $0x220] sm:$0xff]   ;;  %v5566_v15 = vld [vmem:[%s7285_s6 + $0x1d8] sm:$0xff]   ;;  %v5572_v39 = vld [vmem:[%s7285_s6 + $0x250] sm:$0xff]  }
  0x43   : > { %1307 = vmatprep.mubr.bf16.mxu0 %v6106_v58  ;;  %1339 = vmatprep.mubr.bf16.mxu1 %v6122_v2  ;;  %v5568_v18 = vld [vmem:[%s7285_s6 + $0x258] sm:$0xff]  }
  0x44   : > { %v901_v30 = vor.u32 %v899_v5, %v898_v17  ;;  %v6212_v44 = vsel %vm6150_vm6, %v1018_v36, 0  ;;  %v1025_v17 = vrot.slane %v927_v61, 1  ;;  %v5571_v36 = vld [vmem:[%s7285_s6 + $0x190] sm:$0xff]  }
  0x45   : > { %4920 = vmatpush3.bf16.msra.mxu1 %v5534_v25  ;;  %4984 = vmatpush3.bf16.msra.mxu0 %v5535_v27  ;;  %v6172_v25 = vsel %vm6150_vm6, %v1014_v14, 0  ;;  %v889_v27 = vshrl.u32 %v6054_v23, 16  ;;  %v1019_v14 = vrot.slane %v906_v56, 1 }
  0x46   : > { %4921 = vmatprep.subr.bf16.mxu1 %v5542_v37  ;;  %4985 = vmatprep.subr.bf16.mxu0 %v5543_v42  ;;  %v913_v37 = vshll.u32 %v6106_v58, 16  ;;  %v6198_v38 = vsel %vm6049_vm3, 0, %v901_v30  ;;  %v6205_v42 = vsel %vm6150_vm6, %v1012_v32, 0  ;;  %v5570_v30 = vld [vmem:[%s7285_s6 + $0x1d0] sm:$0xff]   ;;  %v1026_v32 = vor.u32 %v1025_v17, %v924_v8  ;;  %v5574_v8 = vld [vmem:[%s7285_s6 + $0x1c8] sm:$0xff]  }
  0x47   : > { %v891_v29 = vrot.slane %v889_v27, 7 }
  0x48   : > { %1308 = vmatmul.mubr.bf16.gmra.mxu0 %v6113_v62  ;;  %1340 = vmatmul.mubr.bf16.gmra.mxu1 %v6124_v3  ;;  %v1021_v51 = vrot.slane %v913_v37, 1 }
  0x49   : > { %4922 = vmatpush3.bf16.msra.mxu1 %v5544_v45  ;;  %4986 = vmatpush3.bf16.msra.mxu0 %v5545_v50  ;;  %v1016_v45 = vor.u32 %v1015_v31, %v889_v27  ;;  %v912_v50 = vrot.slane %v910_v34, 7  ;;  %v894_v5 = vor.u32 %v892_v20, %v891_v29 }
  0x4a   : > { %4923 = vmatprep.subr.bf16.mxu1 %v5546_v54  ;;  %4987 = vmatprep.subr.bf16.mxu0 %v5547_v63  ;;  %v5559_v54 = vld [vmem:[%s7285_s6 + $0x1a8] sm:$0xff]   ;;  %v1022_v0 = vor.u32 %v1021_v51, %v910_v34 }
  0x4b   : > { %1476 = vmatprep.mubr.bf16.mxu1 %v992_v55  ;;  %1702 = vmatprep.mubr.bf16.mxu0 %v1059_v49  ;;  %v903_v55 = vshrl.u32 %v6113_v62, 16  ;;  %v6234_v63 = vsel %vm6150_vm6, %v1016_v45, 0  ;;  %v915_v9 = vor.u32 %v913_v37, %v912_v50  ;;  %v920_v49 = vshll.u32 %v5945_v40, 16  ;;  %v5575_v50 = vld [vmem:[%s7285_s6 + $0x188] sm:$0xff]  }
  0x4c   : > { %v6258_v20 = vsel %vm6049_vm3, 0, %v894_v5 }
  0x4d   : > { %4924 = vmatpush3.bf16.msra.mxu1 %v5548_v6  ;;  %4988 = vmatpush3.bf16.msra.mxu0 %v5549_v48  ;;  %v905_v6 = vrot.slane %v903_v55, 7  ;;  %v5563_v48 = vld [vmem:[%s7285_s6 + $0x1a0] sm:$0xff]   ;;  %v1020_v31 = vor.u32 %v1019_v14, %v903_v55  ;;  %v1023_v34 = vrot.slane %v920_v49, 1  ;;  %v5576_v55 = vld [vmem:[%s7285_s6 + $0x248] sm:$0xff]  }
  0x4e   : > { %5037 = vmatprep.subr.bf16.mxu1 %v5550_v13  ;;  %5101 = vmatprep.subr.bf16.mxu0 %v5552_v12  ;;  %v6251_v13 = vsel %vm6150_vm6, %v1022_v0, 0  ;;  %v5569_v12 = vld [vmem:[%s7285_s6 + $0x218] sm:$0xff]  }
  0x4f   : > { %v908_v27 = vor.u32 %v906_v56, %v905_v6  ;;  %v6302_v29 = vsel %vm6150_vm6, %v1020_v31, 0  ;;  %v955_v56 = vshll.u32 %v6042_v19, 16  ;;  %v969_v31 = vshll.u32 %v6122_v2, 16 }
  0x50   : > { %1703 = vmatmul.mubr.bf16.vlgmr.msra.gmra.mxu0 %v1058_v47  ;;  %1477 = vmatmul.mubr.bf16.vlgmr.msra.gmra.mxu1 %v991_v59  ;;  %v5562_v59 = vld [vmem:[%s7285_s6 + $0x1e0] sm:$0xff]   ;;  %v5567_v47 = vld [vmem:[%s7285_s6 + $0x198] sm:$0xff]  }
  0x51   : > { %5102 = vmatpush3.bf16.msra.mxu0 %v5553_v21  ;;  %1710 = vmatprep.mubr.bf16.mxu0 %v6172_v25  ;;  %v941_v21 = vshll.u32 %v5976_v52, 16  ;;  %v1033_v14 = vrot.slane %v955_v56, 1 }
  0x52   : > { %5038 = vmatpush3.bf16.msra.mxu1 %v5551_v26  ;;  %1484 = vmatprep.mubr.bf16.mxu1 %v6135_v7  ;;  %v6270_v26 = vsel %vm6049_vm3, 0, %v915_v9  ;;  %v5579_v9 = vld [vmem:[%s7285_s6 + $0x180] sm:$0xff]  }
  0x53   : > { %5039 = vmatprep.subr.bf16.mxu1 %v5554_v28  ;;  %5103 = vmatprep.subr.bf16.mxu0 %v5556_v33  ;;  %v929_v28 = vor.u32 %v927_v61, %v926_v4  ;;  %v917_v33 = vshrl.u32 %v5945_v40, 16  ;;  %v1029_v37 = vrot.slane %v941_v21, 1 }
  0x55   : > { %5104 = vmatpush3.bf16.msra.mxu0 %v5557_v35  ;;  %v938_v35 = vshrl.u32 %v5976_v52, 16  ;;  %v1000_v40 = vsel %vm6049_vm3, 0, %v929_v28  ;;  %v5573_v52 = vld [vmem:[%s7285_s6 + $0x210] sm:$0xff]   ;;  %v1024_v45 = vor.u32 %v1023_v34, %v917_v33  ;;  %v5584_v28 = vld [vmem:[%s7285_s6 + $0x378] sm:$0xff]  }
  0x56   : > { %5040 = vmatpush3.bf16.msra.mxu1 %v5555_v57  ;;  %5105 = vmatprep.subr.bf16.mxu0 %v5560_v43  ;;  %v6298_v57 = vsel %vm6049_vm3, 0, %v908_v27  ;;  %v919_v43 = vrot.slane %v917_v33, 7 }
  0x57   : > { %5041 = vmatprep.subr.bf16.mxu1 %v5558_v41  ;;  %v1067_v41 = vsel %vm6150_vm6, %v1026_v32, 0  ;;  %v1030_v51 = vor.u32 %v1029_v37, %v938_v35  ;;  %v1066_v0 = vsel %vm6150_vm6, %v1024_v45, 0 }
  0x58   : > { %1711 = vmatmul.mubr.bf16.gmra.mxu0 %v6205_v42  ;;  %1485 = vmatmul.mubr.bf16.gmra.mxu1 %v6145_v10  ;;  %v922_v61 = vor.u32 %v920_v49, %v919_v43  ;;  %v962_v43 = vshll.u32 %v6124_v3, 16 }
  0x59   : > { %1718 = vmatprep.mubr.bf16.mxu0 %v6212_v44  ;;  %5106 = vmatpush3.bf16.msra.mxu0 %v5561_v46  ;;  %v940_v46 = vrot.slane %v938_v35, 7  ;;  %v1069_v5 = vsel %vm6150_vm6, %v1030_v51, 0  ;;  %v966_v35 = vshrl.u32 %v6122_v2, 16 }
  0x5a   : > { %1492 = vmatprep.mubr.bf16.mxu1 %v6198_v38  ;;  %5042 = vmatpush3.bf16.msra.mxu1 %v5559_v54  ;;  %v934_v54 = vshll.u32 %v5978_v53, 16  ;;  %v999_v17 = vsel %vm6049_vm3, 0, %v922_v61 }
  0x5b   : > { %5043 = vmatprep.subr.bf16.mxu1 %v5562_v59  ;;  %5107 = vmatprep.subr.bf16.mxu0 %v5564_v60  ;;  %v5577_v59 = vld [vmem:[%s7285_s6 + $0x208] sm:$0xff]   ;;  %v5578_v60 = vld [vmem:[%s7285_s6 + $0x1c0] sm:$0xff]   ;;  %v943_v4 = vor.u32 %v941_v21, %v940_v46  ;;  %v948_v21 = vshll.u32 %v6056_v24, 16  ;;  %v959_v46 = vshrl.u32 %v6124_v3, 16 }
  0x5c   : > { %v1027_v6 = vrot.slane %v934_v54, 1 }
  0x5d   : > { %5108 = vmatpush3.bf16.msra.mxu0 %v5565_v1  ;;  %v931_v1 = vshrl.u32 %v5978_v53, 16  ;;  %v5580_v53 = vld [vmem:[%s7285_s6 + $0x240] sm:$0xff]   ;;  %v1031_v37 = vrot.slane %v948_v21, 1 }
  0x5e   : > { %5044 = vmatpush3.bf16.msra.mxu1 %v5563_v48  ;;  %5109 = vmatprep.subr.bf16.mxu0 %v5568_v18  ;;  %v952_v48 = vshrl.u32 %v6042_v19, 16  ;;  %v1002_v19 = vsel %vm6049_vm3, 0, %v943_v4  ;;  %v5670_v4 = vld [vmem:[#allocation2 + $0x14] ss:$8 sps:$4 sm:$0xff]  }
  0x5f   : > { %5045 = vmatprep.subr.bf16.mxu1 %v5566_v15  ;;  %v5581_v15 = vld [vmem:[%s7285_s6 + $0x200] sm:$0xff]   ;;  %v933_v49 = vrot.slane %v931_v1, 7  ;;  %v1028_v18 = vor.u32 %v1027_v6, %v931_v1  ;;  %v5588_v6 = vld [vmem:[%s7285_s6 + $0x370] sm:$0xff]  }
  0x60   : > { %1719 = vmatmul.mubr.bf16.gmra.mxu0 %v6234_v63  ;;  %1493 = vmatmul.mubr.bf16.gmra.mxu1 %v6258_v20  ;;  %v1034_v27 = vor.u32 %v1033_v14, %v952_v48  ;;  %v5671_v14 = vld [vmem:[#allocation2 + $0x10] ss:$8 sps:$4 sm:$0xff]  }
  0x61   : > { %1726 = vmatprep.mubr.bf16.mxu0 %v6251_v13  ;;  %5110 = vmatpush3.bf16.msra.mxu0 %v5569_v12  ;;  %v954_v12 = vrot.slane %v952_v48, 7  ;;  %v936_v32 = vor.u32 %v934_v54, %v933_v49  ;;  %v1068_v33 = vsel %vm6150_vm6, %v1028_v18, 0  ;;  %v1035_v54 = vrot.slane %v962_v43, 1  ;;  %v6380_v48 = vld [vmem:[#allocation2 + $0x44] ss:$8 sps:$4 sm:$0xff]  }
  0x62   : > { %1500 = vmatprep.mubr.bf16.mxu1 %v6270_v26  ;;  %5046 = vmatpush3.bf16.msra.mxu1 %v5567_v47  ;;  %v5582_v47 = vld [vmem:[%s7285_s6 + $0x2f8] sm:$0xff]   ;;  %v5593_v49 = vld [vmem:[%s7285_s6 + $0x328] sm:$0xff]  }
  0x63   : > { %5047 = vmatprep.subr.bf16.mxu1 %v5570_v30  ;;  %5111 = vmatprep.subr.bf16.mxu0 %v5572_v39  ;;  %v945_v30 = vshrl.u32 %v6056_v24, 16  ;;  %v957_v34 = vor.u32 %v955_v56, %v954_v12  ;;  %v1037_v39 = vrot.slane %v969_v31, 1  ;;  %v1001_v24 = vsel %vm6049_vm3, 0, %v936_v32  ;;  %v6407_v18 = vld [vmem:[#allocation2 + $0x40] ss:$8 sps:$4 sm:$0xff]  }
  0x64   : > { %v1036_v61 = vor.u32 %v1035_v54, %v959_v46  ;;  %v756_v12 = vld [vmem:[%s5880_s19 + $0x38] sm:$0xf]  ;;  %v1916_v32 = vshll.u32 %v6380_v48, 16 }
  0x65   : > { %5112 = vmatpush3.bf16.msra.mxu0 %v5573_v52  ;;  %v1004_v52 = vsel %vm6049_vm3, 0, %v957_v34  ;;  %v1038_v2 = vor.u32 %v1037_v39, %v966_v35  ;;  %772 = vst [vmem:[#allocation2 + $0x84] sm:$0xf] %v756_v12  ;;  %v1906_v34 = vshrl.u32 %v6407_v18, 16  ;;  %v1909_v39 = vshll.u32 %v6407_v18, 16  ;;  %v5634_v12 = vld [vmem:[%s7285_s6 + $0x478] sm:$0xff]  }
  0x66   : > { %5048 = vmatpush3.bf16.msra.mxu1 %v5571_v36  ;;  %5113 = vmatprep.subr.bf16.mxu0 %v5576_v55  ;;  %v1071_v36 = vsel %vm6150_vm6, %v1034_v27, 0  ;;  %v5591_v27 = vld [vmem:[%s7285_s6 + $0x2a8] sm:$0xff]  }
  0x67   : > { %5049 = vmatprep.subr.bf16.mxu1 %v5574_v8  ;;  %v968_v8 = vrot.slane %v966_v35, 7  ;;  %v1073_v55 = vsel %vm6150_vm6, %v1038_v2, 0  ;;  %v5600_v35 = vld [vmem:[%s7285_s6 + $0x320] sm:$0xff]   ;;  %v5613_v2 = vld [vmem:[%s7285_s6 + $0x350] sm:$0xff]  }
  0x68   : > { %1727 = vmatmul.mubr.bf16.gmra.mxu0 %v6302_v29  ;;  %1501 = vmatmul.mubr.bf16.gmra.mxu1 %v6298_v57 }
  0x69   : > { %1734 = vmatprep.mubr.bf16.mxu0 %v1067_v41  ;;  %5114 = vmatpush3.bf16.msra.mxu0 %v5577_v59  ;;  %v1032_v41 = vor.u32 %v1031_v37, %v945_v30  ;;  %v961_v59 = vrot.slane %v959_v46, 7 }
  0x6a   : > { %1508 = vmatprep.mubr.bf16.mxu1 %v1000_v40  ;;  %5050 = vmatpush3.bf16.msra.mxu1 %v5575_v50  ;;  %v947_v40 = vrot.slane %v945_v30, 7  ;;  %v971_v50 = vor.u32 %v969_v31, %v968_v8  ;;  %v5597_v30 = vld [vmem:[%s7285_s6 + $0x2e0] sm:$0xff]  }
  0x6b   : > { %5051 = vmatprep.subr.bf16.mxu1 %v5578_v60  ;;  %5115 = vmatprep.subr.bf16.mxu0 %v5580_v53  ;;  %v1070_v51 = vsel %vm6150_vm6, %v1032_v41, 0  ;;  %v964_v3 = vor.u32 %v962_v43, %v961_v59  ;;  %v5587_v53 = vld [vmem:[%s7285_s6 + $0x2b0] sm:$0xff]   ;;  %v5605_v43 = vld [vmem:[%s7285_s6 + $0x298] sm:$0xff]  }
  0x6c   : > { %v950_v45 = vor.u32 %v948_v21, %v947_v40  ;;  %v1006_v60 = vsel %vm6049_vm3, 0, %v971_v50  ;;  %v757_v21 = vld [vmem:[%s5880_s19 + $0x3c] sm:$0xf] }
  0x6d   : > { %5116 = vmatpush3.bf16.msra.mxu0 %v5581_v15  ;;  %v1005_v1 = vsel %vm6049_vm3, 0, %v964_v3  ;;  %v5589_v15 = vld [vmem:[%s7285_s6 + $0x330] sm:$0xff]   ;;  %773 = vst [vmem:[#allocation2 + $0x8c] sm:$0xf] %v757_v21  ;;  %v5607_v40 = vld [vmem:[%s7285_s6 + $0x318] sm:$0xff]  }
  0x6e   : > { %5052 = vmatpush3.bf16.msra.mxu1 %v5579_v9  ;;  %5229 = vmatprep.subr.bf16.mxu0 %v5584_v28  ;;  %v1003_v56 = vsel %vm6049_vm3, 0, %v950_v45  ;;  %v5583_v9 = vld [vmem:[%s7285_s6 + $0x2b8] sm:$0xff]   ;;  %v6498_v3 = vld [vmem:[#allocation2 + $0x60] ss:$8 sps:$4 sm:$0xff]  }
  0x6f   : > { %5165 = vmatprep.subr.bf16.mxu1 %v5582_v47  ;;  %v707_v47 = vld [vmem:[%s5875_s27 + $0x3c] sm:$0xf] }
  0x70   : > { %1735 = vmatmul.mubr.bf16.gmra.mxu0 %v1066_v0  ;;  %1509 = vmatmul.mubr.bf16.gmra.mxu1 %v999_v17  ;;  %v1072_v0 = vsel %vm6150_vm6, %v1036_v61, 0  ;;  %v5590_v17 = vld [vmem:[%s7285_s6 + $0x2e8] sm:$0xff]   ;;  %724 = vst [vmem:[#allocation2 + $0x88] sm:$0xf] %v707_v47  ;;  %v6419_v28 = vld [vmem:[#allocation2 + $0x54] ss:$8 sps:$4 sm:$0xff]  }
  0x71   : > { %1742 = vmatprep.mubr.bf16.mxu0 %v1069_v5  ;;  %1516 = vmatprep.mubr.bf16.mxu1 %v1002_v19  ;;  %v5585_v5 = vld [vmem:[%s7285_s6 + $0x338] sm:$0xff]   ;;  %v1913_v19 = vshrl.u32 %v6380_v48, 16  ;;  %v1930_v41 = vshll.u32 %v6419_v28, 16  ;;  %v1937_v47 = vshll.u32 %v6498_v3, 16 }
  0x73   : > { %v1915_v31 = vrot.slane %v1913_v19, 7 }
  0x75   : > { %v1918_v37 = vor.u32 %v1916_v32, %v1915_v31 }
  0x77   : > { %v6470_v45 = vsel %vm6049_vm3, 0, %v1918_v37  ;;  %v6563_v37 = vld [vmem:[#allocation2 + $0x84] ss:$8 sps:$4 sm:$0xff]  }
  0x78   : > { %1743 = vmatmul.mubr.bf16.gmra.mxu0 %v1068_v33  ;;  %1517 = vmatmul.mubr.bf16.gmra.mxu1 %v1001_v24  ;;  %v6428_v33 = vld [vmem:[#allocation2 + $0x50] ss:$8 sps:$4 sm:$0xff]  }
  0x79   : > { %1750 = vmatprep.mubr.bf16.mxu0 %v1071_v36  ;;  %1524 = vmatprep.mubr.bf16.mxu1 %v1004_v52  ;;  %v5606_v36 = vld [vmem:[%s7285_s6 + $0x358] sm:$0xff]   ;;  %v6456_v52 = vld [vmem:[#allocation2 + $0x64] ss:$8 sps:$4 sm:$0xff]   ;;  %v1923_v50 = vshll.u32 %v6428_v33, 16 }
  0x7a   : > { %v5604_v24 = vld [vmem:[%s7285_s6 + $0x2d8] sm:$0xff]   ;;  %v1941_v54 = vshrl.u32 %v6456_v52, 16  ;;  %v1944_v61 = vshll.u32 %v6456_v52, 16 }
  0x80   : > { %1751 = vmatmul.mubr.bf16.gmra.mxu0 %v1070_v51  ;;  %1525 = vmatmul.mubr.bf16.gmra.mxu1 %v1003_v56  ;;  %v5611_v51 = vld [vmem:[%s7285_s6 + $0x2d0] sm:$0xff]   ;;  %v5620_v56 = vld [vmem:[%s7285_s6 + $0x348] sm:$0xff]  }
  0x81   : > { %1758 = vmatprep.mubr.bf16.mxu0 %v1073_v55  ;;  %1532 = vmatprep.mubr.bf16.mxu1 %v1006_v60  ;;  %v5612_v60 = vld [vmem:[%s7285_s6 + $0x290] sm:$0xff]  }
  0x88   : > { %1759 = vmatmul.mubr.bf16.gmra.mxu0 %v1072_v0  ;;  %1533 = vmatmul.mubr.bf16.gmra.mxu1 %v1005_v1  ;;  %v5618_v0 = vld [vmem:[%s7285_s6 + $0x2c8] sm:$0xff]   ;;  %v1943_v1 = vrot.slane %v1941_v54, 7 }
  0x89   : > { %2490 = vmatprep.mubr.bf16.mxu0 %v5670_v4  ;;  %2232 = vmatprep.mubr.bf16.mxu1 %v6135_v7  ;;  %v5586_v7 = vld [vmem:[%s7285_s6 + $0x2f0] sm:$0xff]  }
  0x8a   : > { %v6505_v4 = vld [vmem:[#allocation2 + $0x74] ss:$8 sps:$4 sm:$0xff]  }
  0x8b   : > { %v1955_v21 = vshrl.u32 %v6505_v4, 16 }
  0x90   : > { %2491 = vmatmul.mubr.bf16.vlgmr.msra.gmra.mxu0 %v5671_v14  ;;  %2233 = vmatmul.mubr.bf16.vlgmr.msra.gmra.mxu1 %v6145_v10  ;;  %v706_v10 = vld [vmem:[%s5875_s27 + $0x38] sm:$0xf]  ;;  %v5627_v14 = vld [vmem:[%s7285_s6 + $0x340] sm:$0xff]  }
  0x91   : > { %5230 = vmatpush3.bf16.msra.mxu0 %v5585_v5  ;;  %2498 = vmatprep.mubr.bf16.mxu0 %v6036_v16  ;;  %v5592_v16 = vld [vmem:[%s7285_s6 + $0x368] sm:$0xff]   ;;  %723 = vst [vmem:[#allocation2 + $0x80] sm:$0xf] %v706_v10  ;;  %v5628_v10 = vld [vmem:[%s7285_s6 + $0x300] sm:$0xff]  }
  0x92   : > { %5231 = vmatprep.subr.bf16.mxu0 %v5588_v6  ;;  %5166 = vmatpush3.bf16.msra.mxu1 %v5583_v9  ;;  %v5621_v5 = vld [vmem:[%s7285_s6 + $0x308] sm:$0xff]   ;;  %v6514_v9 = vld [vmem:[#allocation2 + $0x70] ss:$8 sps:$4 sm:$0xff]  }
  0x93   : > { %2240 = vmatprep.mubr.bf16.mxu1 %v6198_v38  ;;  %5167 = vmatprep.subr.bf16.mxu1 %v5586_v7  ;;  %v5599_v38 = vld [vmem:[%s7285_s6 + $0x360] sm:$0xff]  }
  0x95   : > { %5232 = vmatpush3.bf16.msra.mxu0 %v5589_v15 }
  0x96   : > { %5233 = vmatprep.subr.bf16.mxu0 %v5592_v16  ;;  %5168 = vmatpush3.bf16.msra.mxu1 %v5587_v53  ;;  %v5619_v53 = vld [vmem:[%s7285_s6 + $0x288] sm:$0xff]   ;;  %v1946_v16 = vor.u32 %v1944_v61, %v1943_v1 }
  0x97   : > { %5169 = vmatprep.subr.bf16.mxu1 %v5590_v17  ;;  %v5625_v17 = vld [vmem:[%s7285_s6 + $0x2c0] sm:$0xff]  }
  0x98   : > { %2499 = vmatmul.mubr.bf16.gmra.mxu0 %v6054_v23  ;;  %2241 = vmatmul.mubr.bf16.gmra.mxu1 %v6258_v20  ;;  %v1927_v23 = vshrl.u32 %v6419_v28, 16  ;;  %v1920_v20 = vshrl.u32 %v6428_v33, 16  ;;  %v6557_v31 = vsel %vm6049_vm3, 0, %v1946_v16 }
  0x99   : > { %2506 = vmatprep.mubr.bf16.mxu0 %v6106_v58  ;;  %5234 = vmatpush3.bf16.msra.mxu0 %v5593_v49  ;;  %v5598_v58 = vld [vmem:[%s7285_s6 + $0x2a0] sm:$0xff]   ;;  %v1934_v49 = vshrl.u32 %v6498_v3, 16 }
  0x9a   : > { %5235 = vmatprep.subr.bf16.mxu0 %v5599_v38  ;;  %2248 = vmatprep.mubr.bf16.mxu1 %v6270_v26  ;;  %v1908_v26 = vrot.slane %v1906_v34, 7  ;;  %v1929_v8 = vrot.slane %v1927_v23, 7  ;;  %v1922_v46 = vrot.slane %v1920_v20, 7  ;;  %v1948_v38 = vshrl.u32 %v6514_v9, 16 }
  0x9b   : > { %5170 = vmatpush3.bf16.msra.mxu1 %v5591_v27  ;;  %v5626_v27 = vld [vmem:[%s7285_s6 + $0x280] sm:$0xff]  }
  0x9c   : > { %5171 = vmatprep.subr.bf16.mxu1 %v5597_v30  ;;  %v1911_v55 = vor.u32 %v1909_v39, %v1908_v26  ;;  %v1932_v59 = vor.u32 %v1930_v41, %v1929_v8  ;;  %v5632_v30 = vld [vmem:[%s7285_s6 + $0x3f8] sm:$0xff]   ;;  %v1950_v26 = vrot.slane %v1948_v38, 7  ;;  %v6573_v8 = vld [vmem:[#allocation2 + $0x24] ss:$8 sps:$4 sm:$0xff]  }
  0x9d   : > { %5236 = vmatpush3.bf16.msra.mxu0 %v5600_v35  ;;  %v1936_v35 = vrot.slane %v1934_v49, 7  ;;  %v2905_v1 = vshll.u32 %v6573_v8, 16 }
  0x9e   : > { %5237 = vmatprep.subr.bf16.mxu0 %v5606_v36  ;;  %v6512_v6 = vsel %vm6049_vm3, 0, %v1911_v55  ;;  %v6521_v7 = vsel %vm6049_vm3, 0, %v1932_v59  ;;  %v1958_v36 = vshll.u32 %v6505_v4, 16  ;;  %v1972_v55 = vshll.u32 %v6563_v37, 16 }
  0x9f   : > { %5172 = vmatpush3.bf16.msra.mxu1 %v5598_v58  ;;  %v1951_v58 = vshll.u32 %v6514_v9, 16 }
  0xa0   : > { %2507 = vmatmul.mubr.bf16.gmra.mxu0 %v6113_v62  ;;  %5173 = vmatprep.subr.bf16.mxu1 %v5604_v24  ;;  %v5614_v62 = vld [vmem:[%s7285_s6 + $0x310] sm:$0xff]   ;;  %v1957_v24 = vrot.slane %v1955_v21, 7 }
  0xa1   : > { %2514 = vmatprep.mubr.bf16.mxu0 %v6380_v48  ;;  %5238 = vmatpush3.bf16.msra.mxu0 %v5607_v40  ;;  %v1939_v40 = vor.u32 %v1937_v47, %v1936_v35  ;;  %v6627_v35 = vld [vmem:[#allocation2 + $0x34] ss:$8 sps:$4 sm:$0xff]  }
  0xa2   : > { %2249 = vmatmul.mubr.bf16.gmra.mxu1 %v6298_v57  ;;  %5239 = vmatprep.subr.bf16.mxu0 %v5613_v2  ;;  %v1925_v57 = vor.u32 %v1923_v50, %v1922_v46  ;;  %v1969_v2 = vshrl.u32 %v6563_v37, 16  ;;  %v1960_v46 = vor.u32 %v1958_v36, %v1957_v24  ;;  %v729_v24 = vstv %s728_s29  ;;  %v5652_v48 = vld [vmem:[%s7285_s6 + $0x398] sm:$0xff]  }
  0xa3   : > { %2256 = vmatprep.mubr.bf16.mxu1 %v6470_v45  ;;  %5174 = vmatpush3.bf16.msra.mxu1 %v5605_v43  ;;  %v6576_v43 = vld [vmem:[#allocation2 + $0x80] ss:$8 sps:$4 sm:$0xff]   ;;  %vm730_vm7 = vcmp.eq.s32.totalorder %v729_v24, 1  ;;  %v7290_v24 = vshrl.u32 %v6627_v35, 16 }
  0xa4   : > { %5175 = vmatprep.subr.bf16.mxu1 %v5611_v51  ;;  %v6529_v15 = vsel %vm6049_vm3, 0, %v1925_v57  ;;  %v6587_v51 = vsel %vm6049_vm3, 0, %v1939_v40  ;;  %v1971_v59 = vrot.slane %v1969_v2, 7  ;;  %v6599_v57 = vsel %vm6049_vm3, 0, %v1960_v46 }
  0xa5   : > { %5240 = vmatpush3.bf16.msra.mxu0 %v5614_v62  ;;  %v1953_v62 = vor.u32 %v1951_v58, %v1950_v26 }
  0xa6   : > { %5241 = vmatprep.subr.bf16.mxu0 %v5620_v56  ;;  %v2902_v56 = vshrl.u32 %v6573_v8, 16 }
  0xa7   : > { %5176 = vmatpush3.bf16.msra.mxu1 %v5612_v60  ;;  %v7289_v60 = vshrl.u32 %v6576_v43, 16 }
  0xa8   : > { %2515 = vmatmul.mubr.bf16.gmra.mxu0 %v6407_v18  ;;  %5177 = vmatprep.subr.bf16.mxu1 %v5618_v0  ;;  %v6612_v0 = vsel %vm6049_vm3, 0, %v1953_v62  ;;  %v2904_v16 = vrot.slane %v2902_v56, 7 }
  0xa9   : > { %2522 = vmatprep.mubr.bf16.mxu0 %v6419_v28  ;;  %5242 = vmatpush3.bf16.msra.mxu0 %v5621_v5  ;;  %v1974_v5 = vor.u32 %v1972_v55, %v1971_v59 }
  0xaa   : > { %2257 = vmatmul.mubr.bf16.gmra.mxu1 %v6512_v6  ;;  %5243 = vmatprep.subr.bf16.mxu0 %v5627_v14  ;;  %v1964_v14 = vrot.slane %v7289_v60, 7 }
  0xab   : > { %2264 = vmatprep.mubr.bf16.mxu1 %v6521_v7  ;;  %5178 = vmatpush3.bf16.msra.mxu1 %v5619_v53  ;;  %v1965_v53 = vshll.u32 %v6576_v43, 16  ;;  %v6631_v26 = vsel %vm6049_vm3, 0, %v1974_v5  ;;  %v2907_v5 = vor.u32 %v2905_v1, %v2904_v16  ;;  %v2918_v16 = vrot.slane %v7290_v24, 7 }
  0xac   : > { %5179 = vmatprep.subr.bf16.mxu1 %v5625_v17  ;;  %v6621_v17 = vld [vmem:[#allocation2 + $0x20] ss:$8 sps:$4 sm:$0xff]  }
  0xad   : > { %5244 = vmatpush3.bf16.msra.mxu0 %v5628_v10  ;;  %v726_v10 = vld [vmem:[%s614_s10] sm:$0xf]  ;;  %v7291_v60 = vshrl.u32 %v6621_v17, 16 }
  0xae   : > { %5357 = vmatprep.subr.bf16.mxu0 %v5634_v12  ;;  %v727_v12 = vld [vmem:[%s614_s10 + $0x4] sm:$0xf]  ;;  %v731_v40 = vsel %vm730_vm7, %v726_v10, 0  ;;  %v1967_v10 = vor.u32 %v1965_v53, %v1964_v14 }
  0xaf   : > { %5180 = vmatpush3.bf16.msra.mxu1 %v5626_v27  ;;  %v774_v27 = vld [vmem:[%s659_s18] sm:$0xf]  ;;  %v732_v46 = vsel %vm730_vm7, %v727_v12, 0  ;;  %734 = vst [vmem:[#allocation2 + $0x90] sm:$0xf] %v731_v40  ;;  %v2897_v12 = vrot.slane %v7291_v60, 7 }
  0xb0   : > { %2523 = vmatmul.mubr.bf16.gmra.mxu0 %v6428_v33  ;;  %5293 = vmatprep.subr.bf16.mxu1 %v5632_v30  ;;  %v775_v30 = vld [vmem:[%s659_s18 + $0x4] sm:$0xf]  ;;  %v776_v62 = vsel %vm730_vm7, %v774_v27, 0  ;;  %735 = vst [vmem:[#allocation2 + $0x98] sm:$0xf] %v732_v46  ;;  %v2898_v27 = vshll.u32 %v6621_v17, 16 }
  0xb1   : > { %2530 = vmatprep.mubr.bf16.mxu0 %v6456_v52  ;;  %v777_v59 = vsel %vm730_vm7, %v775_v30, 0  ;;  %778 = vst [vmem:[#allocation2 + $0x94] sm:$0xf] %v776_v62  ;;  %v6646_v30 = vld [vmem:[#allocation2 + $0x30] ss:$8 sps:$4 sm:$0xff]   ;;  %v3023_v40 = vsel %vm6049_vm3, 0, %v2907_v5 }
  0xb2   : > { %2265 = vmatmul.mubr.bf16.gmra.mxu1 %v6529_v15  ;;  %779 = vst [vmem:[#allocation2 + $0x9c] sm:$0xf] %v777_v59  ;;  %v2919_v46 = vshll.u32 %v6627_v35, 16  ;;  %v6655_v62 = vsel %vm6049_vm3, 0, %v1967_v10  ;;  %v2900_v14 = vor.u32 %v2898_v27, %v2897_v12  ;;  %v7292_v59 = vshrl.u32 %v6646_v30, 16  ;;  %v5635_v10 = vld [vmem:[%s7285_s6 + $0x438] sm:$0xff]  }
  0xb3   : > { %2272 = vmatprep.mubr.bf16.mxu1 %v6557_v31  ;;  %v2912_v12 = vshll.u32 %v6646_v30, 16 }
  0xb4   : > { %v2921_v5 = vor.u32 %v2919_v46, %v2918_v16  ;;  %v3022_v24 = vsel %vm6049_vm3, 0, %v2900_v14  ;;  %v5641_v16 = vld [vmem:[%s7285_s6 + $0x470] sm:$0xff]  }
  0xb5   : > { %v5639_v14 = vld [vmem:[%s7285_s6 + $0x3f0] sm:$0xff]  }
  0xb6   : > { %v3025_v60 = vsel %vm6049_vm3, 0, %v2921_v5  ;;  %v5642_v5 = vld [vmem:[%s7285_s6 + $0x430] sm:$0xff]  }
  0xb8   : > { %2531 = vmatmul.mubr.bf16.gmra.mxu0 %v6498_v3 }
  0xb9   : > { %2538 = vmatprep.mubr.bf16.mxu0 %v6505_v4 }
  0xba   : > { %2273 = vmatmul.mubr.bf16.gmra.mxu1 %v6587_v51 }
  0xbb   : > { %2280 = vmatprep.mubr.bf16.mxu1 %v6599_v57 }
  0xc0   : > { %2539 = vmatmul.mubr.bf16.gmra.mxu0 %v6514_v9 }
  0xc1   : > { %2546 = vmatprep.mubr.bf16.mxu0 %v6563_v37 }
  0xc2   : > { %2281 = vmatmul.mubr.bf16.gmra.mxu1 %v6612_v0 }
  0xc3   : > { %2288 = vmatprep.mubr.bf16.mxu1 %v6631_v26 }
  0xc8   : > { %2547 = vmatmul.mubr.bf16.gmra.mxu0 %v6576_v43 }
  0xc9   : > { %3263 = vmatprep.mubr.bf16.mxu0 %v3023_v40  ;;  %v2911_v40 = vrot.slane %v7292_v59, 7 }
  0xca   : > { %2289 = vmatmul.mubr.bf16.gmra.mxu1 %v6655_v62 }
  0xcb   : > { %2732 = vmatprep.mubr.bf16.mxu1 %v6172_v25  ;;  %v5633_v25 = vld [vmem:[%s7285_s6 + $0x3b8] sm:$0xff]   ;;  %v2914_v59 = vor.u32 %v2912_v12, %v2911_v40  ;;  %v5646_v40 = vld [vmem:[%s7285_s6 + $0x428] sm:$0xff]  }
  0xd0   : > { %3264 = vmatmul.mubr.bf16.vlgmr.msra.gmra.mxu0 %v3022_v24  ;;  %v5645_v24 = vld [vmem:[%s7285_s6 + $0x468] sm:$0xff]  }
  0xd1   : > { %5358 = vmatpush3.bf16.msra.mxu0 %v5635_v10  ;;  %3271 = vmatprep.mubr.bf16.mxu0 %v3025_v60  ;;  %v5640_v60 = vld [vmem:[%s7285_s6 + $0x3b0] sm:$0xff]   ;;  %v5643_v10 = vld [vmem:[%s7285_s6 + $0x3e8] sm:$0xff]  }
  0xd2   : > { %2733 = vmatmul.mubr.bf16.vlgmr.msra.gmra.mxu1 %v6205_v42  ;;  %5359 = vmatprep.subr.bf16.mxu0 %v5641_v16  ;;  %v3024_v42 = vsel %vm6049_vm3, 0, %v2914_v59  ;;  %v5644_v16 = vld [vmem:[%s7285_s6 + $0x3a8] sm:$0xff]   ;;  %v2021_v59 = vrot.slane %v1916_v32, 1  ;;  %v5648_v32 = vld [vmem:[%s7285_s6 + $0x3a0] sm:$0xff]  }
  0xd3   : > { %5294 = vmatpush3.bf16.msra.mxu1 %v5633_v25  ;;  %2740 = vmatprep.mubr.bf16.mxu1 %v6212_v44  ;;  %v5649_v44 = vld [vmem:[%s7285_s6 + $0x460] sm:$0xff]  }
  0xd4   : > { %5295 = vmatprep.subr.bf16.mxu1 %v5639_v14  ;;  %v5647_v25 = vld [vmem:[%s7285_s6 + $0x3e0] sm:$0xff]  }
  0xd5   : > { %5360 = vmatpush3.bf16.msra.mxu0 %v5642_v5  ;;  %v5650_v14 = vld [vmem:[%s7285_s6 + $0x420] sm:$0xff]   ;;  %v5653_v5 = vld [vmem:[%s7285_s6 + $0x458] sm:$0xff]  }
  0xd6   : > { %5361 = vmatprep.subr.bf16.mxu0 %v5645_v24  ;;  %v5654_v24 = vld [vmem:[%s7285_s6 + $0x418] sm:$0xff]  }
  0xd7   : > { %5296 = vmatpush3.bf16.msra.mxu1 %v5640_v60  ;;  %v2019_v60 = vrot.slane %v1909_v39, 1  ;;  %v5658_v39 = vld [vmem:[%s7285_s6 + $0x410] sm:$0xff]  }
  0xd8   : > { %3272 = vmatmul.mubr.bf16.gmra.mxu0 %v3024_v42  ;;  %5297 = vmatprep.subr.bf16.mxu1 %v5643_v10  ;;  %v2025_v10 = vrot.slane %v1930_v41, 1  ;;  %v5655_v42 = vld [vmem:[%s7285_s6 + $0x3d0] sm:$0xff]  }
  0xd9   : > { %3279 = vmatprep.mubr.bf16.mxu0 %v6470_v45  ;;  %5362 = vmatpush3.bf16.msra.mxu0 %v5646_v40  ;;  %v2022_v45 = vor.u32 %v2021_v59, %v1913_v19  ;;  %v2020_v41 = vor.u32 %v2019_v60, %v1906_v34  ;;  %v5668_v34 = vld [vmem:[%s7285_s6 + $0x440] sm:$0xff]  }
  0xda   : > { %2741 = vmatmul.mubr.bf16.gmra.mxu1 %v6234_v63  ;;  %5363 = vmatprep.subr.bf16.mxu0 %v5649_v44  ;;  %v5651_v63 = vld [vmem:[%s7285_s6 + $0x3d8] sm:$0xff]   ;;  %v2026_v40 = vor.u32 %v2025_v10, %v1927_v23  ;;  %v5662_v44 = vld [vmem:[%s7285_s6 + $0x408] sm:$0xff]   ;;  %v2023_v23 = vrot.slane %v1923_v50, 1  ;;  %v5666_v50 = vld [vmem:[%s7285_s6 + $0x3c0] sm:$0xff]  }
  0xdb   : > { %2748 = vmatprep.mubr.bf16.mxu1 %v6251_v13  ;;  %5298 = vmatpush3.bf16.msra.mxu1 %v5644_v16  ;;  %v5657_v13 = vld [vmem:[%s7285_s6 + $0x450] sm:$0xff]   ;;  %v6747_v19 = vsel %vm6150_vm6, %v2022_v45, 0  ;;  %v6781_v59 = vsel %vm6150_vm6, %v2020_v41, 0  ;;  %v2027_v41 = vrot.slane %v1937_v47, 1 }
  0xdc   : > { %5299 = vmatprep.subr.bf16.mxu1 %v5647_v25  ;;  %v5660_v25 = vld [vmem:[%s7285_s6 + $0x388] sm:$0xff]  }
  0xdd   : > { %5364 = vmatpush3.bf16.msra.mxu0 %v5650_v14  ;;  %v6791_v14 = vsel %vm6150_vm6, %v2026_v40, 0  ;;  %v2033_v40 = vrot.slane %v1958_v36, 1 }
  0xde   : > { %5365 = vmatprep.subr.bf16.mxu0 %v5653_v5 }
  0xdf   : > { %5300 = vmatpush3.bf16.msra.mxu1 %v5648_v32  ;;  %v2029_v32 = vrot.slane %v1944_v61, 1  ;;  %v2024_v61 = vor.u32 %v2023_v23, %v1920_v20  ;;  %v2034_v36 = vor.u32 %v2033_v40, %v1955_v21  ;;  %v2031_v21 = vrot.slane %v1951_v58, 1 }
  0xe0   : > { %3280 = vmatmul.mubr.bf16.gmra.mxu0 %v6512_v6  ;;  %5301 = vmatprep.subr.bf16.mxu1 %v5651_v63  ;;  %v5661_v6 = vld [vmem:[%s7285_s6 + $0x448] sm:$0xff]  }
  0xe1   : > { %3287 = vmatprep.mubr.bf16.mxu0 %v6521_v7  ;;  %5366 = vmatpush3.bf16.msra.mxu0 %v5654_v24  ;;  %v5656_v7 = vld [vmem:[%s7285_s6 + $0x390] sm:$0xff]   ;;  %v2030_v60 = vor.u32 %v2029_v32, %v1941_v54  ;;  %v6819_v20 = vsel %vm6150_vm6, %v2024_v61, 0 }
  0xe2   : > { %2749 = vmatmul.mubr.bf16.gmra.mxu1 %v6302_v29  ;;  %5367 = vmatprep.subr.bf16.mxu0 %v5657_v13  ;;  %v5659_v29 = vld [vmem:[%s7285_s6 + $0x3c8] sm:$0xff]  }
  0xe3   : > { %2756 = vmatprep.mubr.bf16.mxu1 %v6747_v19  ;;  %5302 = vmatpush3.bf16.msra.mxu1 %v5652_v48 }
  0xe4   : > { %5303 = vmatprep.subr.bf16.mxu1 %v5655_v42  ;;  %v6815_v42 = vld [vmem:[#allocation2 + $0x94] ss:$8 sps:$4 sm:$0xff]  }
  0xe5   : > { %5368 = vmatpush3.bf16.msra.mxu0 %v5658_v39  ;;  %v3000_v47 = vshrl.u32 %v6815_v42, 16 }
  0xe6   : > { %5369 = vmatprep.subr.bf16.mxu0 %v5661_v6 }
  0xe7   : > { %5304 = vmatpush3.bf16.msra.mxu1 %v5656_v7  ;;  %v6828_v7 = vsel %vm6150_vm6, %v2030_v60, 0 }
  0xe8   : > { %3288 = vmatmul.mubr.bf16.gmra.mxu0 %v6529_v15  ;;  %5305 = vmatprep.subr.bf16.mxu1 %v5659_v29  ;;  %v5669_v15 = vld [vmem:[%s7285_s6 + $0x400] sm:$0xff]  }
  0xe9   : > { %3295 = vmatprep.mubr.bf16.mxu0 %v6557_v31  ;;  %5370 = vmatpush3.bf16.msra.mxu0 %v5662_v44  ;;  %v5667_v31 = vld [vmem:[%s7285_s6 + $0x380] sm:$0xff]  }
  0xea   : > { %2757 = vmatmul.mubr.bf16.gmra.mxu1 %v6781_v59  ;;  %5371 = vmatprep.subr.bf16.mxu0 %v5668_v34 }
  0xeb   : > { %2764 = vmatprep.mubr.bf16.mxu1 %v6791_v14  ;;  %5306 = vmatpush3.bf16.msra.mxu1 %v5660_v25 }
  0xec   : > { %5307 = vmatprep.subr.bf16.mxu1 %v5666_v50 }
  0xed   : > { %5372 = vmatpush3.bf16.msra.mxu0 %v5669_v15  ;;  %v3002_v15 = vrot.slane %v3000_v47, 7 }
  0xef   : > { %5308 = vmatpush3.bf16.msra.mxu1 %v5667_v31 }
  0xf0   : > { %v4885_v16 = vpop.f32.mrf.mxu1  ;;  %v4861_v24 = vpop.f32.mrf.mxu0  ;;  %3296 = vmatmul.mubr.bf16.gmra.mxu0 %v6587_v51  ;;  %v2028_v51 = vor.u32 %v2027_v41, %v1934_v49 }
  0xf1   : > { %3303 = vmatprep.mubr.bf16.mxu0 %v6599_v57 }
  0xf2   : > { %v4886_v5 = vpop.f32.mrf.mxu1  ;;  %v4862_v10 = vpop.f32.mrf.mxu0  ;;  %2765 = vmatmul.mubr.bf16.gmra.mxu1 %v6819_v20  ;;  %v6853_v61 = vsel %vm6150_vm6, %v2028_v51, 0 }
  0xf3   : > { %v6799_v45 = vadd.f32 %v4886_v5, %v4885_v16  ;;  %v6821_v39 = vadd.f32 %v4862_v10, %v4861_v24  ;;  %2772 = vmatprep.mubr.bf16.mxu1 %v6828_v7  ;;  %v6844_v5 = vld [vmem:[#allocation2 + $0x90] ss:$8 sps:$4 sm:$0xff]   ;;  %v6862_v24 = vsel %vm6150_vm6, %v2034_v36, 0  ;;  %v2035_v36 = vrot.slane %v1965_v53, 1 }
  0xf4   : > { %v4888_v63 = vpop.f32.mrf.mxu1  ;;  %v4864_v54 = vpop.f32.mrf.mxu0  ;;  %v2993_v60 = vshrl.u32 %v6844_v5, 16  ;;  %v2996_v40 = vshll.u32 %v6844_v5, 16 }
  0xf6   : > { %v4889_v13 = vpop.f32.mrf.mxu1  ;;  %v4865_v44 = vpop.f32.mrf.mxu0 }
  0xf7   : > { %v6813_v48 = vadd.f32 %v4889_v13, %v4888_v63  ;;  %v6837_v34 = vadd.f32 %v4865_v44, %v4864_v54  ;;  %v3003_v63 = vshll.u32 %v6815_v42, 16  ;;  %v2037_v13 = vrot.slane %v1972_v55, 1 }
  0xf8   : > { %v4891_v6 = vpop.f32.mrf.mxu1  ;;  %v4867_v25 = vpop.f32.mrf.mxu0  ;;  %3304 = vmatmul.mubr.bf16.gmra.mxu0 %v6612_v0  ;;  %v2032_v0 = vor.u32 %v2031_v21, %v1948_v38 }
  0xf9   : > { %3311 = vmatprep.mubr.bf16.mxu0 %v6631_v26  ;;  %v3005_v58 = vor.u32 %v3003_v63, %v3002_v15  ;;  %v2038_v55 = vor.u32 %v2037_v13, %v1969_v2  ;;  %v2995_v26 = vrot.slane %v2993_v60, 7 }
  0xfa   : > { %v4892_v29 = vpop.f32.mrf.mxu1  ;;  %v4868_v32 = vpop.f32.mrf.mxu0  ;;  %2773 = vmatmul.mubr.bf16.gmra.mxu1 %v6853_v61  ;;  %v6887_v38 = vsel %vm6150_vm6, %v2032_v0, 0  ;;  %v3038_v0 = vrot.slane %v2898_v27, 1 }
  0xfb   : > { %v6834_v16 = vadd.f32 %v4892_v29, %v4891_v6  ;;  %v6855_v49 = vadd.f32 %v4868_v32, %v4867_v25  ;;  %2780 = vmatprep.mubr.bf16.mxu1 %v6862_v24  ;;  %v3037_v51 = vsel %vm6049_vm3, 0, %v3005_v58  ;;  %v6898_v15 = vsel %vm6150_vm6, %v2038_v55, 0 }
  0xfc   : > { %v4894_v23 = vpop.f32.mrf.mxu1  ;;  %v4870_v31 = vpop.f32.mrf.mxu0 }
  0xfe   : > { %v4895_v57 = vpop.f32.mrf.mxu1  ;;  %v4871_v10 = vpop.f32.mrf.mxu0 }
  0xff   : > { %v6846_v50 = vadd.f32 %v4895_v57, %v4894_v23  ;;  %v6871_v6 = vadd.f32 %v4871_v10, %v4870_v31  ;;  %v3040_v23 = vrot.slane %v2905_v1, 1  ;;  %v2998_v1 = vor.u32 %v2996_v40, %v2995_v26 }
 0x100   : > { %v4873_v41 = vpop.f32.mrf.mxu0  ;;  %v4897_v54 = vpop.f32.mrf.mxu1  ;;  %3312 = vmatmul.mubr.bf16.gmra.mxu0 %v6655_v62  ;;  %v7306_v10 = vshrl.u32 %v6576_v43, 16 }
 0x101   : > { %3319 = vmatprep.mubr.bf16.mxu0 %v3037_v51  ;;  %v3041_v13 = vor.u32 %v3040_v23, %v2902_v56  ;;  %v3044_v56 = vrot.slane %v2919_v46, 1  ;;  %v7308_v51 = vshrl.u32 %v6627_v35, 16 }
 0x102   : > { %v4874_v29 = vpop.f32.mrf.mxu0  ;;  %v4898_v44 = vpop.f32.mrf.mxu1  ;;  %2781 = vmatmul.mubr.bf16.gmra.mxu1 %v6887_v38  ;;  %v2036_v58 = vor.u32 %v2035_v36, %v7306_v10 }
 0x103   : > { %v6889_v25 = vadd.f32 %v4874_v29, %v4873_v41  ;;  %v6891_v2 = vadd.f32 %v4898_v44, %v4897_v54  ;;  %2788 = vmatprep.mubr.bf16.mxu1 %v6898_v15  ;;  %v3036_v41 = vsel %vm6049_vm3, 0, %v2998_v1  ;;  %v3087_v54 = vsel %vm6150_vm6, %v3041_v13, 0 }
 0x104   : > { %v4876_v57 = vpop.f32.mrf.mxu0  ;;  %v4900_v32 = vpop.f32.mrf.mxu1  ;;  %v6922_v55 = vsel %vm6150_vm6, %v2036_v58, 0  ;;  %v7307_v29 = vshrl.u32 %v6621_v17, 16  ;;  %v3045_v23 = vor.u32 %v3044_v56, %v7308_v51 }
 0x106   : > { %v4877_v21 = vpop.f32.mrf.mxu0  ;;  %v4901_v31 = vpop.f32.mrf.mxu1  ;;  %v3039_v44 = vor.u32 %v3038_v0, %v7307_v29  ;;  %v3089_v10 = vsel %vm6150_vm6, %v3045_v23, 0 }
 0x107   : > { %v6905_v53 = vadd.f32 %v4877_v21, %v4876_v57  ;;  %v6907_v62 = vadd.f32 %v4901_v31, %v4900_v32  ;;  %v3042_v21 = vrot.slane %v2912_v12, 1 }
 0x108   : > { %v4879_v26 = vpop.f32.mrf.mxu0  ;;  %3320 = vmatmul.mubr.bf16.gmra.mxu0 %v3036_v41  ;;  %v4903_v27 = vpop.f32.mrf.mxu1  ;;  %v3086_v1 = vsel %vm6150_vm6, %v3039_v44, 0 }
 0x109   : > { %3763 = vmatprep.mubr.bf16.mxu0 %v3087_v54  ;;  %v7309_v54 = vshrl.u32 %v6646_v30, 16 }
 0x10a   : > { %2789 = vmatmul.mubr.bf16.gmra.mxu1 %v6922_v55  ;;  %v4880_v22 = vpop.f32.mrf.mxu0  ;;  %v4904_v46 = vpop.f32.mrf.mxu1 }
 0x10b   : > { %v6929_v36 = vadd.f32 %v4880_v22, %v4879_v26  ;;  %3521 = vmatprep.mubr.bf16.mxu1 %v6573_v8  ;;  %v6932_v32 = vadd.f32 %v4904_v46, %v4903_v27  ;;  %v3043_v56 = vor.u32 %v3042_v21, %v7309_v54  ;;  %v5672_v54 = vld [vmem:[#allocation2 + $0x44] ss:$8 sps:$4 sm:$0xff]  }
 0x10c   : > { %v4882_v57 = vpop.f32.mrf.mxu0  ;;  %v4906_v31 = vpop.f32.mrf.mxu1 }
 0x10d   : > { %v3088_v51 = vsel %vm6150_vm6, %v3043_v56, 0 }
 0x10e   : > { %v4883_v13 = vpop.f32.mrf.mxu0  ;;  %v4907_v0 = vpop.f32.mrf.mxu1 }
 0x10f   : > { %v6940_v58 = vadd.f32 %v4883_v13, %v4882_v57  ;;  %v6942_v8 = vadd.f32 %v4907_v0, %v4906_v31 }
 0x110   : > { %v4989_v41 = vpop.f32.mrf.mxu0  ;;  %3764 = vmatmul.mubr.bf16.vlgmr.msra.gmra.mxu0 %v3086_v1  ;;  %v4925_v26 = vpop.f32.mrf.mxu1 }
 0x111   : > { %3771 = vmatprep.mubr.bf16.mxu0 %v3089_v10 }
 0x112   : > { %3522 = vmatmul.mubr.bf16.vlgmr.msra.gmra.mxu1 %v6621_v17  ;;  %v4990_v12 = vpop.f32.mrf.mxu0  ;;  %v4926_v44 = vpop.f32.mrf.mxu1 }
 0x113   : > { %v4991_v29 = vadd.f32 %v4990_v12, %v4989_v41  ;;  %3529 = vmatprep.mubr.bf16.mxu1 %v6627_v35  ;;  %v4927_v22 = vadd.f32 %v4926_v44, %v4925_v26 }
 0x114   : > { %v4992_v27 = vpop.f32.mrf.mxu0  ;;  %v4928_v23 = vpop.f32.mrf.mxu1 }
 0x115   : > { %v1479_v57 = vadd.f32 %v4927_v22, %v6821_v39 }
 0x116   : > { %v4993_v46 = vpop.f32.mrf.mxu0  ;;  %v4929_v31 = vpop.f32.mrf.mxu1 }
 0x117   : > { %v4994_v1 = vadd.f32 %v4993_v46, %v4992_v27  ;;  %v6951_v13 = vadd.f32 %v4991_v29, %v1479_v57  ;;  %v4930_v17 = vadd.f32 %v4929_v31, %v4928_v23 }
 0x118   : > { %v4995_v21 = vpop.f32.mrf.mxu0  ;;  %3772 = vmatmul.mubr.bf16.gmra.mxu0 %v3088_v51  ;;  %v4931_v35 = vpop.f32.mrf.mxu1 }
 0x119   : > { %3779 = vmatprep.mubr.bf16.mxu0 %v6747_v19  ;;  %v1482_v0 = vadd.f32 %v4930_v17, %v6837_v34 }
 0x11a   : > { %3530 = vmatmul.mubr.bf16.gmra.mxu1 %v6646_v30  ;;  %v4996_v10 = vpop.f32.mrf.mxu0  ;;  %v4932_v56 = vpop.f32.mrf.mxu1 }
 0x11b   : > { %v4997_v41 = vadd.f32 %v4996_v10, %v4995_v21  ;;  %3537 = vmatprep.mubr.bf16.mxu1 %v5672_v54  ;;  %v6956_v26 = vadd.f32 %v4994_v1, %v1482_v0  ;;  %v4933_v12 = vadd.f32 %v4932_v56, %v4931_v35 }
 0x11c   : > { %v4998_v39 = vpop.f32.mrf.mxu0  ;;  %v4934_v44 = vpop.f32.mrf.mxu1 }
 0x11d   : > { %v1487_v27 = vadd.f32 %v4933_v12, %v6855_v49 }
 0x11e   : > { %v4999_v29 = vpop.f32.mrf.mxu0  ;;  %v4935_v19 = vpop.f32.mrf.mxu1 }
 0x11f   : > { %v5000_v22 = vadd.f32 %v4999_v29, %v4998_v39  ;;  %v6960_v30 = vadd.f32 %v4997_v41, %v1487_v27  ;;  %v4936_v34 = vadd.f32 %v4935_v19, %v4934_v44 }
 0x120   : > { %v5001_v51 = vpop.f32.mrf.mxu0  ;;  %3780 = vmatmul.mubr.bf16.gmra.mxu0 %v6781_v59  ;;  %v4937_v23 = vpop.f32.mrf.mxu1 }
 0x121   : > { %3787 = vmatprep.mubr.bf16.mxu0 %v6791_v14  ;;  %v1490_v57 = vadd.f32 %v4936_v34, %v6871_v6 }
 0x122   : > { %3538 = vmatmul.mubr.bf16.gmra.mxu1 %v6407_v18  ;;  %v5002_v46 = vpop.f32.mrf.mxu0  ;;  %v4938_v49 = vpop.f32.mrf.mxu1 }
 0x123   : > { %v5003_v1 = vadd.f32 %v5002_v46, %v5001_v51  ;;  %3545 = vmatprep.mubr.bf16.mxu1 %v6419_v28  ;;  %v6966_v21 = vadd.f32 %v5000_v22, %v1490_v57  ;;  %v4939_v17 = vadd.f32 %v4938_v49, %v4937_v23 }
 0x124   : > { %v5004_v31 = vpop.f32.mrf.mxu0  ;;  %v4940_v59 = vpop.f32.mrf.mxu1 }
 0x125   : > { %v1495_v10 = vadd.f32 %v4939_v17, %v6889_v25  ;;  %v3068_v17 = vrot.slane %v3003_v63, 1 }
 0x126   : > { %v5005_v35 = vpop.f32.mrf.mxu0  ;;  %v4941_v14 = vpop.f32.mrf.mxu1 }
 0x127   : > { %v5006_v0 = vadd.f32 %v5005_v35, %v5004_v31  ;;  %v6970_v18 = vadd.f32 %v5003_v1, %v1495_v10  ;;  %v4942_v6 = vadd.f32 %v4941_v14, %v4940_v59  ;;  %v3069_v14 = vor.u32 %v3068_v17, %v3000_v47 }
 0x128   : > { %v5007_v41 = vpop.f32.mrf.mxu0  ;;  %3788 = vmatmul.mubr.bf16.gmra.mxu0 %v6819_v20  ;;  %v4943_v28 = vpop.f32.mrf.mxu1 }
 0x129   : > { %3795 = vmatprep.mubr.bf16.mxu0 %v6828_v7  ;;  %v1498_v56 = vadd.f32 %v4942_v6, %v6905_v53 }
 0x12a   : > { %3546 = vmatmul.mubr.bf16.gmra.mxu1 %v6428_v33  ;;  %v5008_v54 = vpop.f32.mrf.mxu0  ;;  %v4944_v25 = vpop.f32.mrf.mxu1 }
 0x12b   : > { %v5009_v39 = vadd.f32 %v5008_v54, %v5007_v41  ;;  %3553 = vmatprep.mubr.bf16.mxu1 %v6456_v52  ;;  %v6976_v44 = vadd.f32 %v5006_v0, %v1498_v56  ;;  %v4945_v29 = vadd.f32 %v4944_v25, %v4943_v28 }
 0x12c   : > { %v5010_v12 = vpop.f32.mrf.mxu0  ;;  %v4946_v20 = vpop.f32.mrf.mxu1 }
 0x12d   : > { %v1503_v22 = vadd.f32 %v4945_v29, %v6929_v36 }
 0x12e   : > { %v5011_v27 = vpop.f32.mrf.mxu0  ;;  %v4947_v7 = vpop.f32.mrf.mxu1 }
 0x12f   : > { %v5012_v19 = vadd.f32 %v5011_v27, %v5010_v12  ;;  %v6980_v33 = vadd.f32 %v5009_v39, %v1503_v22  ;;  %v4948_v53 = vadd.f32 %v4947_v7, %v4946_v20 }
 0x130   : > { %v5013_v51 = vpop.f32.mrf.mxu0  ;;  %3796 = vmatmul.mubr.bf16.gmra.mxu0 %v6853_v61  ;;  %v4949_v52 = vpop.f32.mrf.mxu1 }
 0x131   : > { %3803 = vmatprep.mubr.bf16.mxu0 %v6862_v24  ;;  %v1506_v23 = vadd.f32 %v4948_v53, %v6940_v58 }
 0x132   : > { %3554 = vmatmul.mubr.bf16.gmra.mxu1 %v6498_v3  ;;  %v5014_v34 = vpop.f32.mrf.mxu0  ;;  %v4950_v36 = vpop.f32.mrf.mxu1 }
 0x133   : > { %v5015_v46 = vadd.f32 %v5014_v34, %v5013_v51  ;;  %3561 = vmatprep.mubr.bf16.mxu1 %v6505_v4  ;;  %v6986_v1 = vadd.f32 %v5012_v19, %v1506_v23  ;;  %v4951_v49 = vadd.f32 %v4950_v36, %v4949_v52 }
 0x134   : > { %v5016_v57 = vpop.f32.mrf.mxu0  ;;  %v4952_v61 = vpop.f32.mrf.mxu1 }
 0x135   : > { %v1511_v24 = vadd.f32 %v4951_v49, %v6799_v45 }
 0x136   : > { %v5017_v31 = vpop.f32.mrf.mxu0  ;;  %v4953_v3 = vpop.f32.mrf.mxu1 }
 0x137   : > { %v5018_v59 = vadd.f32 %v5017_v31, %v5016_v57  ;;  %v6992_v58 = vadd.f32 %v5015_v46, %v1511_v24  ;;  %v4954_v4 = vadd.f32 %v4953_v3, %v4952_v61 }
 0x138   : > { %v5019_v35 = vpop.f32.mrf.mxu0  ;;  %3804 = vmatmul.mubr.bf16.gmra.mxu0 %v6887_v38  ;;  %v4955_v10 = vpop.f32.mrf.mxu1 }
 0x139   : > { %3811 = vmatprep.mubr.bf16.mxu0 %v6898_v15  ;;  %v1514_v63 = vadd.f32 %v4954_v4, %v6813_v48  ;;  %v3066_v15 = vrot.slane %v2996_v40, 1 }
 0x13a   : > { %3562 = vmatmul.mubr.bf16.gmra.mxu1 %v6514_v9  ;;  %v5020_v0 = vpop.f32.mrf.mxu0  ;;  %v4956_v41 = vpop.f32.mrf.mxu1  ;;  %v3101_v9 = vsel %vm6150_vm6, %v3069_v14, 0 }
 0x13b   : > { %v5021_v45 = vadd.f32 %v5020_v0, %v5019_v35  ;;  %3569 = vmatprep.mubr.bf16.mxu1 %v6563_v37  ;;  %v7000_v38 = vadd.f32 %v5018_v59, %v1514_v63  ;;  %v4957_v28 = vadd.f32 %v4956_v41, %v4955_v10  ;;  %v3067_v29 = vor.u32 %v3066_v15, %v2993_v60 }
 0x13c   : > { %v5022_v6 = vpop.f32.mrf.mxu0  ;;  %v4958_v54 = vpop.f32.mrf.mxu1 }
 0x13d   : > { %v1519_v47 = vadd.f32 %v4957_v28, %v6834_v16  ;;  %v3100_v51 = vsel %vm6150_vm6, %v3067_v29, 0 }
 0x13e   : > { %v5023_v56 = vpop.f32.mrf.mxu0  ;;  %v4959_v48 = vpop.f32.mrf.mxu1 }
 0x13f   : > { %v5024_v39 = vadd.f32 %v5023_v56, %v5022_v6  ;;  %v7008_v37 = vadd.f32 %v5021_v45, %v1519_v47  ;;  %v4960_v12 = vadd.f32 %v4959_v48, %v4958_v54 }
 0x140   : > { %v5025_v25 = vpop.f32.mrf.mxu0  ;;  %3812 = vmatmul.mubr.bf16.gmra.mxu0 %v6922_v55  ;;  %v4961_v40 = vpop.f32.mrf.mxu1 }
 0x141   : > { %3819 = vmatprep.mubr.bf16.mxu0 %v3101_v9  ;;  %v1522_v27 = vadd.f32 %v4960_v12, %v6846_v50 }
 0x142   : > { %3570 = vmatmul.mubr.bf16.gmra.mxu1 %v6576_v43  ;;  %v5026_v20 = vpop.f32.mrf.mxu0  ;;  %v4962_v16 = vpop.f32.mrf.mxu1 }
 0x143   : > { %v5027_v22 = vadd.f32 %v5026_v20, %v5025_v25  ;;  %3577 = vmatprep.mubr.bf16.mxu1 %v6815_v42  ;;  %v7015_v7 = vadd.f32 %v5024_v39, %v1522_v27  ;;  %v4963_v55 = vadd.f32 %v4962_v16, %v4961_v40 }
 0x144   : > { %v5028_v19 = vpop.f32.mrf.mxu0  ;;  %v4964_v53 = vpop.f32.mrf.mxu1 }
 0x145   : > { %v1527_v60 = vadd.f32 %v4963_v55, %v6891_v2 }
 0x146   : > { %v5029_v52 = vpop.f32.mrf.mxu0  ;;  %v4965_v43 = vpop.f32.mrf.mxu1 }
 0x147   : > { %v5030_v34 = vadd.f32 %v5029_v52, %v5028_v19  ;;  %v7020_v50 = vadd.f32 %v5027_v22, %v1527_v60  ;;  %v4966_v46 = vadd.f32 %v4965_v43, %v4964_v53 }
 0x148   : > { %v5031_v23 = vpop.f32.mrf.mxu0  ;;  %3820 = vmatmul.mubr.bf16.gmra.mxu0 %v3100_v51  ;;  %v4967_v42 = vpop.f32.mrf.mxu1 }
 0x149   : > { %v1530_v57 = vadd.f32 %v4966_v46, %v6907_v62 }
 0x14a   : > { %3578 = vmatmul.mubr.bf16.gmra.mxu1 %v6844_v5  ;;  %v5032_v36 = vpop.f32.mrf.mxu0  ;;  %v4968_v11 = vpop.f32.mrf.mxu1 }
 0x14b   : > { %v5033_v49 = vadd.f32 %v5032_v36, %v5031_v23  ;;  %v7024_v31 = vadd.f32 %v5030_v34, %v1530_v57  ;;  %v4969_v17 = vadd.f32 %v4968_v11, %v4967_v42 }
 0x14c   : > { %v5034_v61 = vpop.f32.mrf.mxu0  ;;  %v4970_v2 = vpop.f32.mrf.mxu1 }
 0x14d   : > { %v1535_v59 = vadd.f32 %v4969_v17, %v6932_v32 }
 0x14e   : > { %v5035_v24 = vpop.f32.mrf.mxu0  ;;  %v4971_v35 = vpop.f32.mrf.mxu1 }
 0x14f   : > { %v5036_v3 = vadd.f32 %v5035_v24, %v5034_v61  ;;  %v7027_v10 = vadd.f32 %v5033_v49, %v1535_v59  ;;  %v4972_v0 = vadd.f32 %v4971_v35, %v4970_v2 }
 0x150   : > { %v5117_v4 = vpop.f32.mrf.mxu0  ;;  %v5053_v5 = vpop.f32.mrf.mxu1 }
 0x151   : > { %v1538_v62 = vadd.f32 %v4972_v0, %v6942_v8 }
 0x152   : > { %v5118_v14 = vpop.f32.mrf.mxu0  ;;  %v5054_v45 = vpop.f32.mrf.mxu1 }
 0x153   : > { %v5119_v63 = vadd.f32 %v5118_v14, %v5117_v4  ;;  %v7030_v6 = vadd.f32 %v5036_v3, %v1538_v62  ;;  %v5055_v28 = vadd.f32 %v5054_v45, %v5053_v5 }
 0x154   : > { %v5120_v41 = vpop.f32.mrf.mxu0  ;;  %v5056_v15 = vpop.f32.mrf.mxu1 }
 0x155   : > { %v2297_v32 = vadd.f32 %v5055_v28, %v6951_v13 }
 0x156   : > { %v5121_v54 = vpop.f32.mrf.mxu0  ;;  %v5057_v9 = vpop.f32.mrf.mxu1 }
 0x157   : > { %v5122_v56 = vadd.f32 %v5121_v54, %v5120_v41  ;;  %v7033_v39 = vadd.f32 %v5119_v63, %v2297_v32  ;;  %v5058_v48 = vadd.f32 %v5057_v9, %v5056_v15 }
 0x158   : > { %v5123_v47 = vpop.f32.mrf.mxu0  ;;  %v5059_v25 = vpop.f32.mrf.mxu1 }
 0x159   : > { %v2298_v8 = vadd.f32 %v5058_v48, %v6956_v26 }
 0x15a   : > { %v5124_v12 = vpop.f32.mrf.mxu0  ;;  %v5060_v40 = vpop.f32.mrf.mxu1 }
 0x15b   : > { %v5125_v29 = vadd.f32 %v5124_v12, %v5123_v47  ;;  %v7036_v27 = vadd.f32 %v5122_v56, %v2298_v8  ;;  %v5061_v22 = vadd.f32 %v5060_v40, %v5059_v25 }
 0x15c   : > { %v5126_v20 = vpop.f32.mrf.mxu0  ;;  %v5062_v16 = vpop.f32.mrf.mxu1 }
 0x15d   : > { %v2299_v13 = vadd.f32 %v5061_v22, %v6960_v30 }
 0x15e   : > { %v5127_v19 = vpop.f32.mrf.mxu0  ;;  %v5063_v51 = vpop.f32.mrf.mxu1 }
 0x15f   : > { %v5128_v55 = vadd.f32 %v5127_v19, %v5126_v20  ;;  %v7039_v52 = vadd.f32 %v5125_v29, %v2299_v13  ;;  %v5064_v60 = vadd.f32 %v5063_v51, %v5062_v16 }
 0x160   : > { %v5129_v53 = vpop.f32.mrf.mxu0 }
 0x161   : > { %v2300_v26 = vadd.f32 %v5064_v60, %v6966_v21 }
 0x162   : > { %v5065_v34 = vpop.f32.mrf.mxu1  ;;  %v5130_v43 = vpop.f32.mrf.mxu0 }
 0x163   : > { %v5131_v23 = vadd.f32 %v5130_v43, %v5129_v53  ;;  %v7042_v36 = vadd.f32 %v5128_v55, %v2300_v26 }
 0x164   : > { %v5066_v46 = vpop.f32.mrf.mxu1  ;;  %v5132_v42 = vpop.f32.mrf.mxu0 }
 0x165   : > { %v5067_v57 = vadd.f32 %v5066_v46, %v5065_v34 }
 0x166   : > { %v5068_v49 = vpop.f32.mrf.mxu1  ;;  %v5133_v11 = vpop.f32.mrf.mxu0 }
 0x167   : > { %v2301_v30 = vadd.f32 %v5067_v57, %v6970_v18  ;;  %v5134_v61 = vadd.f32 %v5133_v11, %v5132_v42 }
 0x168   : > { %v5069_v17 = vpop.f32.mrf.mxu1  ;;  %v5135_v2 = vpop.f32.mrf.mxu0 }
 0x169   : > { %v7045_v24 = vadd.f32 %v5131_v23, %v2301_v30  ;;  %v5070_v59 = vadd.f32 %v5069_v17, %v5068_v49 }
 0x16a   : > { %v5071_v3 = vpop.f32.mrf.mxu1  ;;  %v5136_v35 = vpop.f32.mrf.mxu0 }
 0x16b   : > { %v2302_v21 = vadd.f32 %v5070_v59, %v6976_v44  ;;  %v5137_v4 = vadd.f32 %v5136_v35, %v5135_v2 }
 0x16c   : > { %v5072_v0 = vpop.f32.mrf.mxu1  ;;  %v5138_v5 = vpop.f32.mrf.mxu0 }
 0x16d   : > { %v7048_v14 = vadd.f32 %v5134_v61, %v2302_v21  ;;  %v5073_v62 = vadd.f32 %v5072_v0, %v5071_v3 }
 0x16e   : > { %v5074_v63 = vpop.f32.mrf.mxu1  ;;  %v5139_v45 = vpop.f32.mrf.mxu0 }
 0x16f   : > { %v2303_v18 = vadd.f32 %v5073_v62, %v6980_v33  ;;  %v5140_v41 = vadd.f32 %v5139_v45, %v5138_v5 }
 0x170   : > { %v5075_v28 = vpop.f32.mrf.mxu1  ;;  %v5141_v15 = vpop.f32.mrf.mxu0 }
 0x171   : > { %v7051_v54 = vadd.f32 %v5137_v4, %v2303_v18  ;;  %v5076_v32 = vadd.f32 %v5075_v28, %v5074_v63 }
 0x172   : > { %v5077_v56 = vpop.f32.mrf.mxu1  ;;  %v5142_v9 = vpop.f32.mrf.mxu0 }
 0x173   : > { %v2304_v44 = vadd.f32 %v5076_v32, %v6986_v1  ;;  %v5143_v47 = vadd.f32 %v5142_v9, %v5141_v15 }
 0x174   : > { %v5078_v48 = vpop.f32.mrf.mxu1  ;;  %v5144_v25 = vpop.f32.mrf.mxu0 }
 0x175   : > { %v7054_v12 = vadd.f32 %v5140_v41, %v2304_v44  ;;  %v5079_v8 = vadd.f32 %v5078_v48, %v5077_v56 }
 0x176   : > { %v5080_v29 = vpop.f32.mrf.mxu1  ;;  %v5145_v40 = vpop.f32.mrf.mxu0 }
 0x177   : > { %v2305_v33 = vadd.f32 %v5079_v8, %v6992_v58  ;;  %v5146_v20 = vadd.f32 %v5145_v40, %v5144_v25 }
 0x178   : > { %v5081_v22 = vpop.f32.mrf.mxu1  ;;  %v5147_v16 = vpop.f32.mrf.mxu0 }
 0x179   : > { %v7057_v19 = vadd.f32 %v5143_v47, %v2305_v33  ;;  %v5082_v13 = vadd.f32 %v5081_v22, %v5080_v29 }
 0x17a   : > { %v5083_v55 = vpop.f32.mrf.mxu1  ;;  %v5148_v51 = vpop.f32.mrf.mxu0 }
 0x17b   : > { %v2306_v1 = vadd.f32 %v5082_v13, %v7000_v38  ;;  %v5149_v53 = vadd.f32 %v5148_v51, %v5147_v16 }
 0x17c   : > { %v5084_v60 = vpop.f32.mrf.mxu1  ;;  %v5150_v34 = vpop.f32.mrf.mxu0 }
 0x17d   : > { %v7060_v43 = vadd.f32 %v5146_v20, %v2306_v1  ;;  %v5085_v26 = vadd.f32 %v5084_v60, %v5083_v55 }
 0x17e   : > { %v5086_v23 = vpop.f32.mrf.mxu1  ;;  %v5151_v46 = vpop.f32.mrf.mxu0 }
 0x17f   : > { %v2307_v58 = vadd.f32 %v5085_v26, %v7008_v37  ;;  %v5152_v42 = vadd.f32 %v5151_v46, %v5150_v34 }
 0x180   : > { %v5087_v57 = vpop.f32.mrf.mxu1  ;;  %v5153_v49 = vpop.f32.mrf.mxu0 }
 0x181   : > { %v7063_v11 = vadd.f32 %v5149_v53, %v2307_v58  ;;  %v5088_v30 = vadd.f32 %v5087_v57, %v5086_v23 }
 0x182   : > { %v5089_v61 = vpop.f32.mrf.mxu1  ;;  %v5154_v17 = vpop.f32.mrf.mxu0 }
 0x183   : > { %v2308_v38 = vadd.f32 %v5088_v30, %v7015_v7  ;;  %v5155_v2 = vadd.f32 %v5154_v17, %v5153_v49 }
 0x184   : > { %v5090_v59 = vpop.f32.mrf.mxu1  ;;  %v5156_v3 = vpop.f32.mrf.mxu0 }
 0x185   : > { %v7066_v35 = vadd.f32 %v5152_v42, %v2308_v38  ;;  %v5091_v21 = vadd.f32 %v5090_v59, %v5089_v61 }
 0x186   : > { %v5092_v4 = vpop.f32.mrf.mxu1  ;;  %v5157_v0 = vpop.f32.mrf.mxu0 }
 0x187   : > { %v2309_v37 = vadd.f32 %v5091_v21, %v7020_v50  ;;  %v5158_v5 = vadd.f32 %v5157_v0, %v5156_v3 }
 0x188   : > { %v5093_v62 = vpop.f32.mrf.mxu1  ;;  %v5159_v63 = vpop.f32.mrf.mxu0 }
 0x189   : > { %v7069_v45 = vadd.f32 %v5155_v2, %v2309_v37  ;;  %v5094_v18 = vadd.f32 %v5093_v62, %v5092_v4 }
 0x18a   : > { %v5095_v41 = vpop.f32.mrf.mxu1  ;;  %v5160_v28 = vpop.f32.mrf.mxu0 }
 0x18b   : > { %v2310_v7 = vadd.f32 %v5094_v18, %v7024_v31  ;;  %v5161_v15 = vadd.f32 %v5160_v28, %v5159_v63 }
 0x18c   : > { %v5096_v32 = vpop.f32.mrf.mxu1  ;;  %v5162_v56 = vpop.f32.mrf.mxu0 }
 0x18d   : > { %v7072_v9 = vadd.f32 %v5158_v5, %v2310_v7  ;;  %v5097_v44 = vadd.f32 %v5096_v32, %v5095_v41 }
 0x18e   : > { %v5098_v47 = vpop.f32.mrf.mxu1  ;;  %v5163_v48 = vpop.f32.mrf.mxu0 }
 0x18f   : > { %v2311_v50 = vadd.f32 %v5097_v44, %v7027_v10  ;;  %v5164_v25 = vadd.f32 %v5163_v48, %v5162_v56 }
 0x190   : > { %v5099_v8 = vpop.f32.mrf.mxu1  ;;  %v5245_v29 = vpop.f32.mrf.mxu0 }
 0x191   : > { %v7075_v40 = vadd.f32 %v5161_v15, %v2311_v50  ;;  %v5100_v33 = vadd.f32 %v5099_v8, %v5098_v47 }
 0x192   : > { %v5181_v20 = vpop.f32.mrf.mxu1  ;;  %v5246_v22 = vpop.f32.mrf.mxu0 }
 0x193   : > { %v2312_v31 = vadd.f32 %v5100_v33, %v7030_v6  ;;  %v5247_v16 = vadd.f32 %v5246_v22, %v5245_v29 }
 0x194   : > { %v5182_v13 = vpop.f32.mrf.mxu1  ;;  %v5248_v55 = vpop.f32.mrf.mxu0 }
 0x195   : > { %v7078_v51 = vadd.f32 %v5164_v25, %v2312_v31  ;;  %v5183_v1 = vadd.f32 %v5182_v13, %v5181_v20 }
 0x196   : > { %v5184_v53 = vpop.f32.mrf.mxu1  ;;  %v5249_v60 = vpop.f32.mrf.mxu0 }
 0x197   : > { %v2797_v10 = vadd.f32 %v5183_v1, %v7033_v39  ;;  %v5250_v34 = vadd.f32 %v5249_v60, %v5248_v55 }
 0x198   : > { %v5185_v26 = vpop.f32.mrf.mxu1  ;;  %v5251_v23 = vpop.f32.mrf.mxu0 }
 0x199   : > { %v7081_v46 = vadd.f32 %v5247_v16, %v2797_v10  ;;  %v5186_v58 = vadd.f32 %v5185_v26, %v5184_v53 }
 0x19a   : > { %v5187_v42 = vpop.f32.mrf.mxu1  ;;  %v5252_v57 = vpop.f32.mrf.mxu0 }
 0x19b   : > { %v2798_v6 = vadd.f32 %v5186_v58, %v7036_v27  ;;  %v5253_v49 = vadd.f32 %v5252_v57, %v5251_v23 }
 0x19c   : > { %v5188_v30 = vpop.f32.mrf.mxu1  ;;  %v5254_v61 = vpop.f32.mrf.mxu0 }
 0x19d   : > { %v7084_v17 = vadd.f32 %v5250_v34, %v2798_v6  ;;  %v5189_v38 = vadd.f32 %v5188_v30, %v5187_v42 }
 0x19e   : > { %v5190_v2 = vpop.f32.mrf.mxu1  ;;  %v5255_v59 = vpop.f32.mrf.mxu0 }
 0x19f   : > { %v2799_v39 = vadd.f32 %v5189_v38, %v7039_v52  ;;  %v5256_v3 = vadd.f32 %v5255_v59, %v5254_v61 }
 0x1a0   : > { %v5191_v21 = vpop.f32.mrf.mxu1  ;;  %v5257_v4 = vpop.f32.mrf.mxu0 }
 0x1a1   : > { %v7087_v0 = vadd.f32 %v5253_v49, %v2799_v39  ;;  %v5192_v37 = vadd.f32 %v5191_v21, %v5190_v2 }
 0x1a2   : > { %v5193_v5 = vpop.f32.mrf.mxu1  ;;  %v5258_v62 = vpop.f32.mrf.mxu0 }
 0x1a3   : > { %v2800_v27 = vadd.f32 %v5192_v37, %v7042_v36  ;;  %v5259_v63 = vadd.f32 %v5258_v62, %v5257_v4 }
 0x1a4   : > { %v5194_v18 = vpop.f32.mrf.mxu1  ;;  %v5260_v41 = vpop.f32.mrf.mxu0 }
 0x1a5   : > { %v7090_v28 = vadd.f32 %v5256_v3, %v2800_v27  ;;  %v5195_v7 = vadd.f32 %v5194_v18, %v5193_v5 }
 0x1a6   : > { %v5196_v15 = vpop.f32.mrf.mxu1  ;;  %v5261_v32 = vpop.f32.mrf.mxu0 }
 0x1a7   : > { %v2801_v52 = vadd.f32 %v5195_v7, %v7045_v24  ;;  %v5262_v56 = vadd.f32 %v5261_v32, %v5260_v41 }
 0x1a8   : > { %v5197_v44 = vpop.f32.mrf.mxu1  ;;  %v5263_v47 = vpop.f32.mrf.mxu0 }
 0x1a9   : > { %v7093_v48 = vadd.f32 %v5259_v63, %v2801_v52  ;;  %v5198_v50 = vadd.f32 %v5197_v44, %v5196_v15 }
 0x1aa   : > { %v5199_v25 = vpop.f32.mrf.mxu1  ;;  %v5264_v8 = vpop.f32.mrf.mxu0 }
 0x1ab   : > { %v2802_v36 = vadd.f32 %v5198_v50, %v7048_v14  ;;  %v5265_v29 = vadd.f32 %v5264_v8, %v5263_v47 }
 0x1ac   : > { %v5200_v33 = vpop.f32.mrf.mxu1  ;;  %v5266_v20 = vpop.f32.mrf.mxu0 }
 0x1ad   : > { %v7096_v22 = vadd.f32 %v5262_v56, %v2802_v36  ;;  %v5201_v31 = vadd.f32 %v5200_v33, %v5199_v25 }
 0x1ae   : > { %v5202_v16 = vpop.f32.mrf.mxu1  ;;  %v5267_v13 = vpop.f32.mrf.mxu0 }
 0x1af   : > { %v2803_v24 = vadd.f32 %v5201_v31, %v7051_v54  ;;  %v5268_v55 = vadd.f32 %v5267_v13, %v5266_v20 }
 0x1b0   : > { %v5203_v1 = vpop.f32.mrf.mxu1  ;;  %v5269_v53 = vpop.f32.mrf.mxu0 }
 0x1b1   : > { %v7099_v60 = vadd.f32 %v5265_v29, %v2803_v24  ;;  %v5204_v10 = vadd.f32 %v5203_v1, %v5202_v16 }
 0x1b2   : > { %v5205_v34 = vpop.f32.mrf.mxu1  ;;  %v5270_v26 = vpop.f32.mrf.mxu0 }
 0x1b3   : > { %v2804_v14 = vadd.f32 %v5204_v10, %v7054_v12  ;;  %v5271_v23 = vadd.f32 %v5270_v26, %v5269_v53 }
 0x1b4   : > { %v5206_v58 = vpop.f32.mrf.mxu1  ;;  %v5272_v42 = vpop.f32.mrf.mxu0 }
 0x1b5   : > { %v7102_v57 = vadd.f32 %v5268_v55, %v2804_v14  ;;  %v5207_v6 = vadd.f32 %v5206_v58, %v5205_v34 }
 0x1b6   : > { %v5208_v49 = vpop.f32.mrf.mxu1  ;;  %v5273_v30 = vpop.f32.mrf.mxu0 }
 0x1b7   : > { %v2805_v54 = vadd.f32 %v5207_v6, %v7057_v19  ;;  %v5274_v61 = vadd.f32 %v5273_v30, %v5272_v42 }
 0x1b8   : > { %v5209_v38 = vpop.f32.mrf.mxu1  ;;  %v5275_v2 = vpop.f32.mrf.mxu0 }
 0x1b9   : > { %v7105_v59 = vadd.f32 %v5271_v23, %v2805_v54  ;;  %v5210_v39 = vadd.f32 %v5209_v38, %v5208_v49 }
 0x1ba   : > { %v5211_v3 = vpop.f32.mrf.mxu1  ;;  %v5276_v21 = vpop.f32.mrf.mxu0 }
 0x1bb   : > { %v2806_v12 = vadd.f32 %v5210_v39, %v7060_v43  ;;  %v5277_v4 = vadd.f32 %v5276_v21, %v5275_v2 }
 0x1bc   : > { %v5212_v37 = vpop.f32.mrf.mxu1  ;;  %v5278_v5 = vpop.f32.mrf.mxu0 }
 0x1bd   : > { %v7108_v62 = vadd.f32 %v5274_v61, %v2806_v12  ;;  %v5213_v27 = vadd.f32 %v5212_v37, %v5211_v3 }
 0x1be   : > { %v5214_v63 = vpop.f32.mrf.mxu1  ;;  %v5279_v18 = vpop.f32.mrf.mxu0 }
 0x1bf   : > { %v2807_v19 = vadd.f32 %v5213_v27, %v7063_v11  ;;  %v5280_v41 = vadd.f32 %v5279_v18, %v5278_v5 }
 0x1c0   : > { %v5215_v7 = vpop.f32.mrf.mxu1  ;;  %v5281_v15 = vpop.f32.mrf.mxu0 }
 0x1c1   : > { %v7111_v32 = vadd.f32 %v5277_v4, %v2807_v19  ;;  %v5216_v52 = vadd.f32 %v5215_v7, %v5214_v63 }
 0x1c2   : > { %v5217_v56 = vpop.f32.mrf.mxu1  ;;  %v5282_v44 = vpop.f32.mrf.mxu0 }
 0x1c3   : > { %v2808_v43 = vadd.f32 %v5216_v52, %v7066_v35  ;;  %v5283_v47 = vadd.f32 %v5282_v44, %v5281_v15 }
 0x1c4   : > { %v5218_v50 = vpop.f32.mrf.mxu1  ;;  %v5284_v25 = vpop.f32.mrf.mxu0 }
 0x1c5   : > { %v7114_v8 = vadd.f32 %v5280_v41, %v2808_v43  ;;  %v5219_v36 = vadd.f32 %v5218_v50, %v5217_v56 }
 0x1c6   : > { %v5220_v29 = vpop.f32.mrf.mxu1  ;;  %v5285_v33 = vpop.f32.mrf.mxu0 }
 0x1c7   : > { %v2809_v11 = vadd.f32 %v5219_v36, %v7069_v45  ;;  %v5286_v20 = vadd.f32 %v5285_v33, %v5284_v25 }
 0x1c8   : > { %v5221_v31 = vpop.f32.mrf.mxu1  ;;  %v5287_v16 = vpop.f32.mrf.mxu0 }
 0x1c9   : > { %v7117_v13 = vadd.f32 %v5283_v47, %v2809_v11  ;;  %v5222_v24 = vadd.f32 %v5221_v31, %v5220_v29 }
 0x1ca   : > { %v5223_v55 = vpop.f32.mrf.mxu1  ;;  %v5288_v1 = vpop.f32.mrf.mxu0 }
 0x1cb   : > { %v2810_v35 = vadd.f32 %v5222_v24, %v7072_v9  ;;  %v5289_v53 = vadd.f32 %v5288_v1, %v5287_v16 }
 0x1cc   : > { %v5224_v10 = vpop.f32.mrf.mxu1  ;;  %v7120_v34 = vpop.f32.mrf.mxu0 }
 0x1cd   : > { %v7122_v26 = vadd.f32 %v5286_v20, %v2810_v35  ;;  %v5225_v14 = vadd.f32 %v5224_v10, %v5223_v55 }
 0x1ce   : > { %v7124_v23 = vpop.f32.mrf.mxu1  ;;  %v7126_v45 = vpop.f32.mrf.mxu0 }
 0x1cf   : > { %v2811_v58 = vadd.f32 %v5225_v14, %v7075_v40 }
 0x1d0   : > { %v7129_v42 = vpop.f32.mrf.mxu1  ;;  %v5373_v6 = vpop.f32.mrf.mxu0 }
 0x1d1   : > { %v7131_v49 = vadd.f32 %v5289_v53, %v2811_v58 }
 0x1d2   : > { %v5309_v30 = vpop.f32.mrf.mxu1  ;;  %v5374_v9 = vpop.f32.mrf.mxu0 }
 0x1d3   : > { %v5375_v21 = vadd.f32 %v5374_v9, %v5373_v6 }
 0x1d4   : > { %v5310_v54 = vpop.f32.mrf.mxu1  ;;  %v5376_v61 = vpop.f32.mrf.mxu0 }
 0x1d5   : > { %v5311_v38 = vadd.f32 %v5310_v54, %v5309_v30 }
 0x1d6   : > { %v5312_v2 = vpop.f32.mrf.mxu1  ;;  %v5377_v39 = vpop.f32.mrf.mxu0 }
 0x1d7   : > { %v3586_v3 = vadd.f32 %v5311_v38, %v7081_v46  ;;  %v5378_v18 = vadd.f32 %v5377_v39, %v5376_v61 }
 0x1d8   : > { %v5313_v12 = vpop.f32.mrf.mxu1  ;;  %v5379_v4 = vpop.f32.mrf.mxu0 }
 0x1d9   : > { %v7134_v37 = vadd.f32 %v5375_v21, %v3586_v3  ;;  %v5314_v40 = vadd.f32 %v5313_v12, %v5312_v2 }
 0x1da   : > { %v5315_v5 = vpop.f32.mrf.mxu1  ;;  %v5380_v27 = vpop.f32.mrf.mxu0 }
 0x1db   : > { %v3587_v63 = vadd.f32 %v5314_v40, %v7084_v17  ;;  %v5381_v44 = vadd.f32 %v5380_v27, %v5379_v4 }
 0x1dc   : > { %v5316_v19 = vpop.f32.mrf.mxu1  ;;  %v5382_v41 = vpop.f32.mrf.mxu0 }
 0x1dd   : > { %v7137_v7 = vadd.f32 %v5378_v18, %v3587_v63  ;;  %v5317_v15 = vadd.f32 %v5316_v19, %v5315_v5 }
 0x1de   : > { %v5318_v52 = vpop.f32.mrf.mxu1  ;;  %v5383_v56 = vpop.f32.mrf.mxu0 }
 0x1df   : > { %v3588_v46 = vadd.f32 %v5317_v15, %v7087_v0  ;;  %v5384_v33 = vadd.f32 %v5383_v56, %v5382_v41 }
 0x1e0   : > { %v5319_v43 = vpop.f32.mrf.mxu1  ;;  %v5385_v47 = vpop.f32.mrf.mxu0 }
 0x1e1   : > { %v7140_v50 = vadd.f32 %v5381_v44, %v3588_v46  ;;  %v5320_v25 = vadd.f32 %v5319_v43, %v5318_v52 }
 0x1e2   : > { %v5321_v36 = vpop.f32.mrf.mxu1  ;;  %v5386_v29 = vpop.f32.mrf.mxu0 }
 0x1e3   : > { %v3589_v17 = vadd.f32 %v5320_v25, %v7090_v28  ;;  %v5387_v1 = vadd.f32 %v5386_v29, %v5385_v47 }
 0x1e4   : > { %v5322_v11 = vpop.f32.mrf.mxu1  ;;  %v5388_v20 = vpop.f32.mrf.mxu0 }
 0x1e5   : > { %v7143_v31 = vadd.f32 %v5384_v33, %v3589_v17  ;;  %v5323_v16 = vadd.f32 %v5322_v11, %v5321_v36 }
 0x1e6   : > { %v5324_v24 = vpop.f32.mrf.mxu1  ;;  %v5389_v55 = vpop.f32.mrf.mxu0 }
 0x1e7   : > { %v3590_v0 = vadd.f32 %v5323_v16, %v7093_v48  ;;  %v5390_v30 = vadd.f32 %v5389_v55, %v5388_v20 }
 0x1e8   : > { %v5325_v35 = vpop.f32.mrf.mxu1  ;;  %v5391_v53 = vpop.f32.mrf.mxu0 }
 0x1e9   : > { %v7146_v10 = vadd.f32 %v5387_v1, %v3590_v0  ;;  %v5326_v14 = vadd.f32 %v5325_v35, %v5324_v24 }
 0x1ea   : > { %v5327_v58 = vpop.f32.mrf.mxu1  ;;  %v5392_v6 = vpop.f32.mrf.mxu0 }
 0x1eb   : > { %v3591_v28 = vadd.f32 %v5326_v14, %v7096_v22  ;;  %v5393_v3 = vadd.f32 %v5392_v6, %v5391_v53 }
 0x1ec   : > { %v5328_v9 = vpop.f32.mrf.mxu1  ;;  %v5394_v54 = vpop.f32.mrf.mxu0 }
 0x1ed   : > { %v7149_v61 = vadd.f32 %v5390_v30, %v3591_v28  ;;  %v5329_v38 = vadd.f32 %v5328_v9, %v5327_v58 }
 0x1ee   : > { %v5330_v2 = vpop.f32.mrf.mxu1  ;;  %v5395_v39 = vpop.f32.mrf.mxu0 }
 0x1ef   : > { %v3592_v48 = vadd.f32 %v5329_v38, %v7099_v60  ;;  %v5396_v63 = vadd.f32 %v5395_v39, %v5394_v54 }
 0x1f0   : > { %v5331_v21 = vpop.f32.mrf.mxu1  ;;  %v5397_v12 = vpop.f32.mrf.mxu0 }
 0x1f1   : > { %v7152_v4 = vadd.f32 %v5393_v3, %v3592_v48  ;;  %v5332_v40 = vadd.f32 %v5331_v21, %v5330_v2 }
 0x1f2   : > { %v5333_v5 = vpop.f32.mrf.mxu1  ;;  %v5398_v27 = vpop.f32.mrf.mxu0 }
 0x1f3   : > { %v3593_v22 = vadd.f32 %v5332_v40, %v7102_v57  ;;  %v5399_v46 = vadd.f32 %v5398_v27, %v5397_v12  ;;  %v5228_v12 = vadd.f32 %v7129_v42, %v7124_v23 }
 0x1f4   : > { %v5334_v18 = vpop.f32.mrf.mxu1  ;;  %v5400_v19 = vpop.f32.mrf.mxu0 }
 0x1f5   : > { %v7155_v41 = vadd.f32 %v5396_v63, %v3593_v22  ;;  %v5335_v15 = vadd.f32 %v5334_v18, %v5333_v5 }
 0x1f6   : > { %v5336_v52 = vpop.f32.mrf.mxu1  ;;  %v5401_v56 = vpop.f32.mrf.mxu0 }
 0x1f7   : > { %v3594_v60 = vadd.f32 %v5335_v15, %v7105_v59  ;;  %v5402_v17 = vadd.f32 %v5401_v56, %v5400_v19  ;;  %v2812_v15 = vadd.f32 %v5228_v12, %v7078_v51 }
 0x1f8   : > { %v5337_v44 = vpop.f32.mrf.mxu1  ;;  %v5403_v43 = vpop.f32.mrf.mxu0 }
 0x1f9   : > { %v7158_v47 = vadd.f32 %v5399_v46, %v3594_v60  ;;  %v5338_v25 = vadd.f32 %v5337_v44, %v5336_v52  ;;  %v5292_v60 = vadd.f32 %v7126_v45, %v7120_v34 }
 0x1fa   : > { %v5339_v36 = vpop.f32.mrf.mxu1  ;;  %v5404_v29 = vpop.f32.mrf.mxu0 }
 0x1fb   : > { %v3595_v57 = vadd.f32 %v5338_v25, %v7108_v62  ;;  %v5405_v0 = vadd.f32 %v5404_v29, %v5403_v43  ;;  %v3343_v43 = vadd.f32 %v5292_v60, %v2812_v15 }
 0x1fc   : > { %v5340_v33 = vpop.f32.mrf.mxu1  ;;  %v5406_v11 = vpop.f32.mrf.mxu0 }
 0x1fd   : > { %v7161_v20 = vadd.f32 %v5402_v17, %v3595_v57  ;;  %v5341_v16 = vadd.f32 %v5340_v33, %v5339_v36 }
 0x1fe   : > { %v5342_v24 = vpop.f32.mrf.mxu1  ;;  %v5407_v55 = vpop.f32.mrf.mxu0 }
 0x1ff   : > { %v3596_v59 = vadd.f32 %v5341_v16, %v7111_v32  ;;  %v5408_v28 = vadd.f32 %v5407_v55, %v5406_v11 }
 0x200   : > { %v5343_v1 = vpop.f32.mrf.mxu1  ;;  %v5409_v35 = vpop.f32.mrf.mxu0 }
 0x201   : > { %v7164_v53 = vadd.f32 %v5405_v0, %v3596_v59  ;;  %v5344_v14 = vadd.f32 %v5343_v1, %v5342_v24 }
 0x202   : > { %v5345_v58 = vpop.f32.mrf.mxu1  ;;  %v5410_v6 = vpop.f32.mrf.mxu0 }
 0x203   : > { %v3597_v62 = vadd.f32 %v5344_v14, %v7114_v8  ;;  %v5411_v48 = vadd.f32 %v5410_v6, %v5409_v35 }
 0x204   : > { %v5346_v30 = vpop.f32.mrf.mxu1  ;;  %v5412_v9 = vpop.f32.mrf.mxu0 }
 0x205   : > { %v7167_v54 = vadd.f32 %v5408_v28, %v3597_v62  ;;  %v5347_v38 = vadd.f32 %v5346_v30, %v5345_v58 }
 0x206   : > { %v5348_v2 = vpop.f32.mrf.mxu1  ;;  %v5413_v39 = vpop.f32.mrf.mxu0 }
 0x207   : > { %v3598_v32 = vadd.f32 %v5347_v38, %v7117_v13  ;;  %v5414_v63 = vadd.f32 %v5413_v39, %v5412_v9 }
 0x208   : > { %v5349_v3 = vpop.f32.mrf.mxu1  ;;  %v5415_v21 = vpop.f32.mrf.mxu0 }
 0x209   : > { %v7172_v40 = vadd.f32 %v5411_v48, %v3598_v32  ;;  %v5350_v5 = vadd.f32 %v5349_v3, %v5348_v2 }
 0x20a   : > { %v5351_v8 = vpop.f32.mrf.mxu1  ;;  %v5416_v27 = vpop.f32.mrf.mxu0 }
 0x20b   : > { %v3599_v22 = vadd.f32 %v5350_v5, %v7122_v26  ;;  %v5417_v42 = vadd.f32 %v5416_v27, %v5415_v21 }
 0x20c   : > { %v5352_v18 = vpop.f32.mrf.mxu1  ;;  %v5418_v19 = vpop.f32.mrf.mxu0 }
 0x20d   : > { %v7176_v52 = vadd.f32 %v5414_v63, %v3599_v22  ;;  %v5353_v13 = vadd.f32 %v5352_v18, %v5351_v8 }
 0x20e   : > { %v5354_v56 = vpop.f32.mrf.mxu1  ;;  %v5419_v44 = vpop.f32.mrf.mxu0 }
 0x20f   : > { %v3600_v23 = vadd.f32 %v5353_v13, %v7131_v49  ;;  %v5420_v29 = vadd.f32 %v5419_v44, %v5418_v19 }
 0x210   : > { %v5355_v46 = vpop.f32.mrf.mxu1 }
 0x211   : > { %v7181_v25 = vadd.f32 %v5417_v42, %v3600_v23  ;;  %v5356_v26 = vadd.f32 %v5355_v46, %v5354_v56  ;;  %3847 = sbr.rel (%p4759_p12) target bundleno = 536 (0x218), region = 52 }
 0x213   : > { %v3601_v36 = vadd.f32 %v5356_v26, %v3343_v43 }
 0x215   : > { %v7183_v57 = vadd.f32 %v5420_v29, %v3601_v36 }
 0x216   : > { %v5713_v51 = vmov 0.0  }
 0x217   : > { %3848 = vst [vmem:[%s5827_s22] sm:$0x1] %v5713_v51  ;;  %3849 = vst [vmem:[%s5835_s26] sm:$0x1] %v5713_v51 }
 0x218 PF: > { %v3851_v34 = vadd.f32 %v7137_v7, %v7134_v37  ;;  %v3875_v45 = vmul.f32 %v7134_v37, %v7134_v37  ;;  %v3876_v49 = vmul.f32 %v7137_v7, %v7137_v7  ;;  %v3877_v33 = vmul.f32 %v7140_v50, %v7140_v50 }
 0x219   : > { %v3878_v16 = vmul.f32 %v7143_v31, %v7143_v31  ;;  %v3879_v24 = vmul.f32 %v7146_v10, %v7146_v10  ;;  %v4801_v59 = vpack.c.bf16 %v7137_v7, %v7134_v37  ;;  %v4806_v0 = vpack.c.bf16 %v7143_v31, %v7140_v50 }
 0x21a   : > { %v3852_v17 = vadd.f32 %v3851_v34, %v7140_v50  ;;  %v3891_v55 = vadd.f32 %v3876_v49, %v3875_v45  ;;  %v4811_v1 = vpack.c.bf16 %v7149_v61, %v7146_v10  ;;  %v4816_v35 = vpack.c.bf16 %v7155_v41, %v7152_v4 }
 0x21b   : > { %v4821_v6 = vpack.c.bf16 %v7161_v20, %v7158_v47  ;;  %v4826_v37 = vpack.c.bf16 %v7167_v54, %v7164_v53  ;;  %4802 = vst [vmem:[%s5898_s8] sm:$0xff] %v4801_v59   ;;  %4838 = vst [vmem:[%s5898_s8 + $0x8] sm:$0xff] %v4806_v0   ;;  %v4831_v7 = vpack.c.bf16 %v7176_v52, %v7172_v40 }
 0x21c   : > { %v3853_v11 = vadd.f32 %v3852_v17, %v7143_v31  ;;  %v3892_v58 = vadd.f32 %v3891_v55, %v3877_v33  ;;  %4839 = vst [vmem:[%s5898_s8 + $0x10] sm:$0xff] %v4811_v1   ;;  %4840 = vst [vmem:[%s5898_s8 + $0x18] sm:$0xff] %v4816_v35   ;;  %v4836_v50 = vpack.c.bf16 %v7183_v57, %v7181_v25 }
 0x21d   : > { %4841 = vst [vmem:[%s5898_s8 + $0x20] sm:$0xff] %v4821_v6   ;;  %4842 = vst [vmem:[%s5898_s8 + $0x28] sm:$0xff] %v4826_v37   ;;  %v3881_v30 = vmul.f32 %v7152_v4, %v7152_v4  ;;  %v3882_v2 = vmul.f32 %v7155_v41, %v7155_v41  ;;  %v3884_v21 = vmul.f32 %v7161_v20, %v7161_v20 }
 0x21e   : > { %v3854_v14 = vadd.f32 %v3853_v11, %v7146_v10  ;;  %v3880_v10 = vmul.f32 %v7149_v61, %v7149_v61  ;;  %v3893_v62 = vadd.f32 %v3892_v58, %v3878_v16  ;;  %4843 = vst [vmem:[%s5898_s8 + $0x30] sm:$0xff] %v4831_v7   ;;  %4844 = vst [vmem:[%s5898_s8 + $0x38] sm:$0xff] %v4836_v50   ;;  %v3850_v51 = vld [vmem:[%s5827_s22] sm:$0x1] }
 0x21f   : > { %v3885_v5 = vmul.f32 %v7164_v53, %v7164_v53  ;;  %v3886_v27 = vmul.f32 %v7167_v54, %v7167_v54  ;;  %v3887_v63 = vmul.f32 %v7172_v40, %v7172_v40  ;;  %v3888_v19 = vmul.f32 %v7176_v52, %v7176_v52 }
 0x220   : > { %v3855_v31 = vadd.f32 %v3854_v14, %v7149_v61  ;;  %v3894_v9 = vadd.f32 %v3893_v62, %v3879_v24  ;;  %v3883_v61 = vmul.f32 %v7158_v47, %v7158_v47  ;;  %v3889_v13 = vmul.f32 %v7181_v25, %v7181_v25 }
 0x221   : > { %v3890_v60 = vmul.f32 %v7183_v57, %v7183_v57 }
 0x222   : > { %v3856_v28 = vadd.f32 %v3855_v31, %v7152_v4  ;;  %v3895_v39 = vadd.f32 %v3894_v9, %v3880_v10 }
 0x224   : > { %v3857_v38 = vadd.f32 %v3856_v28, %v7155_v41  ;;  %v3896_v48 = vadd.f32 %v3895_v39, %v3881_v30 }
 0x226   : > { %v3858_v32 = vadd.f32 %v3857_v38, %v7158_v47  ;;  %v3897_v12 = vadd.f32 %v3896_v48, %v3882_v2 }
 0x228   : > { %v3859_v3 = vadd.f32 %v3858_v32, %v7161_v20  ;;  %v3898_v8 = vadd.f32 %v3897_v12, %v3883_v61 }
 0x22a   : > { %v3860_v4 = vadd.f32 %v3859_v3, %v7164_v53  ;;  %v3899_v22 = vadd.f32 %v3898_v8, %v3884_v21 }
 0x22c   : > { %v3861_v41 = vadd.f32 %v3860_v4, %v7167_v54  ;;  %v3900_v18 = vadd.f32 %v3899_v22, %v3885_v5 }
 0x22e   : > { %v3862_v47 = vadd.f32 %v3861_v41, %v7172_v40  ;;  %v3901_v15 = vadd.f32 %v3900_v18, %v3886_v27 }
 0x230   : > { %v3863_v20 = vadd.f32 %v3862_v47, %v7176_v52  ;;  %v3902_v54 = vadd.f32 %v3901_v15, %v3887_v63 }
 0x232   : > { %v3864_v53 = vadd.f32 %v3863_v20, %v7181_v25  ;;  %v3903_v40 = vadd.f32 %v3902_v54, %v3888_v19 }
 0x234   : > { %v3865_v56 = vadd.f32 %v3864_v53, %v7183_v57  ;;  %v3904_v42 = vadd.f32 %v3903_v40, %v3889_v13  ;;  %v3874_v57 = vld [vmem:[%s5835_s26] sm:$0x1] }
 0x236   : > { %v3866_v23 = vrot.slane %v3865_v56, 4  ;;  %v3905_v52 = vadd.f32 %v3904_v42, %v3890_v60 }
 0x238   : > { %v3867_v46 = vadd.f32 %v3866_v23, %v3865_v56  ;;  %v3906_v43 = vrot.slane %v3905_v52, 4 }
 0x23a   : > { %v3868_v44 = vrot.slane %v3867_v46, 2  ;;  %v3907_v36 = vadd.f32 %v3906_v43, %v3905_v52 }
 0x23c   : > { %v3869_v26 = vadd.f32 %v3868_v44, %v3867_v46  ;;  %v3908_v25 = vrot.slane %v3907_v36, 2 }
 0x23e   : > { %v3870_v29 = vrot.slane %v3869_v26, 1  ;;  %v3909_v45 = vadd.f32 %v3908_v25, %v3907_v36 }
 0x240   : > { %v3871_v34 = vadd.f32 %v3870_v29, %v3869_v26  ;;  %v3910_v17 = vrot.slane %v3909_v45, 1 }
 0x242   : > { %v3872_v49 = vadd.f32 %v3871_v34, %v3850_v51  ;;  %v3911_v33 = vadd.f32 %v3910_v17, %v3909_v45 }
 0x244   : > { %3873 = vst [vmem:[%s5827_s22] sm:$0x1] %v3872_v49  ;;  %v3912_v11 = vadd.f32 %v3911_v33, %v3874_v57 }
 0x246   : > { %3913 = vst [vmem:[%s5835_s26] sm:$0x1] %v3912_v11 }
 0x247 PF: > { %s20_s13 = sadd.s32 1, %s5711_s13   ;;  %s7310_s8 = sld [smem:[#allocation3_spill]] }
 0x248   : > { %p17_p13 = scmp.ge.s32.totalorder %s20_s13, 6   ;;  %s7311_s9 = sld [smem:[#allocation4_spill]] }
 0x249   : > { %s7312_s30 = smov %s5703_s11  ;;  %s7313_s10 = smov %s5707_s12 }
 0x24a   :  { %19 = sbr.rel (!%p17_p13) target bundleno = 4 (0x4), region = 132 }
 0x24d   : > { %s7314_s11 = smov %s7310_s8 }
 0x24e   : > { %s7315_s12 = smov %s7311_s9 }

</bundles_post_ra>
